<compile_context>
chip_gen: v5e
topology: v5e:2x2
jax: 0.10.0
libtpu: 0.0.40
codegen_flags: <defaults>
</compile_context>

<pallas_src>
import functools
import math

import jax
import jax.numpy as jnp
from jax import lax
from jax.experimental import pallas as pl
from jax.experimental.pallas import tpu as pltpu


# Parameters the kernel consumes, in argument order.
KERNEL_PARAM_ORDER = [
    "wq1", "bq1", "wk1", "bk1", "wp1", "bp1",      # cross_attention1
    "g1", "be1",                                   # norm1
    "wi1", "bi1", "wo1", "bo1",                    # intermediate1 / output1
    "g2", "be2",                                   # norm2
    "wk2", "bk2", "wp2", "bp2",                    # cross_attention2 (key + final proj)
    "g3", "be3",                                   # norm3
    "wi2", "bi2", "wo2", "bo2",                    # intermediate2 / output2
    "g4", "be4",                                   # norm4
]
MATMUL_WEIGHTS = frozenset(
    {"wq1", "wk1", "wp1", "wi1", "wo1", "wk2", "wp2", "wi2", "wo2"})


def prepare_params(params, weight_dtype=jnp.bfloat16):
    """Cast the big matmul weights to `weight_dtype` (bf16 halves VMEM/HBM
    traffic and hits the native MXU path); biases / LayerNorm params stay f32."""
    out = {}
    for name in KERNEL_PARAM_ORDER:
        w = params[name]
        out[name] = (w.astype(weight_dtype) if name in MATMUL_WEIGHTS
                     else w.astype(jnp.float32))
    return out


# ---------------------------------------------------------------------------
# kernel: one batch block (BB elements) per grid step
# ---------------------------------------------------------------------------
def _make_kernel(*, block_b, seq_len, hidden, n_kw, num_heads, head_dim, eps):
    BB, S, H, Kw, NH, HD = block_b, seq_len, hidden, n_kw, num_heads, head_dim
    inv_sqrt_hd = 1.0 / math.sqrt(HD)

    def linear(x, w_ref, b_ref):
        w = w_ref[...]
        return jnp.dot(x.astype(w.dtype), w,
                       preferred_element_type=jnp.float32) + b_ref[...]

    def layernorm(x, g_ref, b_ref):
        mu = jnp.mean(x, axis=-1, keepdims=True)
        var = jnp.mean(jnp.square(x - mu), axis=-1, keepdims=True)
        return (x - mu) * lax.rsqrt(var + eps) * g_ref[...] + b_ref[...]

    def gelu(x):  # exact (erf-based) BERT gelu
        return 0.5 * x * (1.0 + lax.erf(x * (1.0 / math.sqrt(2.0))))

    def kernel(seq_ref, kw_ref, *refs):
        (wq1, bq1, wk1, bk1, wp1, bp1,
         g1, be1, wi1, bi1, wo1, bo1, g2, be2,
         wk2, bk2, wp2, bp2,
         g3, be3, wi2, bi2, wo2, bo2, g4, be4,
         out_ref) = refs

        x3 = seq_ref[...]                                   # (BB, S, H) f32
        kw = kw_ref[...]                                    # (Kw, H)    f32

        # ---- cross attention 1: Q = keywords (shared), KV = sequence -------
        q_kw = linear(kw, wq1, bq1)                         # (Kw, H), batch-invariant
        k_all = linear(x3.reshape(BB * S, H), wk1, bk1)     # (BB*S, H); V == K (quirk)
        k3 = k_all.reshape(BB, S, H)

        ctx_heads = []
        for h in range(NH):                                 # head loop; dots batched over BB
            sl = slice(h * HD, (h + 1) * HD)
            qh = jnp.broadcast_to(q_kw[:, sl][None, :, :], (BB, Kw, HD))
            kh = k3[:, :, sl]                               # (BB, S, HD)
            s = jnp.einsum("bqd,bkd->bqk", qh, kh,
                           preferred_element_type=jnp.float32) * inv_sqrt_hd
            # softmax over dim=-2 == the query (keyword) axis, per the torch code
            m = jnp.max(s, axis=1, keepdims=True)
            e = jnp.exp(s - m)
            w = e / jnp.sum(e, axis=1, keepdims=True)
            ctx_heads.append(jnp.einsum("bqk,bkd->bqd", w, kh,
                                        preferred_element_type=jnp.float32))
        ctx1 = jnp.concatenate(ctx_heads, axis=-1)          # (BB, Kw, H)

        kw_b = jnp.broadcast_to(kw[None, :, :], (BB, Kw, H)).reshape(BB * Kw, H)
        enriched = linear(ctx1.reshape(BB * Kw, H), wp1, bp1)
        midway1 = layernorm(enriched + kw_b, g1, be1)
        h1 = linear(gelu(linear(midway1, wi1, bi1)), wo1, bo1)
        enriched_kw = layernorm(midway1 + h1, g2, be2)      # (BB*Kw, H)

        # ---- cross attention 2: Q = CLS token, KV = enriched keywords ------
        # Scores are (1, Kw) per head and the torch softmax runs over dim=-2,
        # the singleton query axis, so every weight is exactly 1.0.  The
        # context is therefore sum_k V_k = sum_k (E_k @ Wk2 + bk2)
        #                              = (sum_k E_k) @ Wk2 + Kw * bk2,
        # and the stage-2 query projection never influences the output.
        cls = x3[:, 0, :]                                   # (BB, H)
        e_sum = jnp.sum(enriched_kw.reshape(BB, Kw, H), axis=1)   # (BB, H)
        wk2v = wk2[...]
        ctx2 = (jnp.dot(e_sum.astype(wk2v.dtype), wk2v,
                        preferred_element_type=jnp.float32)
                + float(Kw) * bk2[...])
        cls_att = linear(ctx2, wp2, bp2)                    # final_projection
        midway2 = layernorm(cls_att + cls, g3, be3)
        h2 = linear(gelu(linear(midway2, wi2, bi2)), wo2, bo2)
        out_ref[...] = layernorm(midway2 + h2, g4, be4)     # (BB, H), lane-dense

    return kernel


# ---------------------------------------------------------------------------
# wrapper
# ---------------------------------------------------------------------------
@functools.partial(jax.jit, static_argnames=("num_heads", "eps", "block_b"))
def contextual_keyword_bert(seq_hidden, keyword_emb, attention_mask, params,
                            *, num_heads, eps=1e-12, block_b=8):
    """seq_hidden: (B, S, H), keyword_emb: (Kw, H) -> (B, 2*H)."""
    del attention_mask  # expanded in the torch module but never applied (dead code)
    B, S, H = seq_hidden.shape
    Kw = keyword_emb.shape[0]
    assert H % num_heads == 0
    head_dim = H // num_heads

    # Batch block: sublane-aligned (multiple of 8) so the (BB, H) output block
    # satisfies the (8, 128) tiling rule and stores are unmasked.
    BB = min(block_b, B)
    BB = ((BB + 7) // 8) * 8
    B_pad = ((B + BB - 1) // BB) * BB

    cls_token = seq_hidden[:, 0, :]                         # (B, H), pre-padding
    if B_pad != B:
        seq_hidden = jnp.pad(seq_hidden, ((0, B_pad - B), (0, 0), (0, 0)))

    weights = [params[name] for name in KERNEL_PARAM_ORDER]
    inter = params["wi1"].shape[1]

    # Batch-invariant operands (keywords, weights) never change block -> a
    # single VMEM buffer suffices; the per-step sequence slab keeps the default
    # double buffering so its DMA overlaps compute.
    def const_spec(shape):
        return pl.BlockSpec(shape, lambda b: (0,) * len(shape),
                            pipeline_mode=pl.Buffered(1))

    in_specs = ([pl.BlockSpec((BB, S, H), lambda b: (b, 0, 0)),
                 const_spec((Kw, H))]
                + [const_spec(w.shape) for w in weights])

    # Size scoped VMEM to the actual resident set (single-buffered weights +
    # double-buffered activations + working set), clamped to be safe on v7x.
    resident = sum(int(w.size) * w.dtype.itemsize for w in weights)
    resident += Kw * H * 4
    resident += 2 * BB * S * H * 4 + 2 * BB * H * 4
    resident += 4 * (2 * BB * S * H + 8 * BB * Kw * H
                     + 2 * BB * Kw * inter + 4 * BB * H + 2 * BB * inter)
    vmem_limit = int(min(max(resident * 2, 32 * 1024 * 1024), 64 * 1024 * 1024))

    cls_enriched = pl.pallas_call(
        _make_kernel(block_b=BB, seq_len=S, hidden=H, n_kw=Kw,
                     num_heads=num_heads, head_dim=head_dim, eps=eps),
        out_shape=jax.ShapeDtypeStruct((B_pad, H), jnp.float32),
        grid=(B_pad // BB,),
        in_specs=in_specs,
        out_specs=pl.BlockSpec((BB, H), lambda b: (b, 0)),
        compiler_params=pltpu.CompilerParams(
            dimension_semantics=("parallel",),
            vmem_limit_bytes=vmem_limit),
    )(seq_hidden, keyword_emb, *weights)

    return jnp.concatenate([cls_token, cls_enriched[:B]], axis=-1)


# ---------------------------------------------------------------------------
# deterministic parameter init + pure-JAX reference for verification
# ---------------------------------------------------------------------------
def init_params(key, hidden_dim, intermediate_size):
    keys = iter(jax.random.split(key, 64))

    def lin(din, dout):
        return (jax.random.normal(next(keys), (din, dout), jnp.float32) * 0.05,
                jax.random.normal(next(keys), (1, dout), jnp.float32) * 0.05)

    def norm():
        return (1.0 + 0.05 * jax.random.normal(next(keys), (1, hidden_dim), jnp.float32),
                0.05 * jax.random.normal(next(keys), (1, hidden_dim), jnp.float32))

    p = {}
    p["wq1"], p["bq1"] = lin(hidden_dim, hidden_dim)
    p["wk1"], p["bk1"] = lin(hidden_dim, hidden_dim)
    p["wp1"], p["bp1"] = lin(hidden_dim, hidden_dim)
    p["g1"], p["be1"] = norm()
    p["wi1"], p["bi1"] = lin(hidden_dim, intermediate_size)
    p["wo1"], p["bo1"] = lin(intermediate_size, hidden_dim)
    p["g2"], p["be2"] = norm()
    p["wq2"], p["bq2"] = lin(hidden_dim, hidden_dim)   # present in the module, cannot affect output
    p["wk2"], p["bk2"] = lin(hidden_dim, hidden_dim)
    p["wp2"], p["bp2"] = lin(hidden_dim, hidden_dim)
    p["g3"], p["be3"] = norm()
    p["wi2"], p["bi2"] = lin(hidden_dim, intermediate_size)
    p["wo2"], p["bo2"] = lin(intermediate_size, hidden_dim)
    p["g4"], p["be4"] = norm()
    return p


def ref_forward(seq, kw_emb, p, num_heads, eps=1e-12):
    B, S, H = seq.shape
    Kw = kw_emb.shape[0]
    hd = H // num_heads

    def lin(x, w, b): return x @ w + b[0]

    def ln(x, g, b):
        mu = x.mean(-1, keepdims=True)
        var = ((x - mu) ** 2).mean(-1, keepdims=True)
        return (x - mu) / jnp.sqrt(var + eps) * g[0] + b[0]

    def gelu(x): return 0.5 * x * (1.0 + lax.erf(x / jnp.sqrt(2.0)))

    def mha(q_in, kv_in, wq, bq, wk, bk, wp, bp):
        Bq, Qs, _ = q_in.shape
        Ss = kv_in.shape[1]
        Q = lin(q_in, wq, bq).reshape(Bq, Qs, num_heads, hd).transpose(0, 2, 1, 3)
        K = lin(kv_in, wk, bk).reshape(Bq, Ss, num_heads, hd).transpose(0, 2, 1, 3)
        V = K
        s = jnp.einsum("bhqd,bhkd->bhqk", Q, K) / jnp.sqrt(jnp.float32(hd))
        w = jax.nn.softmax(s, axis=-2)
        ctx = jnp.einsum("bhqk,bhkd->bhqd", w, V).transpose(0, 2, 1, 3).reshape(Bq, Qs, H)
        return lin(ctx, wp, bp)

    kwb = jnp.broadcast_to(kw_emb, (B, Kw, H))
    enr = mha(kwb, seq, p["wq1"], p["bq1"], p["wk1"], p["bk1"], p["wp1"], p["bp1"])
    m1 = ln(enr + kwb, p["g1"], p["be1"])
    h1 = lin(gelu(lin(m1, p["wi1"], p["bi1"])), p["wo1"], p["bo1"])
    enr_kw = ln(m1 + h1, p["g2"], p["be2"])
    cls = seq[:, 0:1, :]
    ce = mha(cls, enr_kw, p["wq2"], p["bq2"], p["wk2"], p["bk2"], p["wp2"], p["bp2"])
    m2 = ln(ce + cls, p["g3"], p["be3"])
    h2 = lin(gelu(lin(m2, p["wi2"], p["bi2"])), p["wo2"], p["bo2"])
    ce = ln(m2 + h2, p["g4"], p["be4"])
    return jnp.concatenate([cls[:, 0, :], ce[:, 0, :]], axis=-1)


# ---------------------------------------------------------------------------
if __name__ == "__main__":
    B, S, Kw = 5, 8, 6            # batch, sequence length, number of keywords
    H, NH, INTER = 32, 4, 64      # attr_dim, num_attr_heads, intermediate_size
    EPS = 1e-12                   # layer_norm_eps

    root = jax.random.PRNGKey(0)
    k_seq, k_kw, k_par = jax.random.split(root, 3)
    seq_hidden = jax.random.normal(k_seq, (B, S, H), jnp.float32)
    keyword_emb = jax.random.normal(k_kw, (Kw, H), jnp.float32)
    attention_mask = jnp.zeros((B, 1, 1, S), jnp.float32)  # dead code in the torch module
    params = init_params(k_par, H, INTER)

    ref = ref_forward(seq_hidden, keyword_emb, params, NH, EPS)

    # f32 weights: tight numerical check of the kernel math.
    out_f32 = contextual_keyword_bert(
        seq_hidden, keyword_emb, attention_mask,
        prepare_params(params, jnp.float32), num_heads=NH, eps=EPS, block_b=8)
    out_f32 = jax.block_until_ready(out_f32)
    assert out_f32.shape == (B, 2 * H), out_f32.shape
    err32 = float(jnp.max(jnp.abs(out_f32 - ref)))
    assert err32 < 1e-3, f"f32 mismatch: {err32}"

    # bf16 weights (production path): looser tolerance vs the f32 reference.
    out_bf16 = contextual_keyword_bert(
        seq_hidden, keyword_emb, attention_mask,
        prepare_params(params, jnp.bfloat16), num_heads=NH, eps=EPS, block_b=8)
    out_bf16 = jax.block_until_ready(out_bf16)
    err16 = float(jnp.max(jnp.abs(out_bf16 - ref)))
    assert err16 < 1e-1, f"bf16 mismatch: {err16}"

    print("KERNEL_OK")
</pallas_src>

<mosaic_0001>
module attributes {stable_mosaic.version = 11 : i64} {
  func.func @kernel(%arg0: i32, %arg1: memref<8x8x32xf32, #tpu.memory_space<vmem>>, %arg2: memref<6x32xf32, #tpu.memory_space<vmem>>, %arg3: memref<32x32xf32, #tpu.memory_space<vmem>>, %arg4: memref<1x32xf32, #tpu.memory_space<vmem>>, %arg5: memref<32x32xf32, #tpu.memory_space<vmem>>, %arg6: memref<1x32xf32, #tpu.memory_space<vmem>>, %arg7: memref<32x32xf32, #tpu.memory_space<vmem>>, %arg8: memref<1x32xf32, #tpu.memory_space<vmem>>, %arg9: memref<1x32xf32, #tpu.memory_space<vmem>>, %arg10: memref<1x32xf32, #tpu.memory_space<vmem>>, %arg11: memref<32x64xf32, #tpu.memory_space<vmem>>, %arg12: memref<1x64xf32, #tpu.memory_space<vmem>>, %arg13: memref<64x32xf32, #tpu.memory_space<vmem>>, %arg14: memref<1x32xf32, #tpu.memory_space<vmem>>, %arg15: memref<1x32xf32, #tpu.memory_space<vmem>>, %arg16: memref<1x32xf32, #tpu.memory_space<vmem>>, %arg17: memref<32x32xf32, #tpu.memory_space<vmem>>, %arg18: memref<1x32xf32, #tpu.memory_space<vmem>>, %arg19: memref<32x32xf32, #tpu.memory_space<vmem>>, %arg20: memref<1x32xf32, #tpu.memory_space<vmem>>, %arg21: memref<1x32xf32, #tpu.memory_space<vmem>>, %arg22: memref<1x32xf32, #tpu.memory_space<vmem>>, %arg23: memref<32x64xf32, #tpu.memory_space<vmem>>, %arg24: memref<1x64xf32, #tpu.memory_space<vmem>>, %arg25: memref<64x32xf32, #tpu.memory_space<vmem>>, %arg26: memref<1x32xf32, #tpu.memory_space<vmem>>, %arg27: memref<1x32xf32, #tpu.memory_space<vmem>>, %arg28: memref<1x32xf32, #tpu.memory_space<vmem>>, %arg29: memref<8x32xf32, #tpu.memory_space<vmem>>) attributes {dimension_semantics = [#tpu.dimension_semantics<parallel>], iteration_bounds = array<i64: 1>, scalar_prefetch = 0 : i64, scratch_operands = 0 : i64, tpu.core_type = #tpu.core_type<tc>, window_params = [{transform_indices = @transform_0, window_bounds = array<i64: 8, 8, 32>}, {pipeline_mode = #tpu.pipeline_mode<synchronous>, transform_indices = @transform_1, window_bounds = array<i64: 6, 32>}, {pipeline_mode = #tpu.pipeline_mode<synchronous>, transform_indices = @transform_2, window_bounds = array<i64: 32, 32>}, {pipeline_mode = #tpu.pipeline_mode<synchronous>, transform_indices = @transform_3, window_bounds = array<i64: 1, 32>}, {pipeline_mode = #tpu.pipeline_mode<synchronous>, transform_indices = @transform_4, window_bounds = array<i64: 32, 32>}, {pipeline_mode = #tpu.pipeline_mode<synchronous>, transform_indices = @transform_5, window_bounds = array<i64: 1, 32>}, {pipeline_mode = #tpu.pipeline_mode<synchronous>, transform_indices = @transform_6, window_bounds = array<i64: 32, 32>}, {pipeline_mode = #tpu.pipeline_mode<synchronous>, transform_indices = @transform_7, window_bounds = array<i64: 1, 32>}, {pipeline_mode = #tpu.pipeline_mode<synchronous>, transform_indices = @transform_8, window_bounds = array<i64: 1, 32>}, {pipeline_mode = #tpu.pipeline_mode<synchronous>, transform_indices = @transform_9, window_bounds = array<i64: 1, 32>}, {pipeline_mode = #tpu.pipeline_mode<synchronous>, transform_indices = @transform_10, window_bounds = array<i64: 32, 64>}, {pipeline_mode = #tpu.pipeline_mode<synchronous>, transform_indices = @transform_11, window_bounds = array<i64: 1, 64>}, {pipeline_mode = #tpu.pipeline_mode<synchronous>, transform_indices = @transform_12, window_bounds = array<i64: 64, 32>}, {pipeline_mode = #tpu.pipeline_mode<synchronous>, transform_indices = @transform_13, window_bounds = array<i64: 1, 32>}, {pipeline_mode = #tpu.pipeline_mode<synchronous>, transform_indices = @transform_14, window_bounds = array<i64: 1, 32>}, {pipeline_mode = #tpu.pipeline_mode<synchronous>, transform_indices = @transform_15, window_bounds = array<i64: 1, 32>}, {pipeline_mode = #tpu.pipeline_mode<synchronous>, transform_indices = @transform_16, window_bounds = array<i64: 32, 32>}, {pipeline_mode = #tpu.pipeline_mode<synchronous>, transform_indices = @transform_17, window_bounds = array<i64: 1, 32>}, {pipeline_mode = #tpu.pipeline_mode<synchronous>, transform_indices = @transform_18, window_bounds = array<i64: 32, 32>}, {pipeline_mode = #tpu.pipeline_mode<synchronous>, transform_indices = @transform_19, window_bounds = array<i64: 1, 32>}, {pipeline_mode = #tpu.pipeline_mode<synchronous>, transform_indices = @transform_20, window_bounds = array<i64: 1, 32>}, {pipeline_mode = #tpu.pipeline_mode<synchronous>, transform_indices = @transform_21, window_bounds = array<i64: 1, 32>}, {pipeline_mode = #tpu.pipeline_mode<synchronous>, transform_indices = @transform_22, window_bounds = array<i64: 32, 64>}, {pipeline_mode = #tpu.pipeline_mode<synchronous>, transform_indices = @transform_23, window_bounds = array<i64: 1, 64>}, {pipeline_mode = #tpu.pipeline_mode<synchronous>, transform_indices = @transform_24, window_bounds = array<i64: 64, 32>}, {pipeline_mode = #tpu.pipeline_mode<synchronous>, transform_indices = @transform_25, window_bounds = array<i64: 1, 32>}, {pipeline_mode = #tpu.pipeline_mode<synchronous>, transform_indices = @transform_26, window_bounds = array<i64: 1, 32>}, {pipeline_mode = #tpu.pipeline_mode<synchronous>, transform_indices = @transform_27, window_bounds = array<i64: 1, 32>}, {transform_indices = @transform_28, window_bounds = array<i64: 8, 32>}]} {
    %c0 = arith.constant 0 : index
    %c0_0 = arith.constant 0 : index
    %c0_1 = arith.constant 0 : index
    %0 = vector.load %arg1[%c0, %c0_0, %c0_1] : memref<8x8x32xf32, #tpu.memory_space<vmem>>, vector<8x8x32xf32>
    %c0_2 = arith.constant 0 : index
    %c0_3 = arith.constant 0 : index
    %1 = vector.load %arg2[%c0_2, %c0_3] : memref<6x32xf32, #tpu.memory_space<vmem>>, vector<6x32xf32>
    %c0_4 = arith.constant 0 : index
    %c0_5 = arith.constant 0 : index
    %2 = vector.load %arg3[%c0_4, %c0_5] : memref<32x32xf32, #tpu.memory_space<vmem>>, vector<32x32xf32>
    %cst = arith.constant dense<0.000000e+00> : vector<6x32xf32>
    %3 = tpu.matmul %1, %2, %cst {dimension_numbers = #tpu.dot_dimension_numbers<[1], [0], [0], [1], [0, 0, 1, 1], [], []>} : vector<6x32xf32>, vector<32x32xf32>, vector<6x32xf32> -> vector<6x32xf32>
    %c0_6 = arith.constant 0 : index
    %c0_7 = arith.constant 0 : index
    %4 = vector.load %arg4[%c0_6, %c0_7] : memref<1x32xf32, #tpu.memory_space<vmem>>, vector<1x32xf32>
    %5 = vector.broadcast %4 : vector<1x32xf32> to vector<6x32xf32>
    %6 = arith.addf %3, %5 : vector<6x32xf32>
    %7 = vector.shape_cast %0 : vector<8x8x32xf32> to vector<64x32xf32>
    %c0_8 = arith.constant 0 : index
    %c0_9 = arith.constant 0 : index
    %8 = vector.load %arg5[%c0_8, %c0_9] : memref<32x32xf32, #tpu.memory_space<vmem>>, vector<32x32xf32>
    %cst_10 = arith.constant dense<0.000000e+00> : vector<64x32xf32>
    %9 = tpu.matmul %7, %8, %cst_10 {dimension_numbers = #tpu.dot_dimension_numbers<[1], [0], [0], [1], [0, 0, 1, 1], [], []>} : vector<64x32xf32>, vector<32x32xf32>, vector<64x32xf32> -> vector<64x32xf32>
    %c0_11 = arith.constant 0 : index
    %c0_12 = arith.constant 0 : index
    %10 = vector.load %arg6[%c0_11, %c0_12] : memref<1x32xf32, #tpu.memory_space<vmem>>, vector<1x32xf32>
    %11 = vector.broadcast %10 : vector<1x32xf32> to vector<64x32xf32>
    %12 = arith.addf %9, %11 : vector<64x32xf32>
    %13 = vector.shape_cast %12 : vector<64x32xf32> to vector<8x8x32xf32>
    %14 = vector.extract_strided_slice %6 {offsets = [0, 0], sizes = [6, 8], strides = [1, 1]} : vector<6x32xf32> to vector<6x8xf32>
    %15 = vector.shape_cast %14 : vector<6x8xf32> to vector<1x6x8xf32>
    %16 = vector.shape_cast %15 : vector<1x6x8xf32> to vector<1x6x8xf32>
    %17 = vector.broadcast %16 : vector<1x6x8xf32> to vector<8x6x8xf32>
    %18 = vector.extract_strided_slice %13 {offsets = [0, 0, 0], sizes = [8, 8, 8], strides = [1, 1, 1]} : vector<8x8x32xf32> to vector<8x8x8xf32>
    "tpu.trace_start"() <{level = 10 : i32, message = "bqd,bkd->bqk"}> : () -> ()
    %cst_13 = arith.constant dense<0.000000e+00> : vector<8x6x8xf32>
    %19 = tpu.matmul %17, %18, %cst_13 {dimension_numbers = #tpu.dot_dimension_numbers<[2], [2], [1], [1], [0, 0, 0, 1, 1, 1], [0], [0]>} : vector<8x6x8xf32>, vector<8x8x8xf32>, vector<8x6x8xf32> -> vector<8x6x8xf32>
    "tpu.trace_stop"() : () -> ()
    %cst_14 = arith.constant 0.353553385 : f32
    %20 = vector.broadcast %cst_14 : f32 to vector<8x6x8xf32>
    %21 = arith.mulf %19, %20 : vector<8x6x8xf32>
    %cst_15 = arith.constant dense<0xFF800000> : vector<8x8xf32>
    %22 = vector.multi_reduction <maximumf>, %21, %cst_15 [1] : vector<8x6x8xf32> to vector<8x8xf32>
    %23 = vector.shape_cast %22 : vector<8x8xf32> to vector<8x1x8xf32>
    %24 = vector.broadcast %23 : vector<8x1x8xf32> to vector<8x6x8xf32>
    %25 = arith.subf %21, %24 : vector<8x6x8xf32>
    %26 = math.exp %25 : vector<8x6x8xf32>
    %cst_16 = arith.constant dense<0.000000e+00> : vector<8x8xf32>
    %27 = vector.multi_reduction <add>, %26, %cst_16 [1] : vector<8x6x8xf32> to vector<8x8xf32>
    %28 = vector.shape_cast %27 : vector<8x8xf32> to vector<8x1x8xf32>
    %29 = vector.broadcast %28 : vector<8x1x8xf32> to vector<8x6x8xf32>
    %30 = arith.divf %26, %29 : vector<8x6x8xf32>
    "tpu.trace_start"() <{level = 10 : i32, message = "bqk,bkd->bqd"}> : () -> ()
    %cst_17 = arith.constant dense<0.000000e+00> : vector<8x6x8xf32>
    %31 = tpu.matmul %30, %18, %cst_17 {dimension_numbers = #tpu.dot_dimension_numbers<[2], [1], [1], [2], [0, 0, 0, 1, 1, 2], [0], [0]>} : vector<8x6x8xf32>, vector<8x8x8xf32>, vector<8x6x8xf32> -> vector<8x6x8xf32>
    "tpu.trace_stop"() : () -> ()
    %32 = vector.extract_strided_slice %6 {offsets = [0, 8], sizes = [6, 8], strides = [1, 1]} : vector<6x32xf32> to vector<6x8xf32>
    %33 = vector.shape_cast %32 : vector<6x8xf32> to vector<1x6x8xf32>
    %34 = vector.shape_cast %33 : vector<1x6x8xf32> to vector<1x6x8xf32>
    %35 = vector.broadcast %34 : vector<1x6x8xf32> to vector<8x6x8xf32>
    %36 = vector.extract_strided_slice %13 {offsets = [0, 0, 8], sizes = [8, 8, 8], strides = [1, 1, 1]} : vector<8x8x32xf32> to vector<8x8x8xf32>
    "tpu.trace_start"() <{level = 10 : i32, message = "bqd,bkd->bqk"}> : () -> ()
    %cst_18 = arith.constant dense<0.000000e+00> : vector<8x6x8xf32>
    %37 = tpu.matmul %35, %36, %cst_18 {dimension_numbers = #tpu.dot_dimension_numbers<[2], [2], [1], [1], [0, 0, 0, 1, 1, 1], [0], [0]>} : vector<8x6x8xf32>, vector<8x8x8xf32>, vector<8x6x8xf32> -> vector<8x6x8xf32>
    "tpu.trace_stop"() : () -> ()
    %cst_19 = arith.constant 0.353553385 : f32
    %38 = vector.broadcast %cst_19 : f32 to vector<8x6x8xf32>
    %39 = arith.mulf %37, %38 : vector<8x6x8xf32>
    %cst_20 = arith.constant dense<0xFF800000> : vector<8x8xf32>
    %40 = vector.multi_reduction <maximumf>, %39, %cst_20 [1] : vector<8x6x8xf32> to vector<8x8xf32>
    %41 = vector.shape_cast %40 : vector<8x8xf32> to vector<8x1x8xf32>
    %42 = vector.broadcast %41 : vector<8x1x8xf32> to vector<8x6x8xf32>
    %43 = arith.subf %39, %42 : vector<8x6x8xf32>
    %44 = math.exp %43 : vector<8x6x8xf32>
    %cst_21 = arith.constant dense<0.000000e+00> : vector<8x8xf32>
    %45 = vector.multi_reduction <add>, %44, %cst_21 [1] : vector<8x6x8xf32> to vector<8x8xf32>
    %46 = vector.shape_cast %45 : vector<8x8xf32> to vector<8x1x8xf32>
    %47 = vector.broadcast %46 : vector<8x1x8xf32> to vector<8x6x8xf32>
    %48 = arith.divf %44, %47 : vector<8x6x8xf32>
    "tpu.trace_start"() <{level = 10 : i32, message = "bqk,bkd->bqd"}> : () -> ()
    %cst_22 = arith.constant dense<0.000000e+00> : vector<8x6x8xf32>
    %49 = tpu.matmul %48, %36, %cst_22 {dimension_numbers = #tpu.dot_dimension_numbers<[2], [1], [1], [2], [0, 0, 0, 1, 1, 2], [0], [0]>} : vector<8x6x8xf32>, vector<8x8x8xf32>, vector<8x6x8xf32> -> vector<8x6x8xf32>
    "tpu.trace_stop"() : () -> ()
    %50 = vector.extract_strided_slice %6 {offsets = [0, 16], sizes = [6, 8], strides = [1, 1]} : vector<6x32xf32> to vector<6x8xf32>
    %51 = vector.shape_cast %50 : vector<6x8xf32> to vector<1x6x8xf32>
    %52 = vector.shape_cast %51 : vector<1x6x8xf32> to vector<1x6x8xf32>
    %53 = vector.broadcast %52 : vector<1x6x8xf32> to vector<8x6x8xf32>
    %54 = vector.extract_strided_slice %13 {offsets = [0, 0, 16], sizes = [8, 8, 8], strides = [1, 1, 1]} : vector<8x8x32xf32> to vector<8x8x8xf32>
    "tpu.trace_start"() <{level = 10 : i32, message = "bqd,bkd->bqk"}> : () -> ()
    %cst_23 = arith.constant dense<0.000000e+00> : vector<8x6x8xf32>
    %55 = tpu.matmul %53, %54, %cst_23 {dimension_numbers = #tpu.dot_dimension_numbers<[2], [2], [1], [1], [0, 0, 0, 1, 1, 1], [0], [0]>} : vector<8x6x8xf32>, vector<8x8x8xf32>, vector<8x6x8xf32> -> vector<8x6x8xf32>
    "tpu.trace_stop"() : () -> ()
    %cst_24 = arith.constant 0.353553385 : f32
    %56 = vector.broadcast %cst_24 : f32 to vector<8x6x8xf32>
    %57 = arith.mulf %55, %56 : vector<8x6x8xf32>
    %cst_25 = arith.constant dense<0xFF800000> : vector<8x8xf32>
    %58 = vector.multi_reduction <maximumf>, %57, %cst_25 [1] : vector<8x6x8xf32> to vector<8x8xf32>
    %59 = vector.shape_cast %58 : vector<8x8xf32> to vector<8x1x8xf32>
    %60 = vector.broadcast %59 : vector<8x1x8xf32> to vector<8x6x8xf32>
    %61 = arith.subf %57, %60 : vector<8x6x8xf32>
    %62 = math.exp %61 : vector<8x6x8xf32>
    %cst_26 = arith.constant dense<0.000000e+00> : vector<8x8xf32>
    %63 = vector.multi_reduction <add>, %62, %cst_26 [1] : vector<8x6x8xf32> to vector<8x8xf32>
    %64 = vector.shape_cast %63 : vector<8x8xf32> to vector<8x1x8xf32>
    %65 = vector.broadcast %64 : vector<8x1x8xf32> to vector<8x6x8xf32>
    %66 = arith.divf %62, %65 : vector<8x6x8xf32>
    "tpu.trace_start"() <{level = 10 : i32, message = "bqk,bkd->bqd"}> : () -> ()
    %cst_27 = arith.constant dense<0.000000e+00> : vector<8x6x8xf32>
    %67 = tpu.matmul %66, %54, %cst_27 {dimension_numbers = #tpu.dot_dimension_numbers<[2], [1], [1], [2], [0, 0, 0, 1, 1, 2], [0], [0]>} : vector<8x6x8xf32>, vector<8x8x8xf32>, vector<8x6x8xf32> -> vector<8x6x8xf32>
    "tpu.trace_stop"() : () -> ()
    %68 = vector.extract_strided_slice %6 {offsets = [0, 24], sizes = [6, 8], strides = [1, 1]} : vector<6x32xf32> to vector<6x8xf32>
    %69 = vector.shape_cast %68 : vector<6x8xf32> to vector<1x6x8xf32>
    %70 = vector.shape_cast %69 : vector<1x6x8xf32> to vector<1x6x8xf32>
    %71 = vector.broadcast %70 : vector<1x6x8xf32> to vector<8x6x8xf32>
    %72 = vector.extract_strided_slice %13 {offsets = [0, 0, 24], sizes = [8, 8, 8], strides = [1, 1, 1]} : vector<8x8x32xf32> to vector<8x8x8xf32>
    "tpu.trace_start"() <{level = 10 : i32, message = "bqd,bkd->bqk"}> : () -> ()
    %cst_28 = arith.constant dense<0.000000e+00> : vector<8x6x8xf32>
    %73 = tpu.matmul %71, %72, %cst_28 {dimension_numbers = #tpu.dot_dimension_numbers<[2], [2], [1], [1], [0, 0, 0, 1, 1, 1], [0], [0]>} : vector<8x6x8xf32>, vector<8x8x8xf32>, vector<8x6x8xf32> -> vector<8x6x8xf32>
    "tpu.trace_stop"() : () -> ()
    %cst_29 = arith.constant 0.353553385 : f32
    %74 = vector.broadcast %cst_29 : f32 to vector<8x6x8xf32>
    %75 = arith.mulf %73, %74 : vector<8x6x8xf32>
    %cst_30 = arith.constant dense<0xFF800000> : vector<8x8xf32>
    %76 = vector.multi_reduction <maximumf>, %75, %cst_30 [1] : vector<8x6x8xf32> to vector<8x8xf32>
    %77 = vector.shape_cast %76 : vector<8x8xf32> to vector<8x1x8xf32>
    %78 = vector.broadcast %77 : vector<8x1x8xf32> to vector<8x6x8xf32>
    %79 = arith.subf %75, %78 : vector<8x6x8xf32>
    %80 = math.exp %79 : vector<8x6x8xf32>
    %cst_31 = arith.constant dense<0.000000e+00> : vector<8x8xf32>
    %81 = vector.multi_reduction <add>, %80, %cst_31 [1] : vector<8x6x8xf32> to vector<8x8xf32>
    %82 = vector.shape_cast %81 : vector<8x8xf32> to vector<8x1x8xf32>
    %83 = vector.broadcast %82 : vector<8x1x8xf32> to vector<8x6x8xf32>
    %84 = arith.divf %80, %83 : vector<8x6x8xf32>
    "tpu.trace_start"() <{level = 10 : i32, message = "bqk,bkd->bqd"}> : () -> ()
    %cst_32 = arith.constant dense<0.000000e+00> : vector<8x6x8xf32>
    %85 = tpu.matmul %84, %72, %cst_32 {dimension_numbers = #tpu.dot_dimension_numbers<[2], [1], [1], [2], [0, 0, 0, 1, 1, 2], [0], [0]>} : vector<8x6x8xf32>, vector<8x8x8xf32>, vector<8x6x8xf32> -> vector<8x6x8xf32>
    "tpu.trace_stop"() : () -> ()
    %86 = tpu.concatenate %31, %49, %67, %85 in 2 : vector<8x6x8xf32>, vector<8x6x8xf32>, vector<8x6x8xf32>, vector<8x6x8xf32> -> vector<8x6x32xf32>
    %87 = vector.shape_cast %1 : vector<6x32xf32> to vector<1x6x32xf32>
    %88 = vector.shape_cast %87 : vector<1x6x32xf32> to vector<1x6x32xf32>
    %89 = vector.broadcast %88 : vector<1x6x32xf32> to vector<8x6x32xf32>
    %90 = vector.shape_cast %89 : vector<8x6x32xf32> to vector<48x32xf32>
    %91 = vector.shape_cast %86 : vector<8x6x32xf32> to vector<48x32xf32>
    %c0_33 = arith.constant 0 : index
    %c0_34 = arith.constant 0 : index
    %92 = vector.load %arg7[%c0_33, %c0_34] : memref<32x32xf32, #tpu.memory_space<vmem>>, vector<32x32xf32>
    %cst_35 = arith.constant dense<0.000000e+00> : vector<48x32xf32>
    %93 = tpu.matmul %91, %92, %cst_35 {dimension_numbers = #tpu.dot_dimension_numbers<[1], [0], [0], [1], [0, 0, 1, 1], [], []>} : vector<48x32xf32>, vector<32x32xf32>, vector<48x32xf32> -> vector<48x32xf32>
    %c0_36 = arith.constant 0 : index
    %c0_37 = arith.constant 0 : index
    %94 = vector.load %arg8[%c0_36, %c0_37] : memref<1x32xf32, #tpu.memory_space<vmem>>, vector<1x32xf32>
    %95 = vector.broadcast %94 : vector<1x32xf32> to vector<48x32xf32>
    %96 = arith.addf %93, %95 : vector<48x32xf32>
    %97 = arith.addf %96, %90 : vector<48x32xf32>
    %cst_38 = arith.constant dense<0.000000e+00> : vector<48xf32>
    %98 = vector.multi_reduction <add>, %97, %cst_38 [1] : vector<48x32xf32> to vector<48xf32>
    %99 = vector.shape_cast %98 : vector<48xf32> to vector<48x1xf32>
    %cst_39 = arith.constant 3.200000e+01 : f32
    %100 = vector.broadcast %cst_39 : f32 to vector<48x1xf32>
    %101 = arith.divf %99, %100 : vector<48x1xf32>
    %102 = vector.broadcast %101 : vector<48x1xf32> to vector<48x32xf32>
    %103 = arith.subf %97, %102 : vector<48x32xf32>
    %104 = arith.mulf %103, %103 : vector<48x32xf32>
    %cst_40 = arith.constant dense<0.000000e+00> : vector<48xf32>
    %105 = vector.multi_reduction <add>, %104, %cst_40 [1] : vector<48x32xf32> to vector<48xf32>
    %106 = vector.shape_cast %105 : vector<48xf32> to vector<48x1xf32>
    %cst_41 = arith.constant 3.200000e+01 : f32
    %107 = vector.broadcast %cst_41 : f32 to vector<48x1xf32>
    %108 = arith.divf %106, %107 : vector<48x1xf32>
    %109 = vector.broadcast %101 : vector<48x1xf32> to vector<48x32xf32>
    %110 = arith.subf %97, %109 : vector<48x32xf32>
    %cst_42 = arith.constant 9.99999996E-13 : f32
    %111 = vector.broadcast %cst_42 : f32 to vector<48x1xf32>
    %112 = arith.addf %108, %111 : vector<48x1xf32>
    %113 = math.rsqrt %112 : vector<48x1xf32>
    %114 = vector.broadcast %113 : vector<48x1xf32> to vector<48x32xf32>
    %115 = arith.mulf %110, %114 : vector<48x32xf32>
    %c0_43 = arith.constant 0 : index
    %c0_44 = arith.constant 0 : index
    %116 = vector.load %arg9[%c0_43, %c0_44] : memref<1x32xf32, #tpu.memory_space<vmem>>, vector<1x32xf32>
    %117 = vector.broadcast %116 : vector<1x32xf32> to vector<48x32xf32>
    %118 = arith.mulf %115, %117 : vector<48x32xf32>
    %c0_45 = arith.constant 0 : index
    %c0_46 = arith.constant 0 : index
    %119 = vector.load %arg10[%c0_45, %c0_46] : memref<1x32xf32, #tpu.memory_space<vmem>>, vector<1x32xf32>
    %120 = vector.broadcast %119 : vector<1x32xf32> to vector<48x32xf32>
    %121 = arith.addf %118, %120 : vector<48x32xf32>
    %c0_47 = arith.constant 0 : index
    %c0_48 = arith.constant 0 : index
    %122 = vector.load %arg11[%c0_47, %c0_48] : memref<32x64xf32, #tpu.memory_space<vmem>>, vector<32x64xf32>
    %cst_49 = arith.constant dense<0.000000e+00> : vector<48x64xf32>
    %123 = tpu.matmul %121, %122, %cst_49 {dimension_numbers = #tpu.dot_dimension_numbers<[1], [0], [0], [1], [0, 0, 1, 1], [], []>} : vector<48x32xf32>, vector<32x64xf32>, vector<48x64xf32> -> vector<48x64xf32>
    %c0_50 = arith.constant 0 : index
    %c0_51 = arith.constant 0 : index
    %124 = vector.load %arg12[%c0_50, %c0_51] : memref<1x64xf32, #tpu.memory_space<vmem>>, vector<1x64xf32>
    %125 = vector.broadcast %124 : vector<1x64xf32> to vector<48x64xf32>
    %126 = arith.addf %123, %125 : vector<48x64xf32>
    %cst_52 = arith.constant 5.000000e-01 : f32
    %127 = vector.broadcast %cst_52 : f32 to vector<48x64xf32>
    %128 = arith.mulf %127, %126 : vector<48x64xf32>
    %cst_53 = arith.constant 0.707106769 : f32
    %129 = vector.broadcast %cst_53 : f32 to vector<48x64xf32>
    %130 = arith.mulf %126, %129 : vector<48x64xf32>
    %131 = math.erf %130 : vector<48x64xf32>
    %cst_54 = arith.constant 1.000000e+00 : f32
    %132 = vector.broadcast %cst_54 : f32 to vector<48x64xf32>
    %133 = arith.addf %132, %131 : vector<48x64xf32>
    %134 = arith.mulf %128, %133 : vector<48x64xf32>
    %c0_55 = arith.constant 0 : index
    %c0_56 = arith.constant 0 : index
    %135 = vector.load %arg13[%c0_55, %c0_56] : memref<64x32xf32, #tpu.memory_space<vmem>>, vector<64x32xf32>
    %cst_57 = arith.constant dense<0.000000e+00> : vector<48x32xf32>
    %136 = tpu.matmul %134, %135, %cst_57 {dimension_numbers = #tpu.dot_dimension_numbers<[1], [0], [0], [1], [0, 0, 1, 1], [], []>} : vector<48x64xf32>, vector<64x32xf32>, vector<48x32xf32> -> vector<48x32xf32>
    %c0_58 = arith.constant 0 : index
    %c0_59 = arith.constant 0 : index
    %137 = vector.load %arg14[%c0_58, %c0_59] : memref<1x32xf32, #tpu.memory_space<vmem>>, vector<1x32xf32>
    %138 = vector.broadcast %137 : vector<1x32xf32> to vector<48x32xf32>
    %139 = arith.addf %136, %138 : vector<48x32xf32>
    %140 = arith.addf %121, %139 : vector<48x32xf32>
    %cst_60 = arith.constant dense<0.000000e+00> : vector<48xf32>
    %141 = vector.multi_reduction <add>, %140, %cst_60 [1] : vector<48x32xf32> to vector<48xf32>
    %142 = vector.shape_cast %141 : vector<48xf32> to vector<48x1xf32>
    %cst_61 = arith.constant 3.200000e+01 : f32
    %143 = vector.broadcast %cst_61 : f32 to vector<48x1xf32>
    %144 = arith.divf %142, %143 : vector<48x1xf32>
    %145 = vector.broadcast %144 : vector<48x1xf32> to vector<48x32xf32>
    %146 = arith.subf %140, %145 : vector<48x32xf32>
    %147 = arith.mulf %146, %146 : vector<48x32xf32>
    %cst_62 = arith.constant dense<0.000000e+00> : vector<48xf32>
    %148 = vector.multi_reduction <add>, %147, %cst_62 [1] : vector<48x32xf32> to vector<48xf32>
    %149 = vector.shape_cast %148 : vector<48xf32> to vector<48x1xf32>
    %cst_63 = arith.constant 3.200000e+01 : f32
    %150 = vector.broadcast %cst_63 : f32 to vector<48x1xf32>
    %151 = arith.divf %149, %150 : vector<48x1xf32>
    %152 = vector.broadcast %144 : vector<48x1xf32> to vector<48x32xf32>
    %153 = arith.subf %140, %152 : vector<48x32xf32>
    %cst_64 = arith.constant 9.99999996E-13 : f32
    %154 = vector.broadcast %cst_64 : f32 to vector<48x1xf32>
    %155 = arith.addf %151, %154 : vector<48x1xf32>
    %156 = math.rsqrt %155 : vector<48x1xf32>
    %157 = vector.broadcast %156 : vector<48x1xf32> to vector<48x32xf32>
    %158 = arith.mulf %153, %157 : vector<48x32xf32>
    %c0_65 = arith.constant 0 : index
    %c0_66 = arith.constant 0 : index
    %159 = vector.load %arg15[%c0_65, %c0_66] : memref<1x32xf32, #tpu.memory_space<vmem>>, vector<1x32xf32>
    %160 = vector.broadcast %159 : vector<1x32xf32> to vector<48x32xf32>
    %161 = arith.mulf %158, %160 : vector<48x32xf32>
    %c0_67 = arith.constant 0 : index
    %c0_68 = arith.constant 0 : index
    %162 = vector.load %arg16[%c0_67, %c0_68] : memref<1x32xf32, #tpu.memory_space<vmem>>, vector<1x32xf32>
    %163 = vector.broadcast %162 : vector<1x32xf32> to vector<48x32xf32>
    %164 = arith.addf %161, %163 : vector<48x32xf32>
    %165 = vector.extract_strided_slice %0 {offsets = [0, 0, 0], sizes = [8, 1, 32], strides = [1, 1, 1]} : vector<8x8x32xf32> to vector<8x1x32xf32>
    %166 = vector.shape_cast %165 : vector<8x1x32xf32> to vector<8x32xf32>
    %167 = vector.shape_cast %164 : vector<48x32xf32> to vector<8x6x32xf32>
    %cst_69 = arith.constant dense<0.000000e+00> : vector<8x32xf32>
    %168 = vector.multi_reduction <add>, %167, %cst_69 [1] : vector<8x6x32xf32> to vector<8x32xf32>
    %c0_70 = arith.constant 0 : index
    %c0_71 = arith.constant 0 : index
    %169 = vector.load %arg17[%c0_70, %c0_71] : memref<32x32xf32, #tpu.memory_space<vmem>>, vector<32x32xf32>
    %cst_72 = arith.constant dense<0.000000e+00> : vector<8x32xf32>
    %170 = tpu.matmul %168, %169, %cst_72 {dimension_numbers = #tpu.dot_dimension_numbers<[1], [0], [0], [1], [0, 0, 1, 1], [], []>} : vector<8x32xf32>, vector<32x32xf32>, vector<8x32xf32> -> vector<8x32xf32>
    %c0_73 = arith.constant 0 : index
    %c0_74 = arith.constant 0 : index
    %171 = vector.load %arg18[%c0_73, %c0_74] : memref<1x32xf32, #tpu.memory_space<vmem>>, vector<1x32xf32>
    %cst_75 = arith.constant 6.000000e+00 : f32
    %172 = vector.broadcast %cst_75 : f32 to vector<1x32xf32>
    %173 = arith.mulf %172, %171 : vector<1x32xf32>
    %174 = vector.broadcast %173 : vector<1x32xf32> to vector<8x32xf32>
    %175 = arith.addf %170, %174 : vector<8x32xf32>
    %c0_76 = arith.constant 0 : index
    %c0_77 = arith.constant 0 : index
    %176 = vector.load %arg19[%c0_76, %c0_77] : memref<32x32xf32, #tpu.memory_space<vmem>>, vector<32x32xf32>
    %cst_78 = arith.constant dense<0.000000e+00> : vector<8x32xf32>
    %177 = tpu.matmul %175, %176, %cst_78 {dimension_numbers = #tpu.dot_dimension_numbers<[1], [0], [0], [1], [0, 0, 1, 1], [], []>} : vector<8x32xf32>, vector<32x32xf32>, vector<8x32xf32> -> vector<8x32xf32>
    %c0_79 = arith.constant 0 : index
    %c0_80 = arith.constant 0 : index
    %178 = vector.load %arg20[%c0_79, %c0_80] : memref<1x32xf32, #tpu.memory_space<vmem>>, vector<1x32xf32>
    %179 = vector.broadcast %178 : vector<1x32xf32> to vector<8x32xf32>
    %180 = arith.addf %177, %179 : vector<8x32xf32>
    %181 = arith.addf %180, %166 : vector<8x32xf32>
    %cst_81 = arith.constant dense<0.000000e+00> : vector<8xf32>
    %182 = vector.multi_reduction <add>, %181, %cst_81 [1] : vector<8x32xf32> to vector<8xf32>
    %183 = vector.shape_cast %182 : vector<8xf32> to vector<8x1xf32>
    %cst_82 = arith.constant 3.200000e+01 : f32
    %184 = vector.broadcast %cst_82 : f32 to vector<8x1xf32>
    %185 = arith.divf %183, %184 : vector<8x1xf32>
    %186 = vector.broadcast %185 : vector<8x1xf32> to vector<8x32xf32>
    %187 = arith.subf %181, %186 : vector<8x32xf32>
    %188 = arith.mulf %187, %187 : vector<8x32xf32>
    %cst_83 = arith.constant dense<0.000000e+00> : vector<8xf32>
    %189 = vector.multi_reduction <add>, %188, %cst_83 [1] : vector<8x32xf32> to vector<8xf32>
    %190 = vector.shape_cast %189 : vector<8xf32> to vector<8x1xf32>
    %cst_84 = arith.constant 3.200000e+01 : f32
    %191 = vector.broadcast %cst_84 : f32 to vector<8x1xf32>
    %192 = arith.divf %190, %191 : vector<8x1xf32>
    %193 = vector.broadcast %185 : vector<8x1xf32> to vector<8x32xf32>
    %194 = arith.subf %181, %193 : vector<8x32xf32>
    %cst_85 = arith.constant 9.99999996E-13 : f32
    %195 = vector.broadcast %cst_85 : f32 to vector<8x1xf32>
    %196 = arith.addf %192, %195 : vector<8x1xf32>
    %197 = math.rsqrt %196 : vector<8x1xf32>
    %198 = vector.broadcast %197 : vector<8x1xf32> to vector<8x32xf32>
    %199 = arith.mulf %194, %198 : vector<8x32xf32>
    %c0_86 = arith.constant 0 : index
    %c0_87 = arith.constant 0 : index
    %200 = vector.load %arg21[%c0_86, %c0_87] : memref<1x32xf32, #tpu.memory_space<vmem>>, vector<1x32xf32>
    %201 = vector.broadcast %200 : vector<1x32xf32> to vector<8x32xf32>
    %202 = arith.mulf %199, %201 : vector<8x32xf32>
    %c0_88 = arith.constant 0 : index
    %c0_89 = arith.constant 0 : index
    %203 = vector.load %arg22[%c0_88, %c0_89] : memref<1x32xf32, #tpu.memory_space<vmem>>, vector<1x32xf32>
    %204 = vector.broadcast %203 : vector<1x32xf32> to vector<8x32xf32>
    %205 = arith.addf %202, %204 : vector<8x32xf32>
    %c0_90 = arith.constant 0 : index
    %c0_91 = arith.constant 0 : index
    %206 = vector.load %arg23[%c0_90, %c0_91] : memref<32x64xf32, #tpu.memory_space<vmem>>, vector<32x64xf32>
    %cst_92 = arith.constant dense<0.000000e+00> : vector<8x64xf32>
    %207 = tpu.matmul %205, %206, %cst_92 {dimension_numbers = #tpu.dot_dimension_numbers<[1], [0], [0], [1], [0, 0, 1, 1], [], []>} : vector<8x32xf32>, vector<32x64xf32>, vector<8x64xf32> -> vector<8x64xf32>
    %c0_93 = arith.constant 0 : index
    %c0_94 = arith.constant 0 : index
    %208 = vector.load %arg24[%c0_93, %c0_94] : memref<1x64xf32, #tpu.memory_space<vmem>>, vector<1x64xf32>
    %209 = vector.broadcast %208 : vector<1x64xf32> to vector<8x64xf32>
    %210 = arith.addf %207, %209 : vector<8x64xf32>
    %cst_95 = arith.constant 5.000000e-01 : f32
    %211 = vector.broadcast %cst_95 : f32 to vector<8x64xf32>
    %212 = arith.mulf %211, %210 : vector<8x64xf32>
    %cst_96 = arith.constant 0.707106769 : f32
    %213 = vector.broadcast %cst_96 : f32 to vector<8x64xf32>
    %214 = arith.mulf %210, %213 : vector<8x64xf32>
    %215 = math.erf %214 : vector<8x64xf32>
    %cst_97 = arith.constant 1.000000e+00 : f32
    %216 = vector.broadcast %cst_97 : f32 to vector<8x64xf32>
    %217 = arith.addf %216, %215 : vector<8x64xf32>
    %218 = arith.mulf %212, %217 : vector<8x64xf32>
    %c0_98 = arith.constant 0 : index
    %c0_99 = arith.constant 0 : index
    %219 = vector.load %arg25[%c0_98, %c0_99] : memref<64x32xf32, #tpu.memory_space<vmem>>, vector<64x32xf32>
    %cst_100 = arith.constant dense<0.000000e+00> : vector<8x32xf32>
    %220 = tpu.matmul %218, %219, %cst_100 {dimension_numbers = #tpu.dot_dimension_numbers<[1], [0], [0], [1], [0, 0, 1, 1], [], []>} : vector<8x64xf32>, vector<64x32xf32>, vector<8x32xf32> -> vector<8x32xf32>
    %c0_101 = arith.constant 0 : index
    %c0_102 = arith.constant 0 : index
    %221 = vector.load %arg26[%c0_101, %c0_102] : memref<1x32xf32, #tpu.memory_space<vmem>>, vector<1x32xf32>
    %222 = vector.broadcast %221 : vector<1x32xf32> to vector<8x32xf32>
    %223 = arith.addf %220, %222 : vector<8x32xf32>
    %224 = arith.addf %205, %223 : vector<8x32xf32>
    %cst_103 = arith.constant dense<0.000000e+00> : vector<8xf32>
    %225 = vector.multi_reduction <add>, %224, %cst_103 [1] : vector<8x32xf32> to vector<8xf32>
    %226 = vector.shape_cast %225 : vector<8xf32> to vector<8x1xf32>
    %cst_104 = arith.constant 3.200000e+01 : f32
    %227 = vector.broadcast %cst_104 : f32 to vector<8x1xf32>
    %228 = arith.divf %226, %227 : vector<8x1xf32>
    %229 = vector.broadcast %228 : vector<8x1xf32> to vector<8x32xf32>
    %230 = arith.subf %224, %229 : vector<8x32xf32>
    %231 = arith.mulf %230, %230 : vector<8x32xf32>
    %cst_105 = arith.constant dense<0.000000e+00> : vector<8xf32>
    %232 = vector.multi_reduction <add>, %231, %cst_105 [1] : vector<8x32xf32> to vector<8xf32>
    %233 = vector.shape_cast %232 : vector<8xf32> to vector<8x1xf32>
    %cst_106 = arith.constant 3.200000e+01 : f32
    %234 = vector.broadcast %cst_106 : f32 to vector<8x1xf32>
    %235 = arith.divf %233, %234 : vector<8x1xf32>
    %236 = vector.broadcast %228 : vector<8x1xf32> to vector<8x32xf32>
    %237 = arith.subf %224, %236 : vector<8x32xf32>
    %cst_107 = arith.constant 9.99999996E-13 : f32
    %238 = vector.broadcast %cst_107 : f32 to vector<8x1xf32>
    %239 = arith.addf %235, %238 : vector<8x1xf32>
    %240 = math.rsqrt %239 : vector<8x1xf32>
    %241 = vector.broadcast %240 : vector<8x1xf32> to vector<8x32xf32>
    %242 = arith.mulf %237, %241 : vector<8x32xf32>
    %c0_108 = arith.constant 0 : index
    %c0_109 = arith.constant 0 : index
    %243 = vector.load %arg27[%c0_108, %c0_109] : memref<1x32xf32, #tpu.memory_space<vmem>>, vector<1x32xf32>
    %244 = vector.broadcast %243 : vector<1x32xf32> to vector<8x32xf32>
    %245 = arith.mulf %242, %244 : vector<8x32xf32>
    %c0_110 = arith.constant 0 : index
    %c0_111 = arith.constant 0 : index
    %246 = vector.load %arg28[%c0_110, %c0_111] : memref<1x32xf32, #tpu.memory_space<vmem>>, vector<1x32xf32>
    %247 = vector.broadcast %246 : vector<1x32xf32> to vector<8x32xf32>
    %248 = arith.addf %245, %247 : vector<8x32xf32>
    %c0_112 = arith.constant 0 : index
    %c0_113 = arith.constant 0 : index
    %249 = vector.load %arg29[%c0_112, %c0_113] : memref<8x32xf32, #tpu.memory_space<vmem>>, vector<8x32xf32>
    tpu.vector_store %arg29[%c0_112, %c0_113], %248 {strides = array<i32>} : memref<8x32xf32, #tpu.memory_space<vmem>>, vector<8x32xf32>,
    return
  }
  func.func @transform_0(%arg0: i32) -> (i32, i32, i32) {
    %c0_i32 = arith.constant 0 : i32
    %c0_i32_0 = arith.constant 0 : i32
    %c0_i32_1 = arith.constant 0 : i32
    return %arg0, %c0_i32, %c0_i32_0 : i32, i32, i32
  }
  func.func @transform_1(%arg0: i32) -> (i32, i32) {
    %c0_i32 = arith.constant 0 : i32
    %c0_i32_0 = arith.constant 0 : i32
    %c0_i32_1 = arith.constant 0 : i32
    return %c0_i32, %c0_i32_0 : i32, i32
  }
  func.func @transform_2(%arg0: i32) -> (i32, i32) {
    %c0_i32 = arith.constant 0 : i32
    %c0_i32_0 = arith.constant 0 : i32
    %c0_i32_1 = arith.constant 0 : i32
    return %c0_i32, %c0_i32_0 : i32, i32
  }
  func.func @transform_3(%arg0: i32) -> (i32, i32) {
    %c0_i32 = arith.constant 0 : i32
    %c0_i32_0 = arith.constant 0 : i32
    %c0_i32_1 = arith.constant 0 : i32
    return %c0_i32, %c0_i32_0 : i32, i32
  }
  func.func @transform_4(%arg0: i32) -> (i32, i32) {
    %c0_i32 = arith.constant 0 : i32
    %c0_i32_0 = arith.constant 0 : i32
    %c0_i32_1 = arith.constant 0 : i32
    return %c0_i32, %c0_i32_0 : i32, i32
  }
  func.func @transform_5(%arg0: i32) -> (i32, i32) {
    %c0_i32 = arith.constant 0 : i32
    %c0_i32_0 = arith.constant 0 : i32
    %c0_i32_1 = arith.constant 0 : i32
    return %c0_i32, %c0_i32_0 : i32, i32
  }
  func.func @transform_6(%arg0: i32) -> (i32, i32) {
    %c0_i32 = arith.constant 0 : i32
    %c0_i32_0 = arith.constant 0 : i32
    %c0_i32_1 = arith.constant 0 : i32
    return %c0_i32, %c0_i32_0 : i32, i32
  }
  func.func @transform_7(%arg0: i32) -> (i32, i32) {
    %c0_i32 = arith.constant 0 : i32
    %c0_i32_0 = arith.constant 0 : i32
    %c0_i32_1 = arith.constant 0 : i32
    return %c0_i32, %c0_i32_0 : i32, i32
  }
  func.func @transform_8(%arg0: i32) -> (i32, i32) {
    %c0_i32 = arith.constant 0 : i32
    %c0_i32_0 = arith.constant 0 : i32
    %c0_i32_1 = arith.constant 0 : i32
    return %c0_i32, %c0_i32_0 : i32, i32
  }
  func.func @transform_9(%arg0: i32) -> (i32, i32) {
    %c0_i32 = arith.constant 0 : i32
    %c0_i32_0 = arith.constant 0 : i32
    %c0_i32_1 = arith.constant 0 : i32
    return %c0_i32, %c0_i32_0 : i32, i32
  }
  func.func @transform_10(%arg0: i32) -> (i32, i32) {
    %c0_i32 = arith.constant 0 : i32
    %c0_i32_0 = arith.constant 0 : i32
    %c0_i32_1 = arith.constant 0 : i32
    return %c0_i32, %c0_i32_0 : i32, i32
  }
  func.func @transform_11(%arg0: i32) -> (i32, i32) {
    %c0_i32 = arith.constant 0 : i32
    %c0_i32_0 = arith.constant 0 : i32
    %c0_i32_1 = arith.constant 0 : i32
    return %c0_i32, %c0_i32_0 : i32, i32
  }
  func.func @transform_12(%arg0: i32) -> (i32, i32) {
    %c0_i32 = arith.constant 0 : i32
    %c0_i32_0 = arith.constant 0 : i32
    %c0_i32_1 = arith.constant 0 : i32
    return %c0_i32, %c0_i32_0 : i32, i32
  }
  func.func @transform_13(%arg0: i32) -> (i32, i32) {
    %c0_i32 = arith.constant 0 : i32
    %c0_i32_0 = arith.constant 0 : i32
    %c0_i32_1 = arith.constant 0 : i32
    return %c0_i32, %c0_i32_0 : i32, i32
  }
  func.func @transform_14(%arg0: i32) -> (i32, i32) {
    %c0_i32 = arith.constant 0 : i32
    %c0_i32_0 = arith.constant 0 : i32
    %c0_i32_1 = arith.constant 0 : i32
    return %c0_i32, %c0_i32_0 : i32, i32
  }
  func.func @transform_15(%arg0: i32) -> (i32, i32) {
    %c0_i32 = arith.constant 0 : i32
    %c0_i32_0 = arith.constant 0 : i32
    %c0_i32_1 = arith.constant 0 : i32
    return %c0_i32, %c0_i32_0 : i32, i32
  }
  func.func @transform_16(%arg0: i32) -> (i32, i32) {
    %c0_i32 = arith.constant 0 : i32
    %c0_i32_0 = arith.constant 0 : i32
    %c0_i32_1 = arith.constant 0 : i32
    return %c0_i32, %c0_i32_0 : i32, i32
  }
  func.func @transform_17(%arg0: i32) -> (i32, i32) {
    %c0_i32 = arith.constant 0 : i32
    %c0_i32_0 = arith.constant 0 : i32
    %c0_i32_1 = arith.constant 0 : i32
    return %c0_i32, %c0_i32_0 : i32, i32
  }
  func.func @transform_18(%arg0: i32) -> (i32, i32) {
    %c0_i32 = arith.constant 0 : i32
    %c0_i32_0 = arith.constant 0 : i32
    %c0_i32_1 = arith.constant 0 : i32
    return %c0_i32, %c0_i32_0 : i32, i32
  }
  func.func @transform_19(%arg0: i32) -> (i32, i32) {
    %c0_i32 = arith.constant 0 : i32
    %c0_i32_0 = arith.constant 0 : i32
    %c0_i32_1 = arith.constant 0 : i32
    return %c0_i32, %c0_i32_0 : i32, i32
  }
  func.func @transform_20(%arg0: i32) -> (i32, i32) {
    %c0_i32 = arith.constant 0 : i32
    %c0_i32_0 = arith.constant 0 : i32
    %c0_i32_1 = arith.constant 0 : i32
    return %c0_i32, %c0_i32_0 : i32, i32
  }
  func.func @transform_21(%arg0: i32) -> (i32, i32) {
    %c0_i32 = arith.constant 0 : i32
    %c0_i32_0 = arith.constant 0 : i32
    %c0_i32_1 = arith.constant 0 : i32
    return %c0_i32, %c0_i32_0 : i32, i32
  }
  func.func @transform_22(%arg0: i32) -> (i32, i32) {
    %c0_i32 = arith.constant 0 : i32
    %c0_i32_0 = arith.constant 0 : i32
    %c0_i32_1 = arith.constant 0 : i32
    return %c0_i32, %c0_i32_0 : i32, i32
  }
  func.func @transform_23(%arg0: i32) -> (i32, i32) {
    %c0_i32 = arith.constant 0 : i32
    %c0_i32_0 = arith.constant 0 : i32
    %c0_i32_1 = arith.constant 0 : i32
    return %c0_i32, %c0_i32_0 : i32, i32
  }
  func.func @transform_24(%arg0: i32) -> (i32, i32) {
    %c0_i32 = arith.constant 0 : i32
    %c0_i32_0 = arith.constant 0 : i32
    %c0_i32_1 = arith.constant 0 : i32
    return %c0_i32, %c0_i32_0 : i32, i32
  }
  func.func @transform_25(%arg0: i32) -> (i32, i32) {
    %c0_i32 = arith.constant 0 : i32
    %c0_i32_0 = arith.constant 0 : i32
    %c0_i32_1 = arith.constant 0 : i32
    return %c0_i32, %c0_i32_0 : i32, i32
  }
  func.func @transform_26(%arg0: i32) -> (i32, i32) {
    %c0_i32 = arith.constant 0 : i32
    %c0_i32_0 = arith.constant 0 : i32
    %c0_i32_1 = arith.constant 0 : i32
    return %c0_i32, %c0_i32_0 : i32, i32
  }
  func.func @transform_27(%arg0: i32) -> (i32, i32) {
    %c0_i32 = arith.constant 0 : i32
    %c0_i32_0 = arith.constant 0 : i32
    %c0_i32_1 = arith.constant 0 : i32
    return %c0_i32, %c0_i32_0 : i32, i32
  }
  func.func @transform_28(%arg0: i32) -> (i32, i32) {
    %c0_i32 = arith.constant 0 : i32
    %c0_i32_0 = arith.constant 0 : i32
    return %arg0, %c0_i32 : i32, i32
  }
}

</mosaic_0001>

<bundles_post_ra>
// kernel: contextual_keyword_bert.1
= control target key start
LH: loop header
LB: loop body
LE: loop exit
PB: predicated region body
PF: predicated region fallthrough
CT: control target
= control target key end

     0   :  { %s6336_s0 = inlined_call_operand.vmem [shape: f32[8,8,32], index: 0, kind: input, shape index: {}]   ;;  %s6337_s1 = inlined_call_operand.vmem [shape: f32[6,32], index: 1, kind: input, shape index: {}]   ;;  %s6338_s2 = inlined_call_operand.vmem [shape: f32[32,32], index: 2, kind: input, shape index: {}]   ;;  %s6339_s3 = inlined_call_operand.hbm [shape: f32[1,32], index: 3, kind: input, shape index: {}]   ;;  %s6340_s4 = inlined_call_operand.vmem [shape: f32[32,32], index: 4, kind: input, shape index: {}]   ;;  %s6341_s5 = inlined_call_operand.vmem [shape: f32[1,32], index: 5, kind: input, shape index: {}]   ;;  %s6342_s6 = inlined_call_operand.vmem [shape: f32[32,32], index: 6, kind: input, shape index: {}]   ;;  %s6343_s7 = inlined_call_operand.vmem [shape: f32[1,32], index: 7, kind: input, shape index: {}]   ;;  %s6344_s8 = inlined_call_operand.hbm [shape: f32[1,32], index: 8, kind: input, shape index: {}]   ;;  %s6345_s9 = inlined_call_operand.vmem [shape: f32[1,32], index: 9, kind: input, shape index: {}]   ;;  %s6346_s10 = inlined_call_operand.vmem [shape: f32[32,64], index: 10, kind: input, shape index: {}]   ;;  %s6347_s11 = inlined_call_operand.vmem [shape: f32[1,64], index: 11, kind: input, shape index: {}]   ;;  %s6348_s12 = inlined_call_operand.vmem [shape: f32[64,32], index: 12, kind: input, shape index: {}]   ;;  %s6349_s13 = inlined_call_operand.hbm [shape: f32[1,32], index: 13, kind: input, shape index: {}]   ;;  %s6350_s14 = inlined_call_operand.hbm [shape: f32[1,32], index: 14, kind: input, shape index: {}]   ;;  %s6351_s15 = inlined_call_operand.vmem [shape: f32[1,32], index: 15, kind: input, shape index: {}]   ;;  %s6352_s16 = inlined_call_operand.vmem [shape: f32[32,32], index: 16, kind: input, shape index: {}]   ;;  %s6353_s17 = inlined_call_operand.vmem [shape: f32[1,32], index: 17, kind: input, shape index: {}]   ;;  %s6354_s18 = inlined_call_operand.vmem [shape: f32[32,32], index: 18, kind: input, shape index: {}]   ;;  %s6355_s19 = inlined_call_operand.hbm [shape: f32[1,32], index: 19, kind: input, shape index: {}]   ;;  %s6356_s20 = inlined_call_operand.hbm [shape: f32[1,32], index: 20, kind: input, shape index: {}]   ;;  %s6357_s21 = inlined_call_operand.vmem [shape: f32[1,32], index: 21, kind: input, shape index: {}]   ;;  %s6358_s22 = inlined_call_operand.vmem [shape: f32[32,64], index: 22, kind: input, shape index: {}]   ;;  %s6359_s23 = inlined_call_operand.vmem [shape: f32[1,64], index: 23, kind: input, shape index: {}]   ;;  %s6360_s24 = inlined_call_operand.vmem [shape: f32[64,32], index: 24, kind: input, shape index: {}]   ;;  %s6361_s25 = inlined_call_operand.hbm [shape: f32[1,32], index: 25, kind: input, shape index: {}]   ;;  %s6362_s26 = inlined_call_operand.hbm [shape: f32[1,32], index: 26, kind: input, shape index: {}]   ;;  %s6363_s27 = inlined_call_operand.vmem [shape: f32[1,32], index: 27, kind: input, shape index: {}]   ;;  %s6364_s28 = inlined_call_operand.vmem [shape: f32[8,32], index: 28, kind: output, shape index: {}]  }
   0x1   :  { %6372 = sst [smem:[#allocation20_spill]] %s6336_s0 }
   0x2   :  { %6373 = sst [smem:[#allocation21_spill]] %s6337_s1 }
   0x3   :  { %6374 = sst [smem:[#allocation22_spill]] %s6338_s2 }
   0x4   :  { %6375 = sst [smem:[#allocation23_spill]] %s6339_s3 }
   0x5   :  { %6376 = sst [smem:[#allocation24_spill]] %s6340_s4 }
   0x6   :  { %6377 = sst [smem:[#allocation25_spill]] %s6341_s5 }
   0x7   :  { %6378 = sst [smem:[#allocation26_spill]] %s6342_s6 }
   0x8   :  { %6379 = sst [smem:[#allocation27_spill]] %s6343_s7 }
   0x9   :  { %6380 = sst [smem:[#allocation28_spill]] %s6344_s8 }
   0xa   :  { %6381 = sst [smem:[#allocation29_spill]] %s6345_s9 }
   0xb   :  { %6382 = sst [smem:[#allocation30_spill]] %s6346_s10 }
   0xc   :  { %6383 = sst [smem:[#allocation31_spill]] %s6347_s11 }
   0xd   :  { %6384 = sst [smem:[#allocation32_spill]] %s6348_s12 }
   0xe   :  { %6385 = sst [smem:[#allocation33_spill]] %s6364_s28 }
   0xf   :  { %33 = vsyncpa [#allocation3], 0 }
  0x10   :  { %34 = vsyncpa [#allocation5], 0 }
  0x11   :  { %35 = vsyncpa [#allocation8], 0 }
  0x12   :  { %36 = vsyncpa [#allocation11], 0  ;;  %s6386_s9 = sld [smem:[#allocation28_spill]] }
  0x18   :  { %s68_s30 = sshll.u32 %s6386_s9, 4  ;;  %s69_s30 = int_to_ptr.hbm [resolvable:$true] %s68_s30 }
  0x19   :  { %37 = vsyncpa [#allocation14], 0  ;;  %s4855_s3 = smov [#allocation4]   ;;  %s98_s11 = sshll.u32 %s6350_s14, 4  ;;  %s99_s11 = int_to_ptr.hbm [resolvable:$true] %s98_s11 }
  0x1a   :  { %s70_s6 = sshll.u32 %s4855_s3, 4  ;;  %s4856_s29 = smov [#allocation7]   ;;  %s71_s6 = int_to_ptr.vmem [resolvable:$true] %s70_s6 }
  0x1b   :  { %73 = dma.hbm_to_vmem [thread:$0]  %s69_s30, 16, %s71_s6, [#allocation5]  }
  0x1c   :  { %s100_s2 = sshll.u32 %s4856_s29, 4  ;;  %s128_s1 = sshll.u32 %s6356_s20, 4  ;;  %s101_s2 = int_to_ptr.vmem [resolvable:$true] %s100_s2  ;;  %s129_s1 = int_to_ptr.hbm [resolvable:$true] %s128_s1 }
  0x1d   :  { %103 = dma.hbm_to_vmem [thread:$0]  %s99_s11, 16, %s101_s2, [#allocation8]  }
  0x1e   :  { %s6387_s5 = sld [smem:[#allocation23_spill]]  ;;  %s4857_s3 = smov [#allocation10]  }
  0x1f   :  { %s130_s28 = sshll.u32 %s4857_s3, 4  ;;  %s4858_s14 = smov [#allocation2]   ;;  %s131_s28 = int_to_ptr.vmem [resolvable:$true] %s130_s28 }
  0x20   :  { %133 = dma.hbm_to_vmem [thread:$0]  %s129_s1, 16, %s131_s28, [#allocation11]  }
  0x21   :  { %s51_s30 = sshll.u32 %s4858_s14, 4  ;;  %s87_s0 = sshll.u32 %s6349_s13, 4  ;;  %s52_s30 = int_to_ptr.vmem [resolvable:$true] %s51_s30  ;;  %s88_s0 = int_to_ptr.hbm [resolvable:$true] %s87_s0 }
  0x22   :  { %s117_s29 = sshll.u32 %s6355_s19, 4  ;;  %s4859_s2 = smov [#allocation6]   ;;  %s118_s29 = int_to_ptr.hbm [resolvable:$true] %s117_s29 }
  0x23   :  { %s89_s7 = sshll.u32 %s4859_s2, 4  ;;  %s4860_s12 = smov [#allocation9]   ;;  %s90_s7 = int_to_ptr.vmem [resolvable:$true] %s89_s7 }
  0x24   :  { %s49_s9 = sshll.u32 %s6387_s5, 4  ;;  %s119_s28 = sshll.u32 %s4860_s12, 4  ;;  %s50_s9 = int_to_ptr.hbm [resolvable:$true] %s49_s9  ;;  %s120_s28 = int_to_ptr.vmem [resolvable:$true] %s119_s28 }
  0x25   :  { %54 = dma.hbm_to_vmem [thread:$0]  %s50_s9, 16, %s52_s30, [#allocation3]  }
  0x26   :  { %92 = dma.hbm_to_vmem [thread:$0]  %s88_s0, 16, %s90_s7, [#allocation5]  }
  0x27   :  { %s147_s8 = sshll.u32 %s6361_s25, 4  ;;  %s158_s9 = sshll.u32 %s6362_s26, 4  ;;  %s148_s8 = int_to_ptr.hbm [resolvable:$true] %s147_s8  ;;  %s159_s9 = int_to_ptr.hbm [resolvable:$true] %s158_s9 }
  0x28   :  { %122 = dma.hbm_to_vmem [thread:$0]  %s118_s29, 16, %s120_s28, [#allocation8]  }
  0x29   :  { %s4861_s3 = smov [#allocation12]   ;;  %s4862_s14 = smov [#allocation13]  }
  0x2a   :  { %s149_s19 = sshll.u32 %s4861_s3, 4  ;;  %s160_s30 = sshll.u32 %s4862_s14, 4  ;;  %s150_s19 = int_to_ptr.vmem [resolvable:$true] %s149_s19  ;;  %s161_s30 = int_to_ptr.vmem [resolvable:$true] %s160_s30 }
  0x2b   :  { %152 = dma.hbm_to_vmem [thread:$0]  %s148_s8, 16, %s150_s19, [#allocation11]  }
  0x2c   :  { %163 = dma.hbm_to_vmem [thread:$0]  %s159_s9, 16, %s161_s30, [#allocation14]  }
  0x2d   :  { %4845 = dma.done.wait [#allocation3], 16  }
  0x2e   :  { %4846 = vsyncadd [#allocation3], 4294967280 }
  0x2f   :  { %4847 = dma.done.wait [#allocation5], 32  }
  0x30   :  { %4848 = vsyncadd [#allocation5], 4294967264 }
  0x31   :  { %4849 = dma.done.wait [#allocation8], 32  }
  0x32   :  { %4850 = vsyncadd [#allocation8], 4294967264 }
  0x33   :  { %4851 = dma.done.wait [#allocation11], 32  }
  0x34   :  { %4852 = vsyncadd [#allocation11], 4294967264 }
  0x35   :  { %4853 = dma.done.wait [#allocation14], 16  }
  0x36   :  { %4854 = vsyncadd [#allocation14], 4294967280  ;;  %s6388_s6 = sld [smem:[#allocation24_spill]]  ;;  %vm215_vm0 = vcmask 261120   ;;  %vm4045_vm1 = vcmask 1041409   ;;  %vm4047_vm2 = vcmask 1042434  }
  0x37   :  { %s6389_s29 = sld [smem:[#allocation22_spill]]  ;;  %vm4049_vm3 = vcmask 1043459   ;;  %vm4051_vm4 = vcmask 1044484   ;;  %vm4053_vm5 = vcmask 1045509   ;;  %v4463_v28 = vld [vmem:[#allocation2] ss:$0 sm:$0xff] }
  0x38   :  { %s6390_s3 = sld [smem:[#allocation20_spill]]  ;;  %vm312_vm6 = vcmask 64512   ;;  %s4863_s14 = smov 120   ;;  %vm508_vm7 = vcmask 62464  }
  0x39   :  { %s6391_s0 = sld [smem:[#allocation21_spill]]  ;;  %s4864_s30 = smov 112  }
  0x3a   :  { %s6392_s19 = sld [smem:[#allocation25_spill]]  ;;  %s4865_s25 = smov 104  }
  0x3b   :  { %s4866_s26 = smov 8   ;;  %s4867_s10 = smov 16  }
  0x3c   :  { %v242_v0 = vld [vmem:[%s6388_s6 + $0x18] sm:$0xff]  ;;  %v241_v1 = vld [vmem:[%s6388_s6 + $0x10] sm:$0xff]  ;;  %v240_v4 = vld [vmem:[%s6388_s6 + $0x8] sm:$0xff]  ;;  %s6407_s2 = sld [smem:[#allocation26_spill]] }
  0x3d   :  { %v210_v2 = vld [vmem:[%s6389_s29 + $0x18] sm:$0xff]  ;;  %283 = vmatpush.msra.mxu1 %v242_v0  ;;  %v209_v3 = vld [vmem:[%s6389_s29 + $0x10] sm:$0xff]  ;;  %v208_v5 = vld [vmem:[%s6389_s29 + $0x8] sm:$0xff]  ;;  %s6408_s9 = sld [smem:[#allocation27_spill]] }
  0x3e   :  { %231 = vmatpush.msra.mxu0 %v210_v2  ;;  %v239_v6 = vld [vmem:[%s6388_s6] sm:$0xff]  ;;  %v199_v7 = vld [vmem:[%s6390_s3 + $0x8] sm:$0xff]  ;;  %v200_v8 = vld [vmem:[%s6390_s3 + $0x10] sm:$0xff]  ;;  %s4868_s6 = smov 24   ;;  %s6410_s7 = sld [smem:[#allocation29_spill]] }
  0x3f   :  { %284 = vmatpush.msra.mxu1 %v241_v1  ;;  %v207_v9 = vld [vmem:[%s6389_s29] sm:$0xff]  ;;  %v4112_v11 = vrot.slane %v199_v7, 7  ;;  %v4114_v12 = vrot.slane %v200_v8, 6  ;;  %v201_v13 = vld [vmem:[%s6390_s3 + $0x18] sm:$0xff]  ;;  %v203_v22 = vld [vmem:[%s6390_s3 + $0x28] sm:$0xff]  ;;  %s6411_s1 = sld [smem:[#allocation31_spill]] }
  0x40   :  { %232 = vmatpush.msra.mxu0 %v209_v3  ;;  %v206_v10 = vld [vmem:[%s6391_s0] sm:$0x3f]  ;;  %v4116_v15 = vrot.slane %v201_v13, 5  ;;  %v4120_v23 = vrot.slane %v203_v22, 3  ;;  %v204_v25 = vld [vmem:[%s6390_s3 + $0x30] sm:$0xff]  ;;  %v205_v26 = vld [vmem:[%s6390_s3 + $0x38] sm:$0xff] }
  0x41   :  { %285 = vmatpush.msra.mxu1 %v240_v4  ;;  %v198_v14 = vld [vmem:[%s6390_s3] sm:$0xff]  ;;  %s6412_s13 = sld [smem:[#allocation32_spill]] }
  0x42   :  { %233 = vmatpush.msra.mxu0 %v208_v5  ;;  %v4113_v16 = vsel %vm4045_vm1, %v4112_v11, %v198_v14  ;;  %v202_v17 = vld [vmem:[%s6390_s3 + $0x20] sm:$0xff] }
  0x43   :  { %286 = vmatpush.msra.mxu1 %v239_v6  ;;  %v4115_v18 = vsel %vm4047_vm2, %v4114_v12, %v4113_v16  ;;  %v4118_v20 = vrot.slane %v202_v17, 4  ;;  %v4462_v27 = vld [vmem:[%s6392_s19] ss:$0 sm:$0xff] }
  0x44   :  { %234 = vmatpush.msra.mxu0 %v207_v9  ;;  %4314 = vmatmul.msk.f32.vlgmr.msra.gmra.mxu1 %vm215_vm0, %v198_v14  ;;  %v4117_v19 = vsel %vm4049_vm3, %v4116_v15, %v4115_v18 }
  0x45   :  { %4313 = vmatmul.msk.f32.vlgmr.msra.gmra.mxu0 %vm215_vm0, %v206_v10  ;;  %v4119_v21 = vsel %vm4051_vm4, %v4118_v20, %v4117_v19 }
  0x46   :  { %v5092_v24 = vsel %vm4053_vm5, %v4120_v23, %v4119_v21 }
  0x4c   :  { %4315 = vmatmul.msk.f32.gmra.mxu1 %vm215_vm0, %v199_v7 }
  0x54   :  { %4316 = vmatmul.msk.f32.gmra.mxu1 %vm215_vm0, %v200_v8 }
  0x5c   :  { %4317 = vmatmul.msk.f32.gmra.mxu1 %vm215_vm0, %v201_v13 }
  0x64   :  { %4318 = vmatmul.msk.f32.gmra.mxu1 %vm215_vm0, %v202_v17 }
  0x6c   :  { %4319 = vmatmul.msk.f32.gmra.mxu1 %vm215_vm0, %v203_v22 }
  0x74   :  { %4320 = vmatmul.msk.f32.gmra.mxu1 %vm215_vm0, %v204_v25 }
  0x7c   :  { %4321 = vmatmul.msk.f32.gmra.mxu1 %vm215_vm0, %v205_v26 }
  0xc1   :  { %v288_v29 = vpop.f32.mrf.mxu1 }
  0xc2   :  { %v236_v30 = vpop.f32.mrf.mxu0  ;;  %v289_v31 = vadd.f32 %v4462_v27, %v288_v29 }
  0xc3   :  { %v237_v32 = vadd.f32 %v4463_v28, %v236_v30 }
  0xc4   :  { %951 = vrot.lane.b32.xlu1 %v289_v31, %s4863_s14  ;;  %4322 = vmatpush.xpose.msk.msra.mxu2 %vm312_vm6, %v289_v31 }
  0xc7   :  { %4323 = vmatmul.msk.f32.vlgmr.msra.gmra.mxu2 %vm312_vm6, %v237_v32 }
  0xc9   :  { %v291_v33 = vpop.f32.mrf.mxu1 }
  0xca   :  { %v292_v34 = vadd.f32 %v4462_v27, %v291_v33 }
  0xcc   :  { %977 = vrot.lane.b32.xlu0 %v292_v34, %s4863_s14  ;;  %4324 = vmatpush.xpose.msk.msra.mxu3 %vm312_vm6, %v292_v34 }
  0xcf   :  { %4325 = vmatmul.msk.f32.vlgmr.msra.gmra.mxu3 %vm312_vm6, %v237_v32 }
  0xd1   :  { %v294_v35 = vpop.f32.mrf.mxu1 }
  0xd2   :  { %v295_v36 = vadd.f32 %v4462_v27, %v294_v35 }
  0xd4   :  { %1001 = vrot.lane.b32.xlu1 %v295_v36, %s4863_s14  ;;  %4326 = vmatpush.xpose.msk.msrb.mxu2 %vm312_vm6, %v295_v36 }
  0xd5   :  { %949 = vrot.lane.b32.xlu0 %v237_v32, %s4863_s14 }
  0xd7   :  { %4327 = vmatmul.msk.f32.vlgmr.msrb.gmra.mxu2 %vm312_vm6, %v237_v32 }
  0xd9   :  { %v297_v37 = vpop.f32.mrf.mxu1 }
  0xda   :  { %v298_v38 = vadd.f32 %v4462_v27, %v297_v37 }
  0xdc   :  { %4328 = vmatpush.xpose.msk.msrb.mxu3 %vm312_vm6, %v298_v38 }
  0xdf   :  { %4329 = vmatmul.msk.f32.vlgmr.msrb.gmra.mxu3 %vm312_vm6, %v237_v32 }
  0xe1   :  { %v300_v39 = vpop.f32.mrf.mxu1 }
  0xe2   :  { %v301_v40 = vadd.f32 %v4462_v27, %v300_v39 }
  0xe4   :  { %1049 = vrot.lane.b32.xlu2 %v301_v40, %s4863_s14  ;;  %4330 = vmatpush.xpose.msk.msrb.mxu0 %vm312_vm6, %v301_v40 }
  0xe7   :  { %4331 = vmatmul.msk.f32.vlgmr.msrb.gmra.mxu0 %vm312_vm6, %v237_v32 }
  0xe9   :  { %v303_v41 = vpop.f32.mrf.mxu1 }
  0xea   :  { %v304_v42 = vadd.f32 %v4462_v27, %v303_v41 }
  0xec   :  { %1025 = vrot.lane.b32.xlu2 %v298_v38, %s4863_s14  ;;  %1073 = vrot.lane.b32.xlu1 %v304_v42, %s4863_s14 }
  0xed   :  { %4332 = vmatpush.xpose.msk.msra.mxu2 %vm312_vm6, %v304_v42 }
  0xf0   :  { %4333 = vmatmul.msk.f32.vlgmr.msra.gmra.mxu2 %vm312_vm6, %v237_v32 }
  0xf1   :  { %783 = vmatpush.msrb.mxu2 %v289_v31  ;;  %v306_v43 = vpop.f32.mrf.mxu1 }
  0xf2   :  { %v5128_v44 = vadd.f32 %v4462_v27, %v306_v43 }
  0xf3   :  { %852 = vmatpush.msra.mxu2 %v298_v38 }
  0xf4   :  { %1097 = vrot.lane.b32.xlu2 %v5128_v44, %s4863_s14  ;;  %4334 = vmatpush.xpose.msk.msra.mxu3 %vm312_vm6, %v5128_v44 }
  0xf5   :  { %1601 = vrot.lane.b32.xlu1 %v237_v32, %s4864_s30 }
  0xf7   :  { %4335 = vmatmul.msk.f32.vlgmr.msra.gmra.mxu3 %vm312_vm6, %v237_v32 }
  0xf8   :  { %806 = vmatpush.msrb.mxu3 %v292_v34 }
  0xf9   :  { %v309_v45 = vpop.f32.mrf.mxu1 }
  0xfa   :  { %875 = vmatpush.msra.mxu3 %v301_v40  ;;  %v5135_v46 = vadd.f32 %v4462_v27, %v309_v45 }
  0xfc   :  { %4336 = vmatpush.xpose.msk.msra.mxu0 %vm312_vm6, %v5135_v46  ;;  %1701 = vrot.lane.b32.xlu2 %v301_v40, %s4864_s30 }
  0xfd   :  { %1121 = vrot.lane.b32.xlu0 %v5135_v46, %s4863_s14  ;;  %1629 = vrot.lane.b32.xlu1 %v292_v34, %s4864_s30 }
  0xff   :  { %4337 = vmatmul.msk.f32.vlgmr.msra.gmra.mxu0 %vm312_vm6, %v237_v32 }
 0x100   :  { %829 = vmatpush.msrb.mxu0 %v295_v36 }
 0x102   :  { %898 = vmatpush.msra.mxu0 %v304_v42 }
 0x104   :  { %1773 = vrot.lane.b32.xlu2 %v5135_v46, %s4864_s30 }
 0x105   :  { %1603 = vrot.lane.b32.xlu0 %v289_v31, %s4864_s30  ;;  %1725 = vrot.lane.b32.xlu1 %v304_v42, %s4864_s30 }
 0x10c   :  { %1749 = vrot.lane.b32.xlu2 %v5128_v44, %s4864_s30 }
 0x10d   :  { %1677 = vrot.lane.b32.xlu0 %v298_v38, %s4864_s30  ;;  %2253 = vrot.lane.b32.xlu1 %v237_v32, %s4865_s25 }
 0x114   :  { %2281 = vrot.lane.b32.xlu2 %v292_v34, %s4865_s25 }
 0x115   :  { %1653 = vrot.lane.b32.xlu0 %v295_v36, %s4864_s30  ;;  %2305 = vrot.lane.b32.xlu1 %v295_v36, %s4865_s25  ;;  %s6409_s30 = sld [smem:[#allocation30_spill]] }
 0x11c   :  { %2353 = vrot.lane.b32.xlu2 %v301_v40, %s4865_s25 }
 0x11d   :  { %2255 = vrot.lane.b32.xlu0 %v289_v31, %s4865_s25  ;;  %2425 = vrot.lane.b32.xlu1 %v5135_v46, %s4865_s25 }
 0x124   :  { %2401 = vrot.lane.b32.xlu2 %v5128_v44, %s4865_s25 }
 0x125   :  { %2329 = vrot.lane.b32.xlu0 %v298_v38, %s4865_s25 }
 0x12d   :  { %2377 = vrot.lane.b32.xlu0 %v304_v42, %s4865_s25 }
 0x13e   :  { %v5146_v47 = vpop.permute.xlu2 %1049  ;;  %v5156_v9 = vpop.permute.xlu0 %977 }
 0x146   :  { %v5148_v48 = vpop.permute.xlu2 %1025 }
 0x147   :  { %v5163_v27 = vpop.permute.xlu0 %949 }
 0x14a   :  { %v336_v49 = vpop.f32.mrf.mxu2 }
 0x14b   :  { %v500_v50 = vmul.f32 0.35355338, %v336_v49 }
 0x14d   :  { %v509_v51 = vsel %vm508_vm7, %v500_v50, -inf }
 0x14e   :  { %v510_v52 = vrot.slane %v509_v51, 4  ;;  %v5151_v53 = vpop.permute.xlu2 %1097 }
 0x14f   :  { %1572 = vmatpush.msrb.mxu1 %v5151_v53 }
 0x150   :  { %v511_v54 = vmax.f32 %v509_v51, %v510_v52 }
 0x152   :  { %v512_v55 = vrot.slane %v511_v54, 2  ;;  %v359_v56 = vpop.f32.mrf.mxu3 }
 0x153   :  { %v501_v57 = vmul.f32 0.35355338, %v359_v56 }
 0x154   :  { %v513_v58 = vmax.f32 %v511_v54, %v512_v55 }
 0x155   :  { %v516_v59 = vsel %vm508_vm7, %v501_v57, -inf }
 0x156   :  { %v514_v60 = vrot.slane %v513_v58, 1  ;;  %v517_v61 = vrot.slane %v516_v59, 4 }
 0x158   :  { %v515_v62 = vmax.f32 %v513_v58, %v514_v60  ;;  %v518_v63 = vmax.f32 %v516_v59, %v517_v61 }
 0x15a   :  { %v565_v0 = vsub.f32 %v500_v50, %v515_v62  ;;  %v519_v1 = vrot.slane %v518_v63, 2  ;;  %v382_v2 = vpop.f32.mrf.mxu2 }
 0x15b   :  { %v502_v3 = vmul.f32 0.35355338, %v382_v2 }
 0x15c   :  { %v573_v4 = vmul.f32 1.442695, %v565_v0  ;;  %v520_v5 = vmax.f32 %v518_v63, %v519_v1 }
 0x15d   :  { %v523_v6 = vsel %vm508_vm7, %v502_v3, -inf }
 0x15e   :  { %4478 = vpow2.f32 %v573_v4  ;;  %v521_v7 = vrot.slane %v520_v5, 1  ;;  %v524_v8 = vrot.slane %v523_v6, 4 }
 0x160   :  { %v522_v10 = vmax.f32 %v520_v5, %v521_v7  ;;  %v525_v11 = vmax.f32 %v523_v6, %v524_v8 }
 0x162   :  { %v566_v12 = vsub.f32 %v501_v57, %v522_v10  ;;  %v526_v13 = vrot.slane %v525_v11, 2  ;;  %v405_v14 = vpop.f32.mrf.mxu3 }
 0x163   :  { %v503_v15 = vmul.f32 0.35355338, %v405_v14 }
 0x164   :  { %v5158_v16 = vpop.eup %4478  ;;  %v575_v17 = vmul.f32 1.442695, %v566_v12  ;;  %v527_v18 = vmax.f32 %v525_v11, %v526_v13  ;;  %v428_v19 = vpop.f32.mrf.mxu0 }
 0x165   :  { %v589_v20 = vsel %vm508_vm7, %v5158_v16, 0.0  ;;  %v530_v21 = vsel %vm508_vm7, %v503_v15, -inf  ;;  %v504_v22 = vmul.f32 0.35355338, %v428_v19 }
 0x166   :  { %v590_v23 = vrot.slane %v589_v20, 4  ;;  %4480 = vpow2.f32 %v575_v17  ;;  %v528_v25 = vrot.slane %v527_v18, 1  ;;  %v531_v26 = vrot.slane %v530_v21, 4 }
 0x167   :  { %v537_v28 = vsel %vm508_vm7, %v504_v22, -inf }
 0x168   :  { %v591_v29 = vadd.f32 %v590_v23, %v589_v20  ;;  %v529_v30 = vmax.f32 %v527_v18, %v528_v25  ;;  %v532_v31 = vmax.f32 %v530_v21, %v531_v26  ;;  %v538_v32 = vrot.slane %v537_v28, 4 }
 0x16a   :  { %v592_v33 = vrot.slane %v591_v29, 2  ;;  %v567_v34 = vsub.f32 %v502_v3, %v529_v30  ;;  %v533_v35 = vrot.slane %v532_v31, 2  ;;  %v539_v36 = vmax.f32 %v537_v28, %v538_v32 }
 0x16c   :  { %v5166_v37 = vpop.eup %4480  ;;  %v593_v38 = vadd.f32 %v592_v33, %v591_v29  ;;  %v577_v39 = vmul.f32 1.442695, %v567_v34  ;;  %v534_v40 = vmax.f32 %v532_v31, %v533_v35  ;;  %v540_v41 = vrot.slane %v539_v36, 2 }
 0x16d   :  { %v596_v42 = vsel %vm508_vm7, %v5166_v37, 0.0 }
 0x16e   :  { %v594_v43 = vrot.slane %v593_v38, 1  ;;  %v597_v45 = vrot.slane %v596_v42, 4  ;;  %4482 = vpow2.f32 %v577_v39  ;;  %v535_v49 = vrot.slane %v534_v40, 1 }
 0x16f   :  { %v541_v50 = vmax.f32 %v539_v36, %v540_v41  ;;  %v5170_v51 = vpop.permute.xlu0 %1121 }
 0x170   :  { %v595_v52 = vadd.f32 %v594_v43, %v593_v38  ;;  %v598_v54 = vadd.f32 %v597_v45, %v596_v42  ;;  %v536_v55 = vmax.f32 %v534_v40, %v535_v49 }
 0x171   :  { %v542_v56 = vrot.slane %v541_v50, 1 }
 0x172   :  { %4484 = vrcp.f32 %v595_v52  ;;  %v599_v57 = vrot.slane %v598_v54, 2  ;;  %v568_v58 = vsub.f32 %v503_v15, %v536_v55  ;;  %v654_v13 = vand.u32 2147483647, %v595_v52 }
 0x173   :  { %v543_v59 = vmax.f32 %v541_v50, %v542_v56  ;;  %v451_v60 = vpop.f32.mrf.mxu2  ;;  %v656_v15 = vand.u32 2147483648, %v595_v52  ;;  %vm650_vm8 = vweird.f32 %v595_v52 }
 0x174   :  { %v5172_v61 = vpop.eup %4482  ;;  %v5174_v62 = vmul.f32 0.35355338, %v451_v60  ;;  %v600_v63 = vadd.f32 %v599_v57, %v598_v54  ;;  %v579_v1 = vmul.f32 1.442695, %v568_v58  ;;  %vm5189_vm10 = vcmp.eq.f32.partialorder %v654_v13, 8.507059e+37 }
 0x175   :  { %v603_v0 = vsel %vm508_vm7, %v5172_v61, 0.0  ;;  %v569_v2 = vsub.f32 %v504_v22, %v543_v59  ;;  %v657_v32 = vor.u32 1.1754944e-38, %v656_v15 }
 0x176   :  { %v604_v3 = vrot.slane %v603_v0, 4  ;;  %v544_v4 = vsel %vm508_vm7, %v5174_v62, -inf  ;;  %v601_v5 = vrot.slane %v600_v63, 1  ;;  %4486 = vpow2.f32 %v579_v1 }
 0x177   :  { %v581_v6 = vmul.f32 1.442695, %v569_v2  ;;  %v545_v7 = vrot.slane %v544_v4, 4  ;;  %v5180_v8 = vpop.permute.xlu0 %1603 }
 0x178   :  { %v4485_v10 = vpop.eup %4484  ;;  %v605_v11 = vadd.f32 %v604_v3, %v603_v0  ;;  %v5182_v14 = vadd.f32 %v601_v5, %v600_v63 }
 0x179   :  { %v646_v12 = vmul.f32 %v4485_v10, %v595_v52  ;;  %4488 = vpow2.f32 %v581_v6  ;;  %v546_v18 = vmax.f32 %v544_v4, %v545_v7  ;;  %vm651_vm9 = vweird.f32 %v4485_v10 }
 0x17a   :  { %v606_v17 = vrot.slane %v605_v11, 2  ;;  %v474_v19 = vpop.f32.mrf.mxu3  ;;  %4490 = vrcp.f32 %v5182_v14  ;;  %vm5195_vm11 = vmor %vm650_vm8, %vm651_vm9  ;;  %v669_v63 = vand.u32 2147483647, %v5182_v14  ;;  %v671_v4 = vand.u32 2147483648, %v5182_v14 }
 0x17b   :  { %v647_v20 = vsub.f32 1.0, %v646_v12  ;;  %v547_v22 = vrot.slane %v546_v18, 2  ;;  %v5185_v23 = vmul.f32 0.35355338, %v474_v19  ;;  %vm665_vm13 = vweird.f32 %v5182_v14 }
 0x17c   :  { %v607_v21 = vadd.f32 %v606_v17, %v605_v11  ;;  %v497_v25 = vpop.f32.mrf.mxu0  ;;  %v5187_v26 = vpop.eup %4486  ;;  %vm5226_vm14 = vcmp.eq.f32.partialorder %v669_v63, 8.507059e+37 }
 0x17d   :  { %v648_v28 = vmul.f32 %v4485_v10, %v647_v20  ;;  %v5193_v30 = vmul.f32 0.35355338, %v497_v25  ;;  %v610_v34 = vsel %vm508_vm7, %v5187_v26, 0.0  ;;  %v548_v35 = vmax.f32 %v546_v18, %v547_v22 }
 0x17e   :  { %v608_v33 = vrot.slane %v607_v21, 1  ;;  %v611_v39 = vrot.slane %v610_v34, 4  ;;  %v551_v40 = vsel %vm508_vm7, %v5185_v23, -inf }
 0x17f   :  { %v5201_v36 = vpop.eup %4488  ;;  %v649_v38 = vadd.f32 %v4485_v10, %v648_v28  ;;  %v558_v41 = vsel %vm508_vm7, %v5193_v30, -inf  ;;  %v5207_v42 = vpop.permute.xlu0 %1677  ;;  %v549_v49 = vrot.slane %v548_v35, 1  ;;  %v552_v50 = vrot.slane %v551_v40, 4 }
 0x180   :  { %v5209_v43 = vadd.f32 %v608_v33, %v607_v21  ;;  %v617_v45 = vsel %vm508_vm7, %v5201_v36, 0.0  ;;  %v4491_v52 = vpop.eup %4490  ;;  %v612_v55 = vadd.f32 %v611_v39, %v610_v34  ;;  %v559_v57 = vrot.slane %v558_v41, 4 }
 0x181   :  { %v653_v54 = vsel %vm5195_vm11, %v4485_v10, %v649_v38  ;;  %v618_v56 = vrot.slane %v617_v45, 4  ;;  %v661_v59 = vmul.f32 %v4491_v52, %v5182_v14  ;;  %v550_v3 = vmax.f32 %v548_v35, %v549_v49 }
 0x182   :  { %v658_v58 = vsel %vm5189_vm10, %v657_v32, %v653_v54  ;;  %4492 = vrcp.f32 %v5209_v43  ;;  %v613_v1 = vrot.slane %v612_v55, 2  ;;  %vm666_vm12 = vweird.f32 %v4491_v52 }
 0x183   :  { %v659_v60 = vmul.f32 %v5158_v16, %v658_v58  ;;  %v662_v0 = vsub.f32 1.0, %v661_v59  ;;  %v619_v2 = vadd.f32 %v618_v56, %v617_v45  ;;  %v553_v5 = vmax.f32 %v551_v40, %v552_v50  ;;  %vm667_vm15 = vmor %vm665_vm13, %vm666_vm12 }
 0x184   :  { %v560_v6 = vmax.f32 %v558_v41, %v559_v57  ;;  %v614_v10 = vadd.f32 %v613_v1, %v612_v55  ;;  %v570_v12 = vsub.f32 %v5174_v62, %v550_v3  ;;  %v684_v39 = vand.u32 2147483647, %v5209_v43 }
 0x185   :  { %4338 = vmatmul.msk.f32.vlgmr.msrb.gmra.mxu2 %vm312_vm6, %v659_v60  ;;  %v663_v7 = vmul.f32 %v4491_v52, %v662_v0  ;;  %v620_v11 = vrot.slane %v619_v2, 2  ;;  %v554_v13 = vrot.slane %v553_v5, 2  ;;  %v686_v40 = vand.u32 2147483648, %v5209_v43 }
 0x186   :  { %921 = vmatpush.msrb.mxu2 %v5128_v44  ;;  %v561_v15 = vrot.slane %v560_v6, 2  ;;  %v615_v20 = vrot.slane %v614_v10, 1  ;;  %v583_v22 = vmul.f32 1.442695, %v570_v12  ;;  %v672_v44 = vor.u32 1.1754944e-38, %v671_v4  ;;  %v5258_v4 = vpop.permute.xlu1 %951 }
 0x187   :  { %v5230_v17 = vpop.permute.xlu0 %1653  ;;  %v664_v19 = vadd.f32 %v4491_v52, %v663_v7  ;;  %v621_v21 = vadd.f32 %v620_v11, %v619_v2  ;;  %v555_v14 = vmax.f32 %v553_v5, %v554_v13  ;;  %vm680_vm9 = vweird.f32 %v5209_v43 }
 0x188   :  { %v4493_v18 = vpop.eup %4492  ;;  %4374 = vmatpush.xpose.msk.msra.mxu1 %vm312_vm6, %v5230_v17  ;;  %v562_v25 = vmax.f32 %v560_v6, %v561_v15  ;;  %v5236_v29 = vadd.f32 %v615_v20, %v614_v10  ;;  %4494 = vpow2.f32 %v583_v22  ;;  %v687_v54 = vor.u32 1.1754944e-38, %v686_v40 }
 0x189   :  { %v676_v62 = vmul.f32 %v4493_v18, %v5209_v43  ;;  %v668_v28 = vsel %vm667_vm15, %v4491_v52, %v664_v19  ;;  %v622_v31 = vrot.slane %v621_v21, 1  ;;  %v556_v34 = vrot.slane %v555_v14, 1 }
 0x18a   :  { %v673_v32 = vsel %vm5226_vm14, %v672_v44, %v668_v28  ;;  %v563_v35 = vrot.slane %v562_v25, 1  ;;  %4496 = vrcp.f32 %v5236_v29  ;;  %vm681_vm8 = vweird.f32 %v4493_v18 }
 0x18b   :  { %v677_v33 = vsub.f32 1.0, %v676_v62  ;;  %v674_v38 = vmul.f32 %v5166_v37, %v673_v32  ;;  %v5244_v45 = vadd.f32 %v622_v31, %v621_v21  ;;  %v557_v49 = vmax.f32 %v555_v14, %v556_v34  ;;  %vm682_vm10 = vmor %vm680_vm9, %vm681_vm8 }
 0x18c   :  { %v564_v50 = vmax.f32 %v562_v25, %v563_v35  ;;  %vm685_vm11 = vcmp.eq.f32.partialorder %v684_v39, 8.507059e+37  ;;  %v699_v7 = vand.u32 2147483647, %v5236_v29  ;;  %vm695_vm13 = vweird.f32 %v5236_v29 }
 0x18d   :  { %v678_v41 = vmul.f32 %v4493_v18, %v677_v33  ;;  %4339 = vmatmul.msk.f32.vlgmr.msrb.gmra.mxu3 %vm312_vm6, %v674_v38  ;;  %4498 = vrcp.f32 %v5244_v45  ;;  %v571_v55 = vsub.f32 %v5185_v23, %v557_v49  ;;  %v716_v13 = vand.u32 2147483648, %v5244_v45 }
 0x18e   :  { %944 = vmatpush.msrb.mxu3 %v5135_v46  ;;  %v5250_v37 = vpop.eup %4494  ;;  %v572_v56 = vsub.f32 %v5193_v30, %v564_v50  ;;  %v701_v30 = vand.u32 2147483648, %v5236_v29  ;;  %vm700_vm8 = vcmp.eq.f32.partialorder %v699_v7, 8.507059e+37  ;;  %vm710_vm9 = vweird.f32 %v5244_v45 }
 0x18f   :  { %v679_v52 = vadd.f32 %v4493_v18, %v678_v41  ;;  %v624_v58 = vsel %vm508_vm7, %v5250_v37, 0.0  ;;  %v585_v0 = vmul.f32 1.442695, %v571_v55  ;;  %v5283_v41 = vpop.permute.xlu1 %1001 }
 0x190   :  { %v4497_v59 = vpop.eup %4496  ;;  %v625_v43 = vrot.slane %v624_v58, 4  ;;  %v587_v2 = vmul.f32 1.442695, %v572_v56  ;;  %v702_v16 = vor.u32 1.1754944e-38, %v701_v30 }
 0x191   :  { %v683_v57 = vsel %vm682_vm10, %v4493_v18, %v679_v52  ;;  %v691_v46 = vmul.f32 %v4497_v59, %v5236_v29  ;;  %4500 = vpow2.f32 %v585_v0  ;;  %vm696_vm12 = vweird.f32 %v4497_v59 }
 0x192   :  { %v688_v60 = vsel %vm685_vm11, %v687_v54, %v683_v57  ;;  %v626_v1 = vadd.f32 %v625_v43, %v624_v58  ;;  %4502 = vpow2.f32 %v587_v2  ;;  %vm697_vm14 = vmor %vm695_vm13, %vm696_vm12  ;;  %v714_v18 = vand.u32 2147483647, %v5244_v45 }
 0x193   :  { %v689_v63 = vmul.f32 %v5172_v61, %v688_v60  ;;  %v4499_v3 = vpop.eup %4498  ;;  %v692_v23 = vsub.f32 1.0, %v691_v46  ;;  %v717_v29 = vor.u32 1.1754944e-38, %v716_v13 }
 0x194   :  { %v706_v5 = vmul.f32 %v4499_v3, %v5244_v45  ;;  %v627_v6 = vrot.slane %v626_v1, 2  ;;  %vm711_vm15 = vweird.f32 %v4499_v3  ;;  %vm715_vm11 = vcmp.eq.f32.partialorder %v714_v18, 8.507059e+37 }
 0x195   :  { %4340 = vmatmul.msk.f32.vlgmr.msrb.gmra.mxu0 %vm312_vm6, %v689_v63  ;;  %v693_v61 = vmul.f32 %v4497_v59, %v692_v23  ;;  %vm712_vm10 = vmor %vm710_vm9, %vm711_vm15 }
 0x196   :  { %4346 = vmatpush.xpose.msk.msrb.mxu0 %vm312_vm6, %v5258_v4  ;;  %v707_v10 = vsub.f32 1.0, %v706_v5  ;;  %v628_v11 = vadd.f32 %v627_v6, %v626_v1 }
 0x197   :  { %v694_v12 = vadd.f32 %v4497_v59, %v693_v61  ;;  %v5269_v20 = vpop.eup %4500 }
 0x198   :  { %v708_v15 = vmul.f32 %v4499_v3, %v707_v10  ;;  %v629_v19 = vrot.slane %v628_v11, 1  ;;  %v5272_v22 = vpop.eup %4502  ;;  %v631_v25 = vsel %vm508_vm7, %v5269_v20, 0.0 }
 0x199   :  { %v698_v21 = vsel %vm697_vm14, %v4497_v59, %v694_v12  ;;  %v632_v31 = vrot.slane %v631_v25, 4  ;;  %v638_v32 = vsel %vm508_vm7, %v5272_v22, 0.0 }
 0x19a   :  { %v703_v44 = vsel %vm700_vm8, %v702_v16, %v698_v21  ;;  %v709_v62 = vadd.f32 %v4499_v3, %v708_v15  ;;  %v630_v14 = vadd.f32 %v629_v19, %v628_v11  ;;  %v639_v38 = vrot.slane %v638_v32, 4 }
 0x19b   :  { %v704_v28 = vmul.f32 %v5187_v26, %v703_v44  ;;  %v633_v35 = vadd.f32 %v632_v31, %v631_v25 }
 0x19c   :  { %v713_v33 = vsel %vm712_vm10, %v4499_v3, %v709_v62  ;;  %4504 = vrcp.f32 %v630_v14  ;;  %v640_v40 = vadd.f32 %v639_v38, %v638_v32  ;;  %v731_v58 = vand.u32 2147483648, %v630_v14 }
 0x19d   :  { %v718_v34 = vsel %vm715_vm11, %v717_v29, %v713_v33  ;;  %4341 = vmatmul.msk.f32.vlgmr.msra.gmra.mxu2 %vm312_vm6, %v704_v28  ;;  %v634_v26 = vrot.slane %v633_v35, 2  ;;  %v729_v60 = vand.u32 2147483647, %v630_v14  ;;  %vm725_vm13 = vweird.f32 %v630_v14  ;;  %v1074_v29 = vpop.permute.xlu1 %1073 }
 0x19e   :  { %v719_v39 = vmul.f32 %v5201_v36, %v718_v34  ;;  %4348 = vmatpush.xpose.msk.msra.mxu2 %vm312_vm6, %v5156_v9  ;;  %v641_v49 = vrot.slane %v640_v40, 2  ;;  %v732_v46 = vor.u32 1.1754944e-38, %v731_v58 }
 0x19f   :  { %v635_v45 = vadd.f32 %v634_v26, %v633_v35  ;;  %vm730_vm15 = vcmp.eq.f32.partialorder %v729_v60, 8.507059e+37 }
 0x1a0   :  { %4342 = vmatmul.msk.f32.vlgmr.msra.gmra.mxu3 %vm312_vm6, %v719_v39  ;;  %v642_v55 = vadd.f32 %v641_v49, %v640_v40 }
 0x1a1   :  { %4350 = vmatpush.xpose.msk.msra.mxu3 %vm312_vm6, %v5283_v41  ;;  %v636_v54 = vrot.slane %v635_v45, 1 }
 0x1a2   :  { %v4505_v50 = vpop.eup %4504  ;;  %v643_v57 = vrot.slane %v642_v55, 1 }
 0x1a3   :  { %v721_v52 = vmul.f32 %v4505_v50, %v630_v14  ;;  %v637_v36 = vadd.f32 %v636_v54, %v635_v45  ;;  %vm726_vm12 = vweird.f32 %v4505_v50 }
 0x1a4   :  { %v644_v43 = vadd.f32 %v643_v57, %v642_v55  ;;  %vm727_vm14 = vmor %vm725_vm13, %vm726_vm12 }
 0x1a5   :  { %v722_v56 = vsub.f32 1.0, %v721_v52  ;;  %4506 = vrcp.f32 %v637_v36  ;;  %v746_v6 = vand.u32 2147483648, %v637_v36  ;;  %v744_v10 = vand.u32 2147483647, %v637_v36 }
 0x1a6   :  { %4508 = vrcp.f32 %v644_v43  ;;  %vm740_vm9 = vweird.f32 %v637_v36  ;;  %v761_v16 = vand.u32 2147483648, %v644_v43  ;;  %v759_v15 = vand.u32 2147483647, %v644_v43 }
 0x1a7   :  { %v723_v59 = vmul.f32 %v4505_v50, %v722_v56  ;;  %v747_v13 = vor.u32 1.1754944e-38, %v746_v6  ;;  %vm745_vm12 = vcmp.eq.f32.partialorder %v744_v10, 8.507059e+37  ;;  %vm755_vm13 = vweird.f32 %v644_v43 }
 0x1a8   :  { %v762_v62 = vor.u32 1.1754944e-38, %v761_v16 }
 0x1a9   :  { %v724_v63 = vadd.f32 %v4505_v50, %v723_v59 }
 0x1ab   :  { %v728_v0 = vsel %vm727_vm14, %v4505_v50, %v724_v63  ;;  %v4507_v2 = vpop.eup %4506 }
 0x1ac   :  { %v733_v1 = vsel %vm730_vm15, %v732_v46, %v728_v0  ;;  %v736_v23 = vmul.f32 %v4507_v2, %v637_v36  ;;  %v4509_v30 = vpop.eup %4508  ;;  %vm741_vm8 = vweird.f32 %v4507_v2  ;;  %vm760_vm15 = vcmp.eq.f32.partialorder %v759_v15, 8.507059e+37 }
 0x1ad   :  { %v734_v3 = vmul.f32 %v5250_v37, %v733_v1  ;;  %v751_v61 = vmul.f32 %v4509_v30, %v644_v43  ;;  %vm742_vm10 = vmor %vm740_vm9, %vm741_vm8  ;;  %vm756_vm11 = vweird.f32 %v4509_v30 }
 0x1ae   :  { %v737_v5 = vsub.f32 1.0, %v736_v23  ;;  %vm757_vm14 = vmor %vm755_vm13, %vm756_vm11 }
 0x1af   :  { %4343 = vmatmul.msk.f32.vlgmr.msra.gmra.mxu0 %vm312_vm6, %v734_v3  ;;  %v752_v11 = vsub.f32 1.0, %v751_v61 }
 0x1b0   :  { %4352 = vmatpush.xpose.msk.msra.mxu0 %vm312_vm6, %v5148_v48  ;;  %v738_v7 = vmul.f32 %v4507_v2, %v737_v5 }
 0x1b1   :  { %v753_v37 = vmul.f32 %v4509_v30, %v752_v11 }
 0x1b2   :  { %v739_v12 = vadd.f32 %v4507_v2, %v738_v7 }
 0x1b3   :  { %v754_v21 = vadd.f32 %v4509_v30, %v753_v37 }
 0x1b4   :  { %v743_v18 = vsel %vm742_vm10, %v4507_v2, %v739_v12 }
 0x1b5   :  { %v748_v19 = vsel %vm745_vm12, %v747_v13, %v743_v18  ;;  %v758_v14 = vsel %vm757_vm14, %v4509_v30, %v754_v21 }
 0x1b6   :  { %v749_v44 = vmul.f32 %v5269_v20, %v748_v19  ;;  %v763_v25 = vsel %vm760_vm15, %v762_v62, %v758_v14 }
 0x1b7   :  { %4347 = vmatmul.msk.f32.vlgmr.msrb.gmra.mxu0 %vm312_vm6, %v5163_v27  ;;  %v764_v28 = vmul.f32 %v5272_v22, %v763_v25 }
 0x1b8   :  { %4358 = vmatpush.xpose.msk.msrb.mxu0 %vm312_vm6, %v5151_v53  ;;  %4344 = vmatmul.msk.f32.vlgmr.msrb.gmra.mxu2 %vm312_vm6, %v749_v44 }
 0x1b9   :  { %4354 = vmatpush.xpose.msk.msrb.mxu2 %vm312_vm6, %v5146_v47  ;;  %4345 = vmatmul.msk.f32.vlgmr.msrb.gmra.mxu3 %vm312_vm6, %v764_v28 }
 0x1ba   :  { %4356 = vmatpush.xpose.msk.msrb.mxu3 %vm312_vm6, %v1074_v29 }
 0x1bf   :  { %4353 = vmatmul.msk.f32.vlgmr.msra.gmra.mxu0 %vm312_vm6, %v5163_v27 }
 0x1c0   :  { %1452 = vmatpush.msra.mxu0 %v5156_v9  ;;  %4349 = vmatmul.msk.f32.vlgmr.msra.gmra.mxu2 %vm312_vm6, %v5163_v27 }
 0x1c1   :  { %4360 = vmatpush.xpose.msk.msra.mxu2 %vm312_vm6, %v5170_v51  ;;  %4351 = vmatmul.msk.f32.vlgmr.msra.gmra.mxu3 %vm312_vm6, %v5163_v27 }
 0x1c2   :  { %1428 = vmatpush.msra.mxu3 %v5258_v4 }
 0x1c7   :  { %4359 = vmatmul.msk.f32.vlgmr.msrb.gmra.mxu0 %vm312_vm6, %v5163_v27 }
 0x1c8   :  { %1548 = vmatpush.msrb.mxu0 %v1074_v29  ;;  %4355 = vmatmul.msk.f32.vlgmr.msrb.gmra.mxu2 %vm312_vm6, %v5163_v27 }
 0x1c9   :  { %1476 = vmatpush.msrb.mxu2 %v5283_v41  ;;  %4357 = vmatmul.msk.f32.vlgmr.msrb.gmra.mxu3 %vm312_vm6, %v5163_v27 }
 0x1ca   :  { %1524 = vmatpush.msrb.mxu3 %v5146_v47 }
 0x1d0   :  { %4361 = vmatmul.msk.f32.vlgmr.msra.gmra.mxu2 %vm312_vm6, %v5163_v27 }
 0x1d1   :  { %1500 = vmatpush.msra.mxu2 %v5148_v48 }
 0x208   :  { %v5328_v4 = vpop.f32.mrf.mxu2 }
 0x210   :  { %v5330_v20 = vpop.f32.mrf.mxu3 }
 0x212   :  { %v5324_v53 = vpop.f32.mrf.mxu0 }
 0x220   :  { %v5332_v31 = vpop.f32.mrf.mxu2 }
 0x223   :  { %v5335_v47 = vpop.f32.mrf.mxu3 }
 0x22c   :  { %v5326_v9 = vpop.f32.mrf.mxu0 }
 0x234   :  { %v974_v22 = vpop.f32.mrf.mxu0 }
 0x235   :  { %v1145_v32 = vmul.f32 0.35355338, %v974_v22 }
 0x237   :  { %v1153_v33 = vsel %vm508_vm7, %v1145_v32, -inf }
 0x238   :  { %v1154_v34 = vrot.slane %v1153_v33, 4 }
 0x23a   :  { %v1155_v27 = vmax.f32 %v1153_v33, %v1154_v34 }
 0x23b   :  { %v5337_v38 = vpop.f32.mrf.mxu2 }
 0x23c   :  { %v1156_v35 = vrot.slane %v1155_v27, 2  ;;  %v1046_v48 = vpop.f32.mrf.mxu0  ;;  %v5340_v45 = vpop.f32.mrf.mxu3 }
 0x23d   :  { %v1148_v39 = vmul.f32 0.35355338, %v1046_v48 }
 0x23e   :  { %v1157_v26 = vmax.f32 %v1155_v27, %v1156_v35 }
 0x23f   :  { %v1174_v40 = vsel %vm508_vm7, %v1148_v39, -inf }
 0x240   :  { %v1158_v41 = vrot.slane %v1157_v26, 1  ;;  %v1175_v49 = vrot.slane %v1174_v40, 4 }
 0x242   :  { %v1159_v50 = vmax.f32 %v1157_v26, %v1158_v41  ;;  %v1176_v52 = vmax.f32 %v1174_v40, %v1175_v49 }
 0x243   :  { %v998_v36 = vpop.f32.mrf.mxu2 }
 0x244   :  { %v1209_v54 = vsub.f32 %v1145_v32, %v1159_v50  ;;  %v1177_v55 = vrot.slane %v1176_v52, 2  ;;  %v1118_v56 = vpop.f32.mrf.mxu0  ;;  %v1146_v60 = vmul.f32 0.35355338, %v998_v36  ;;  %v1022_v0 = vpop.f32.mrf.mxu3 }
 0x245   :  { %v1151_v57 = vmul.f32 0.35355338, %v1118_v56  ;;  %v1147_v3 = vmul.f32 0.35355338, %v1022_v0 }
 0x246   :  { %v1217_v58 = vmul.f32 1.442695, %v1209_v54  ;;  %v1178_v59 = vmax.f32 %v1176_v52, %v1177_v55  ;;  %v1160_v46 = vsel %vm508_vm7, %v1146_v60, -inf }
 0x247   :  { %v1195_v43 = vsel %vm508_vm7, %v1151_v57, -inf  ;;  %v1161_v2 = vrot.slane %v1160_v46, 4  ;;  %v1167_v6 = vsel %vm508_vm7, %v1147_v3, -inf }
 0x248   :  { %4510 = vpow2.f32 %v1217_v58  ;;  %v1179_v63 = vrot.slane %v1178_v59, 1  ;;  %v1196_v1 = vrot.slane %v1195_v43, 4  ;;  %v1168_v7 = vrot.slane %v1167_v6, 4 }
 0x249   :  { %v1162_v5 = vmax.f32 %v1160_v46, %v1161_v2 }
 0x24a   :  { %v1180_v23 = vmax.f32 %v1178_v59, %v1179_v63  ;;  %v1197_v30 = vmax.f32 %v1195_v43, %v1196_v1  ;;  %v1169_v37 = vmax.f32 %v1167_v6, %v1168_v7 }
 0x24b   :  { %v1163_v11 = vrot.slane %v1162_v5, 2  ;;  %v1070_v12 = vpop.f32.mrf.mxu2 }
 0x24c   :  { %v1212_v61 = vsub.f32 %v1148_v39, %v1180_v23  ;;  %v1198_v10 = vrot.slane %v1197_v30, 2  ;;  %v5347_v18 = vmul.f32 0.35355338, %v1070_v12  ;;  %v1170_v62 = vrot.slane %v1169_v37, 2  ;;  %v1094_v25 = vpop.f32.mrf.mxu3 }
 0x24d   :  { %v1164_v21 = vmax.f32 %v1162_v5, %v1163_v11  ;;  %v5353_v22 = vmul.f32 0.35355338, %v1094_v25 }
 0x24e   :  { %v5345_v16 = vpop.eup %4510  ;;  %v1223_v13 = vmul.f32 1.442695, %v1212_v61  ;;  %v1199_v15 = vmax.f32 %v1197_v30, %v1198_v10  ;;  %v1181_v29 = vsel %vm508_vm7, %v5347_v18, -inf  ;;  %v1171_v33 = vmax.f32 %v1169_v37, %v1170_v62 }
 0x24f   :  { %v1233_v19 = vsel %vm508_vm7, %v5345_v16, 0.0  ;;  %v1165_v28 = vrot.slane %v1164_v21, 1  ;;  %v1182_v27 = vrot.slane %v1181_v29, 4  ;;  %v1188_v48 = vsel %vm508_vm7, %v5353_v22, -inf }
 0x250   :  { %v1234_v44 = vrot.slane %v1233_v19, 4  ;;  %4512 = vpow2.f32 %v1223_v13  ;;  %v1200_v14 = vrot.slane %v1199_v15, 1  ;;  %v1172_v26 = vrot.slane %v1171_v33, 1 }
 0x251   :  { %v1166_v35 = vmax.f32 %v1164_v21, %v1165_v28  ;;  %v1183_v41 = vmax.f32 %v1181_v29, %v1182_v27  ;;  %v1189_v50 = vrot.slane %v1188_v48, 4 }
 0x252   :  { %v1235_v32 = vadd.f32 %v1234_v44, %v1233_v19  ;;  %v1201_v34 = vmax.f32 %v1199_v15, %v1200_v14  ;;  %v1173_v56 = vmax.f32 %v1171_v33, %v1172_v26 }
 0x253   :  { %v1210_v49 = vsub.f32 %v1146_v60, %v1166_v35  ;;  %v1142_v52 = vpop.f32.mrf.mxu2  ;;  %v1184_v58 = vrot.slane %v1183_v41, 2  ;;  %v1190_v63 = vmax.f32 %v1188_v48, %v1189_v50 }
 0x254   :  { %v1236_v39 = vrot.slane %v1235_v32, 2  ;;  %v1215_v40 = vsub.f32 %v1151_v57, %v1201_v34  ;;  %v5361_v46 = vmul.f32 0.35355338, %v1142_v52  ;;  %v1211_v57 = vsub.f32 %v1147_v3, %v1173_v56 }
 0x255   :  { %v1219_v43 = vmul.f32 1.442695, %v1210_v49  ;;  %v1185_v60 = vmax.f32 %v1183_v41, %v1184_v58  ;;  %v1191_v2 = vrot.slane %v1190_v63, 2 }
 0x256   :  { %v5357_v54 = vpop.eup %4512  ;;  %v1237_v55 = vadd.f32 %v1236_v39, %v1235_v32  ;;  %v1229_v36 = vmul.f32 1.442695, %v1215_v40  ;;  %v1202_v23 = vsel %vm508_vm7, %v5361_v46, -inf  ;;  %v1221_v6 = vmul.f32 1.442695, %v1211_v57 }
 0x257   :  { %v1254_v59 = vsel %vm508_vm7, %v5357_v54, 0.0  ;;  %v1203_v61 = vrot.slane %v1202_v23, 4  ;;  %v1186_v7 = vrot.slane %v1185_v60, 1  ;;  %v1192_v10 = vmax.f32 %v1190_v63, %v1191_v2 }
 0x258   :  { %v1238_v0 = vrot.slane %v1237_v55, 1  ;;  %v1255_v1 = vrot.slane %v1254_v59, 4  ;;  %4514 = vpow2.f32 %v1229_v36 }
 0x259   :  { %4516 = vpow2.f32 %v1219_v43  ;;  %v1187_v12 = vmax.f32 %v1185_v60, %v1186_v7  ;;  %v1193_v13 = vrot.slane %v1192_v10, 1  ;;  %v1204_v3 = vmax.f32 %v1202_v23, %v1203_v61 }
 0x25a   :  { %v1239_v30 = vadd.f32 %v1238_v0, %v1237_v55  ;;  %v1256_v5 = vadd.f32 %v1255_v1, %v1254_v59 }
 0x25b   :  { %v1213_v44 = vsub.f32 %v5347_v18, %v1187_v12  ;;  %v1194_v62 = vmax.f32 %v1192_v10, %v1193_v13  ;;  %v1205_v28 = vrot.slane %v1204_v3, 2 }
 0x25c   :  { %4518 = vrcp.f32 %v1239_v30  ;;  %v1257_v11 = vrot.slane %v1256_v5, 2  ;;  %v1298_v55 = vand.u32 2147483647, %v1239_v30  ;;  %v1300_v56 = vand.u32 2147483648, %v1239_v30 }
 0x25d   :  { %4520 = vpow2.f32 %v1221_v6  ;;  %v1225_v33 = vmul.f32 1.442695, %v1213_v44  ;;  %v1214_v34 = vsub.f32 %v5353_v22, %v1194_v62  ;;  %v1206_v18 = vmax.f32 %v1204_v3, %v1205_v28 }
 0x25e   :  { %v5365_v37 = vpop.eup %4514  ;;  %v1258_v19 = vadd.f32 %v1257_v11, %v1256_v5  ;;  %vm1294_vm9 = vweird.f32 %v1239_v30  ;;  %v1301_v23 = vor.u32 1.1754944e-38, %v1300_v56  ;;  %vm1299_vm11 = vcmp.eq.f32.partialorder %v1298_v55, 8.507059e+37 }
 0x25f   :  { %v5367_v15 = vpop.eup %4516  ;;  %v1275_v21 = vsel %vm508_vm7, %v5365_v37, 0.0  ;;  %4522 = vpow2.f32 %v1225_v33  ;;  %v1227_v50 = vmul.f32 1.442695, %v1214_v34  ;;  %v1207_v43 = vrot.slane %v1206_v18, 1 }
 0x260   :  { %v1240_v14 = vsel %vm508_vm7, %v5367_v15, 0.0  ;;  %v1276_v25 = vrot.slane %v1275_v21, 4  ;;  %v1259_v29 = vrot.slane %v1258_v19, 1 }
 0x261   :  { %v1241_v32 = vrot.slane %v1240_v14, 4  ;;  %v1208_v60 = vmax.f32 %v1206_v18, %v1207_v43 }
 0x262   :  { %v4519_v27 = vpop.eup %4518  ;;  %v1277_v35 = vadd.f32 %v1276_v25, %v1275_v21  ;;  %v5377_v26 = vadd.f32 %v1259_v29, %v1258_v19 }
 0x263   :  { %v5375_v48 = vpop.eup %4520  ;;  %v1290_v39 = vmul.f32 %v4519_v27, %v1239_v30  ;;  %v1242_v40 = vadd.f32 %v1241_v32, %v1240_v14  ;;  %vm1295_vm8 = vweird.f32 %v4519_v27  ;;  %v1216_v30 = vsub.f32 %v5361_v46, %v1208_v60  ;;  %v5400_v46 = vpop.permute.xlu2 %1701 }
 0x264   :  { %v1247_v41 = vsel %vm508_vm7, %v5375_v48, 0.0  ;;  %v1278_v49 = vrot.slane %v1277_v35, 2  ;;  %4524 = vrcp.f32 %v5377_v26  ;;  %vm1296_vm10 = vmor %vm1294_vm9, %vm1295_vm8 }
 0x265   :  { %v1291_v52 = vsub.f32 1.0, %v1290_v39  ;;  %v1243_v22 = vrot.slane %v1242_v40, 2  ;;  %v1248_v36 = vrot.slane %v1247_v41, 4  ;;  %4526 = vpow2.f32 %v1227_v50  ;;  %v5382_v2 = vpop.eup %4522 }
 0x266   :  { %v1279_v58 = vadd.f32 %v1278_v49, %v1277_v35  ;;  %v1261_v10 = vsel %vm508_vm7, %v5382_v2, 0.0  ;;  %v1231_v32 = vmul.f32 1.442695, %v1216_v30 }
 0x267   :  { %v1292_v59 = vmul.f32 %v4519_v27, %v1291_v52  ;;  %v1244_v63 = vadd.f32 %v1243_v22, %v1242_v40  ;;  %v1249_v0 = vadd.f32 %v1248_v36, %v1247_v41  ;;  %v1262_v44 = vrot.slane %v1261_v10, 4  ;;  %v5408_v22 = vpop.permute.xlu1 %1601 }
 0x268   :  { %v1280_v1 = vrot.slane %v1279_v58, 1  ;;  %v1343_v36 = vand.u32 2147483647, %v5377_v26 }
 0x269   :  { %v1293_v57 = vadd.f32 %v4519_v27, %v1292_v59  ;;  %v1245_v5 = vrot.slane %v1244_v63, 1  ;;  %v1250_v6 = vrot.slane %v1249_v0, 2  ;;  %v1263_v25 = vadd.f32 %v1262_v44, %v1261_v10 }
 0x26a   :  { %v5384_v61 = vadd.f32 %v1280_v1, %v1279_v58  ;;  %v5388_v11 = vpop.eup %4524 }
 0x26b   :  { %v1297_v7 = vsel %vm1296_vm10, %v4519_v27, %v1293_v57  ;;  %v1246_v13 = vadd.f32 %v1245_v5, %v1244_v63  ;;  %v5391_v3 = vpop.eup %4526  ;;  %v1251_v21 = vadd.f32 %v1250_v6, %v1249_v0  ;;  %v1335_v62 = vmul.f32 %v5388_v11, %v5377_v26 }
 0x26c   :  { %v1302_v12 = vsel %vm1299_vm11, %v1301_v23, %v1297_v7  ;;  %4528 = vrcp.f32 %v5384_v61  ;;  %v1268_v28 = vsel %vm508_vm7, %v5391_v3, 0.0  ;;  %v1264_v33 = vrot.slane %v1263_v25, 2  ;;  %v5422_v7 = vpop.permute.xlu2 %1773 }
 0x26d   :  { %v1303_v19 = vmul.f32 %v5345_v16, %v1302_v12  ;;  %4530 = vrcp.f32 %v1246_v13  ;;  %v1252_v14 = vrot.slane %v1251_v21, 1  ;;  %v1269_v29 = vrot.slane %v1268_v28, 4 }
 0x26e   :  { %4532 = vpow2.f32 %v1231_v32  ;;  %v1336_v35 = vsub.f32 1.0, %v1335_v62  ;;  %v1313_v40 = vand.u32 2147483647, %v1246_v13  ;;  %v1265_v18 = vadd.f32 %v1264_v33, %v1263_v25 }
 0x26f   :  { %4362 = vmatmul.msk.f32.vlgmr.msra.gmra.mxu3 %vm312_vm6, %v1303_v19  ;;  %v5404_v16 = vadd.f32 %v1252_v14, %v1251_v21  ;;  %v1270_v34 = vadd.f32 %v1269_v29, %v1268_v28  ;;  %v1315_v52 = vand.u32 2147483648, %v1246_v13  ;;  %vm1309_vm12 = vweird.f32 %v1246_v13 }
 0x270   :  { %4370 = vmatpush.xpose.msk.msra.mxu3 %vm312_vm6, %v5180_v8  ;;  %v1266_v55 = vrot.slane %v1265_v18, 1  ;;  %v1337_v63 = vmul.f32 %v5388_v11, %v1336_v35  ;;  %vm5414_vm13 = vcmp.eq.f32.partialorder %v1313_v40, 8.507059e+37  ;;  %v1390_v30 = vand.u32 2147483648, %v5384_v61 }
 0x271   :  { %4534 = vrcp.f32 %v5404_v16  ;;  %v1271_v41 = vrot.slane %v1270_v34, 2  ;;  %v1316_v10 = vor.u32 1.1754944e-38, %v1315_v52  ;;  %v1388_v44 = vand.u32 2147483647, %v5384_v61 }
 0x272   :  { %v4529_v27 = vpop.eup %4528  ;;  %v5418_v1 = vadd.f32 %v1266_v55, %v1265_v18  ;;  %vm1384_vm9 = vweird.f32 %v5384_v61  ;;  %v1328_v29 = vand.u32 2147483647, %v5404_v16  ;;  %v1330_v32 = vand.u32 2147483648, %v5404_v16 }
 0x273   :  { %v4531_v39 = vpop.eup %4530  ;;  %v1380_v49 = vmul.f32 %v4529_v27, %v5384_v61  ;;  %v1272_v56 = vadd.f32 %v1271_v41, %v1270_v34  ;;  %vm1385_vm15 = vweird.f32 %v4529_v27 }
 0x274   :  { %v1305_v50 = vmul.f32 %v4531_v39, %v1246_v13  ;;  %v5411_v43 = vpop.eup %4532  ;;  %vm1310_vm14 = vweird.f32 %v4531_v39  ;;  %4536 = vrcp.f32 %v5418_v1  ;;  %vm1386_vm11 = vmor %vm1384_vm9, %vm1385_vm15  ;;  %v1391_v13 = vor.u32 1.1754944e-38, %v1390_v30 }
 0x275   :  { %v1381_v59 = vsub.f32 1.0, %v1380_v49  ;;  %v1273_v57 = vrot.slane %v1272_v56, 1  ;;  %v1282_v5 = vsel %vm508_vm7, %v5411_v43, 0.0  ;;  %vm1311_vm8 = vmor %vm1309_vm12, %vm1310_vm14  ;;  %vm1389_vm12 = vcmp.eq.f32.partialorder %v1388_v44, 8.507059e+37 }
 0x276   :  { %v1306_v58 = vsub.f32 1.0, %v1305_v50  ;;  %v1283_v14 = vrot.slane %v1282_v5, 4  ;;  %vm1324_vm14 = vweird.f32 %v5404_v16  ;;  %v5440_v50 = vpop.permute.xlu1 %1629  ;;  %v1331_v52 = vor.u32 1.1754944e-38, %v1330_v32 }
 0x277   :  { %v4535_v60 = vpop.eup %4534  ;;  %v1382_v6 = vmul.f32 %v4529_v27, %v1381_v59  ;;  %v5427_v21 = vadd.f32 %v1273_v57, %v1272_v56  ;;  %vm1329_vm15 = vcmp.eq.f32.partialorder %v1328_v29, 8.507059e+37  ;;  %vm1339_vm9 = vweird.f32 %v5377_v26 }
 0x278   :  { %v1307_v23 = vmul.f32 %v4531_v39, %v1306_v58  ;;  %v1320_v12 = vmul.f32 %v4535_v60, %v5404_v16  ;;  %vm1325_vm10 = vweird.f32 %v4535_v60  ;;  %v1284_v40 = vadd.f32 %v1283_v14, %v1282_v5 }
 0x279   :  { %v1383_v25 = vadd.f32 %v4529_v27, %v1382_v6  ;;  %4538 = vrcp.f32 %v5427_v21  ;;  %v1360_v6 = vand.u32 2147483648, %v5418_v1 }
 0x27a   :  { %v1308_v19 = vadd.f32 %v4531_v39, %v1307_v23  ;;  %v1321_v62 = vsub.f32 1.0, %v1320_v12  ;;  %v4537_v61 = vpop.eup %4536  ;;  %v1285_v56 = vrot.slane %v1284_v40, 2  ;;  %v1750_v23 = vpop.permute.xlu2 %1749 }
 0x27b   :  { %v1387_v18 = vsel %vm1386_vm11, %v4529_v27, %v1383_v25  ;;  %v1350_v55 = vmul.f32 %v4537_v61, %v5418_v1  ;;  %vm1355_vm11 = vweird.f32 %v4537_v61  ;;  %v1361_v25 = vor.u32 1.1754944e-38, %v1360_v6 }
 0x27c   :  { %v1312_v28 = vsel %vm1311_vm8, %v4531_v39, %v1308_v19  ;;  %v1322_v34 = vmul.f32 %v4535_v60, %v1321_v62  ;;  %v1345_v39 = vand.u32 2147483648, %v5377_v26  ;;  %v1392_v49 = vsel %vm1389_vm12, %v1391_v13, %v1387_v18  ;;  %vm1326_vm8 = vmor %vm1324_vm14, %vm1325_vm10 }
 0x27d   :  { %v1317_v33 = vsel %vm5414_vm13, %v1316_v10, %v1312_v28  ;;  %vm1340_vm13 = vweird.f32 %v5388_v11  ;;  %v1393_v16 = vmul.f32 %v5365_v37, %v1392_v49  ;;  %v1351_v0 = vsub.f32 1.0, %v1350_v55 }
 0x27e   :  { %v1318_v35 = vmul.f32 %v5367_v15, %v1317_v33  ;;  %v1323_v41 = vadd.f32 %v4535_v60, %v1322_v34  ;;  %v1338_v15 = vadd.f32 %v5388_v11, %v1337_v63  ;;  %v1286_v57 = vadd.f32 %v1285_v56, %v1284_v40  ;;  %vm5456_vm10 = vmor %vm1339_vm9, %vm1340_vm13 }
 0x27f   :  { %v4539_v58 = vpop.eup %4538  ;;  %4368 = vmatmul.msk.f32.vlgmr.msrb.gmra.mxu1 %vm312_vm6, %v1393_v16  ;;  %v1352_v37 = vmul.f32 %v4537_v61, %v1351_v0  ;;  %v1358_v10 = vand.u32 2147483647, %v5418_v1  ;;  %vm1344_vm12 = vcmp.eq.f32.partialorder %v1343_v36, 8.507059e+37  ;;  %v1346_v30 = vor.u32 1.1754944e-38, %v1345_v39 }
 0x280   :  { %4363 = vmatmul.msk.f32.vlgmr.msra.gmra.mxu0 %vm312_vm6, %v1318_v35  ;;  %v1327_v27 = vsel %vm1326_vm8, %v4535_v60, %v1323_v41  ;;  %v1365_v63 = vmul.f32 %v4539_v58, %v5427_v21  ;;  %v1287_v12 = vrot.slane %v1286_v57, 1  ;;  %4382 = vmatpush.xpose.msk.msrb.mxu1 %vm312_vm6, %v1750_v23  ;;  %vm1354_vm14 = vweird.f32 %v5418_v1 }
 0x281   :  { %4372 = vmatpush.xpose.msk.msra.mxu0 %vm312_vm6, %v5440_v50  ;;  %v1332_v59 = vsel %vm1329_vm15, %v1331_v52, %v1327_v27  ;;  %v1353_v44 = vadd.f32 %v4537_v61, %v1352_v37  ;;  %v1375_v62 = vand.u32 2147483648, %v5427_v21  ;;  %vm1356_vm13 = vmor %vm1354_vm14, %vm1355_vm11  ;;  %vm1370_vm8 = vweird.f32 %v4539_v58 }
 0x282   :  { %v1333_v5 = vmul.f32 %v5375_v48, %v1332_v59  ;;  %v1342_v48 = vsel %vm5456_vm10, %v5388_v11, %v1338_v15  ;;  %v1366_v19 = vsub.f32 1.0, %v1365_v63  ;;  %v1288_v14 = vadd.f32 %v1287_v12, %v1286_v57 }
 0x283   :  { %v1373_v11 = vand.u32 2147483647, %v5427_v21  ;;  %v1347_v26 = vsel %vm1344_vm12, %v1346_v30, %v1342_v48  ;;  %v1357_v36 = vsel %vm1356_vm13, %v4537_v61, %v1353_v44  ;;  %vm1359_vm15 = vcmp.eq.f32.partialorder %v1358_v10, 8.507059e+37 }
 0x284   :  { %4364 = vmatmul.msk.f32.vlgmr.msrb.gmra.mxu2 %vm312_vm6, %v1333_v5  ;;  %v1367_v28 = vmul.f32 %v4539_v58, %v1366_v19  ;;  %4540 = vrcp.f32 %v1288_v14  ;;  %v1362_v29 = vsel %vm1359_vm15, %v1361_v25, %v1357_v36  ;;  %vm1369_vm9 = vweird.f32 %v5427_v21 }
 0x285   :  { %1596 = vmatpush.msrb.mxu2 %v5170_v51  ;;  %v1363_v1 = vmul.f32 %v5382_v2, %v1362_v29  ;;  %vm1371_vm10 = vmor %vm1369_vm9, %vm1370_vm8  ;;  %v1376_v33 = vor.u32 1.1754944e-38, %v1375_v62  ;;  %v1348_v51 = vmul.f32 %v5357_v54, %v1347_v26  ;;  %vm1374_vm11 = vcmp.eq.f32.partialorder %v1373_v11, 8.507059e+37  ;;  %v1726_v54 = vpop.permute.xlu1 %1725 }
 0x286   :  { %v1368_v32 = vadd.f32 %v4539_v58, %v1367_v28  ;;  %v1405_v18 = vand.u32 2147483648, %v1288_v14  ;;  %vm1399_vm14 = vweird.f32 %v1288_v14 }
 0x287   :  { %4375 = vmatmul.msk.f32.vlgmr.msra.gmra.mxu1 %vm312_vm6, %v5408_v22  ;;  %4366 = vmatmul.msk.f32.vlgmr.msrb.gmra.mxu3 %vm312_vm6, %v1363_v1 }
 0x288   :  { %v1372_v34 = vsel %vm1371_vm10, %v4539_v58, %v1368_v32  ;;  %2128 = vmatpush.msra.mxu1 %v5230_v17  ;;  %4378 = vmatpush.xpose.msk.msrb.mxu3 %vm312_vm6, %v5400_v46  ;;  %v1406_v39 = vor.u32 1.1754944e-38, %v1405_v18 }
 0x289   :  { %v1377_v13 = vsel %vm1374_vm11, %v1376_v33, %v1372_v34 }
 0x28a   :  { %v1378_v35 = vmul.f32 %v5391_v3, %v1377_v13  ;;  %v4541_v2 = vpop.eup %4540  ;;  %v1403_v3 = vand.u32 2147483647, %v1288_v14 }
 0x28b   :  { %v1395_v21 = vmul.f32 %v4541_v2, %v1288_v14  ;;  %vm1400_vm12 = vweird.f32 %v4541_v2 }
 0x28c   :  { %4365 = vmatmul.msk.f32.vlgmr.msra.gmra.mxu2 %vm312_vm6, %v1348_v51  ;;  %4367 = vmatmul.msk.f32.vlgmr.msrb.gmra.mxu0 %vm312_vm6, %v1378_v35  ;;  %vm1401_vm13 = vmor %vm1399_vm14, %vm1400_vm12  ;;  %vm1404_vm8 = vcmp.eq.f32.partialorder %v1403_v3, 8.507059e+37 }
 0x28d   :  { %4376 = vmatpush.xpose.msk.msra.mxu2 %vm312_vm6, %v5207_v42  ;;  %4380 = vmatpush.xpose.msk.msrb.mxu0 %vm312_vm6, %v1726_v54  ;;  %v1396_v40 = vsub.f32 1.0, %v1395_v21 }
 0x28f   :  { %v1397_v17 = vmul.f32 %v4541_v2, %v1396_v40  ;;  %4383 = vmatmul.msk.f32.vlgmr.msrb.gmra.mxu1 %vm312_vm6, %v5408_v22  ;;  %4371 = vmatmul.msk.f32.vlgmr.msra.gmra.mxu3 %vm312_vm6, %v5408_v22 }
 0x290   :  { %2224 = vmatpush.msrb.mxu1 %v1750_v23  ;;  %2080 = vmatpush.msra.mxu3 %v5180_v8 }
 0x291   :  { %v1398_v61 = vadd.f32 %v4541_v2, %v1397_v17 }
 0x293   :  { %v1402_v41 = vsel %vm1401_vm13, %v4541_v2, %v1398_v61 }
 0x294   :  { %4373 = vmatmul.msk.f32.vlgmr.msra.gmra.mxu0 %vm312_vm6, %v5408_v22  ;;  %v1407_v49 = vsel %vm1404_vm8, %v1406_v39, %v1402_v41 }
 0x295   :  { %2104 = vmatpush.msra.mxu0 %v5440_v50  ;;  %v1408_v52 = vmul.f32 %v5411_v43, %v1407_v49 }
 0x297   :  { %4369 = vmatmul.msk.f32.vlgmr.msrb.gmra.mxu2 %vm312_vm6, %v1408_v52  ;;  %4379 = vmatmul.msk.f32.vlgmr.msrb.gmra.mxu3 %vm312_vm6, %v5408_v22 }
 0x298   :  { %4384 = vmatpush.xpose.msk.msrb.mxu2 %vm312_vm6, %v5422_v7  ;;  %2176 = vmatpush.msrb.mxu3 %v5400_v46 }
 0x29c   :  { %4381 = vmatmul.msk.f32.vlgmr.msrb.gmra.mxu0 %vm312_vm6, %v5408_v22 }
 0x29d   :  { %2200 = vmatpush.msrb.mxu0 %v1726_v54 }
 0x29f   :  { %4377 = vmatmul.msk.f32.vlgmr.msra.gmra.mxu2 %vm312_vm6, %v5408_v22 }
 0x2a0   :  { %2152 = vmatpush.msra.mxu2 %v5207_v42 }
 0x2a7   :  { %4385 = vmatmul.msk.f32.vlgmr.msrb.gmra.mxu2 %vm312_vm6, %v5408_v22 }
 0x2a8   :  { %2248 = vmatpush.msrb.mxu2 %v5422_v7 }
 0x2f2   :  { %v1430_v8 = vpop.f32.mrf.mxu3 }
 0x2f3   :  { %2913 = vrot.lane.b32.xlu0 %v1430_v8, %s4866_s26 }
 0x2fc   :  { %v5512_v46 = vpop.f32.mrf.mxu1 }
 0x2fd   :  { %v1454_v43 = vpop.f32.mrf.mxu0 }
 0x2fe   :  { %2915 = vrot.lane.b32.xlu2 %v1454_v43, %s4866_s26 }
 0x304   :  { %v1674_v55 = vpop.f32.mrf.mxu1 }
 0x305   :  { %v1799_v56 = vmul.f32 0.35355338, %v1674_v55 }
 0x307   :  { %v1478_v50 = vpop.f32.mrf.mxu2  ;;  %v1819_v42 = vsel %vm508_vm7, %v1799_v56, -inf }
 0x308   :  { %2917 = vrot.lane.b32.xlu0 %v1478_v50, %s4866_s26  ;;  %v1820_v22 = vrot.slane %v1819_v42, 4 }
 0x309   :  { %v5516_v15 = vpop.f32.mrf.mxu0 }
 0x30a   :  { %v1821_v7 = vmax.f32 %v1819_v42, %v1820_v22  ;;  %v5518_v27 = vpop.f32.mrf.mxu3 }
 0x30c   :  { %v1822_v16 = vrot.slane %v1821_v7, 2  ;;  %v1770_v58 = vpop.f32.mrf.mxu1 }
 0x30d   :  { %v1803_v59 = vmul.f32 0.35355338, %v1770_v58 }
 0x30e   :  { %v1823_v0 = vmax.f32 %v1821_v7, %v1822_v16 }
 0x30f   :  { %v1847_v57 = vsel %vm508_vm7, %v1803_v59, -inf  ;;  %v5521_v5 = vpop.f32.mrf.mxu2 }
 0x310   :  { %v1824_v23 = vrot.slane %v1823_v0, 1  ;;  %v1848_v63 = vrot.slane %v1847_v57, 4 }
 0x311   :  { %v1650_v6 = vpop.f32.mrf.mxu0 }
 0x312   :  { %v1798_v60 = vmul.f32 0.35355338, %v1650_v6  ;;  %v1825_v37 = vmax.f32 %v1823_v0, %v1824_v23  ;;  %v1849_v10 = vmax.f32 %v1847_v57, %v1848_v63  ;;  %v1626_v48 = vpop.f32.mrf.mxu3 }
 0x313   :  { %v1797_v62 = vmul.f32 0.35355338, %v1626_v48 }
 0x314   :  { %v1812_v12 = vsel %vm508_vm7, %v1798_v60, -inf  ;;  %v1863_v30 = vsub.f32 %v1799_v56, %v1825_v37  ;;  %v1850_v44 = vrot.slane %v1849_v10, 2 }
 0x315   :  { %v1813_v19 = vrot.slane %v1812_v12, 4  ;;  %v1805_v11 = vsel %vm508_vm7, %v1797_v62, -inf }
 0x316   :  { %v1873_v14 = vmul.f32 1.442695, %v1863_v30  ;;  %v1851_v28 = vmax.f32 %v1849_v10, %v1850_v44  ;;  %v1806_v26 = vrot.slane %v1805_v11, 4 }
 0x317   :  { %v1814_v25 = vmax.f32 %v1812_v12, %v1813_v19 }
 0x318   :  { %4542 = vpow2.f32 %v1873_v14  ;;  %v1852_v29 = vrot.slane %v1851_v28, 1  ;;  %v1807_v1 = vmax.f32 %v1805_v11, %v1806_v26 }
 0x319   :  { %v1815_v36 = vrot.slane %v1814_v25, 2  ;;  %v1746_v32 = vpop.f32.mrf.mxu0 }
 0x31a   :  { %v1802_v33 = vmul.f32 0.35355338, %v1746_v32  ;;  %v1853_v34 = vmax.f32 %v1851_v28, %v1852_v29  ;;  %v5525_v13 = vpop.f32.mrf.mxu2  ;;  %v1808_v35 = vrot.slane %v1807_v1, 2  ;;  %v1722_v54 = vpop.f32.mrf.mxu3 }
 0x31b   :  { %v1816_v51 = vmax.f32 %v1814_v25, %v1815_v36  ;;  %v1801_v17 = vmul.f32 0.35355338, %v1722_v54 }
 0x31c   :  { %v1840_v2 = vsel %vm508_vm7, %v1802_v33, -inf  ;;  %v1867_v40 = vsub.f32 %v1803_v59, %v1853_v34  ;;  %v1809_v3 = vmax.f32 %v1807_v1, %v1808_v35 }
 0x31d   :  { %v1817_v21 = vrot.slane %v1816_v51, 1  ;;  %v1841_v18 = vrot.slane %v1840_v2, 4  ;;  %v1833_v52 = vsel %vm508_vm7, %v1801_v17, -inf }
 0x31e   :  { %v5528_v61 = vpop.eup %4542  ;;  %v1881_v41 = vmul.f32 1.442695, %v1867_v40  ;;  %v1810_v43 = vrot.slane %v1809_v3, 1  ;;  %v1834_v50 = vrot.slane %v1833_v52, 4 }
 0x31f   :  { %v1818_v39 = vmax.f32 %v1816_v51, %v1817_v21  ;;  %v1842_v49 = vmax.f32 %v1840_v2, %v1841_v18  ;;  %v1899_v8 = vsel %vm508_vm7, %v5528_v61, 0.0 }
 0x320   :  { %v1900_v55 = vrot.slane %v1899_v8, 4  ;;  %4544 = vpow2.f32 %v1881_v41  ;;  %v1811_v22 = vmax.f32 %v1809_v3, %v1810_v43  ;;  %v1835_v7 = vmax.f32 %v1833_v52, %v1834_v50 }
 0x321   :  { %v1862_v56 = vsub.f32 %v1798_v60, %v1818_v39  ;;  %v1843_v42 = vrot.slane %v1842_v49, 2 }
 0x322   :  { %v1901_v16 = vadd.f32 %v1900_v55, %v1899_v8  ;;  %v1698_v0 = vpop.f32.mrf.mxu2  ;;  %v1861_v57 = vsub.f32 %v1797_v62, %v1811_v22  ;;  %v1836_v23 = vrot.slane %v1835_v7, 2 }
 0x323   :  { %v1871_v58 = vmul.f32 1.442695, %v1862_v56  ;;  %v1844_v59 = vmax.f32 %v1842_v49, %v1843_v42  ;;  %v5533_v6 = vmul.f32 0.35355338, %v1698_v0 }
 0x324   :  { %v1902_v63 = vrot.slane %v1901_v16, 2  ;;  %v1869_v10 = vmul.f32 1.442695, %v1861_v57  ;;  %v1837_v12 = vmax.f32 %v1835_v7, %v1836_v23  ;;  %v5557_v57 = vpop.permute.xlu2 %2281 }
 0x325   :  { %4546 = vpow2.f32 %v1871_v58  ;;  %v1845_v37 = vrot.slane %v1844_v59, 1  ;;  %v1826_v60 = vsel %vm508_vm7, %v5533_v6, -inf }
 0x326   :  { %v5537_v48 = vpop.eup %4544  ;;  %v1903_v30 = vadd.f32 %v1902_v63, %v1901_v16  ;;  %v1827_v44 = vrot.slane %v1826_v60, 4  ;;  %4548 = vpow2.f32 %v1869_v10  ;;  %v1838_v62 = vrot.slane %v1837_v12, 1 }
 0x327   :  { %v1846_v19 = vmax.f32 %v1844_v59, %v1845_v37  ;;  %v1927_v14 = vsel %vm508_vm7, %v5537_v48, 0.0 }
 0x328   :  { %v1904_v25 = vrot.slane %v1903_v30, 1  ;;  %v1928_v28 = vrot.slane %v1927_v14, 4  ;;  %v1828_v26 = vmax.f32 %v1826_v60, %v1827_v44  ;;  %v1839_v36 = vmax.f32 %v1837_v12, %v1838_v62  ;;  %v5564_v60 = vpop.permute.xlu1 %2253 }
 0x329   :  { %v1866_v11 = vsub.f32 %v1802_v33, %v1846_v19 }
 0x32a   :  { %v1905_v32 = vadd.f32 %v1904_v25, %v1903_v30  ;;  %v1929_v1 = vadd.f32 %v1928_v28, %v1927_v14  ;;  %v1829_v34 = vrot.slane %v1828_v26, 2  ;;  %v1794_v35 = vpop.f32.mrf.mxu2  ;;  %v1865_v54 = vsub.f32 %v1801_v17, %v1839_v36 }
 0x32b   :  { %v5541_v29 = vpop.eup %4546  ;;  %v1879_v51 = vmul.f32 1.442695, %v1866_v11  ;;  %v5545_v21 = vmul.f32 0.35355338, %v1794_v35 }
 0x32c   :  { %v1892_v2 = vsel %vm508_vm7, %v5541_v29, 0.0  ;;  %4550 = vrcp.f32 %v1905_v32  ;;  %v5547_v40 = vpop.eup %4548  ;;  %v1930_v33 = vrot.slane %v1929_v1, 2  ;;  %v1877_v3 = vmul.f32 1.442695, %v1865_v54 }
 0x32d   :  { %v1893_v18 = vrot.slane %v1892_v2, 4  ;;  %4552 = vpow2.f32 %v1879_v51  ;;  %v1885_v39 = vsel %vm508_vm7, %v5547_v40, 0.0  ;;  %v1830_v41 = vmax.f32 %v1828_v26, %v1829_v34 }
 0x32e   :  { %v1931_v52 = vadd.f32 %v1930_v33, %v1929_v1  ;;  %v1886_v8 = vrot.slane %v1885_v39, 4  ;;  %4554 = vpow2.f32 %v1877_v3  ;;  %v1854_v17 = vsel %vm508_vm7, %v5545_v21, -inf }
 0x32f   :  { %v1894_v49 = vadd.f32 %v1893_v18, %v1892_v2  ;;  %v1831_v43 = vrot.slane %v1830_v41, 1  ;;  %v1855_v7 = vrot.slane %v1854_v17, 4  ;;  %v1980_v23 = vand.u32 2147483647, %v1905_v32 }
 0x330   :  { %v1932_v55 = vrot.slane %v1931_v52, 1  ;;  %v1887_v56 = vadd.f32 %v1886_v8, %v1885_v39  ;;  %v1982_v19 = vand.u32 2147483648, %v1905_v32  ;;  %vm1976_vm9 = vweird.f32 %v1905_v32  ;;  %v5579_v8 = vpop.permute.xlu2 %2353 }
 0x331   :  { %v1895_v50 = vrot.slane %v1894_v49, 2  ;;  %v1832_v22 = vmax.f32 %v1830_v41, %v1831_v43  ;;  %v1856_v25 = vmax.f32 %v1854_v17, %v1855_v7  ;;  %vm1981_vm10 = vcmp.eq.f32.partialorder %v1980_v23, 8.507059e+37 }
 0x332   :  { %v4551_v42 = vpop.eup %4550  ;;  %v5555_v0 = vadd.f32 %v1932_v55, %v1931_v52  ;;  %v1888_v63 = vrot.slane %v1887_v56, 2  ;;  %v1983_v34 = vor.u32 1.1754944e-38, %v1982_v19 }
 0x333   :  { %v5553_v16 = vpop.eup %4552  ;;  %v1972_v58 = vmul.f32 %v4551_v42, %v1905_v32  ;;  %v1896_v59 = vadd.f32 %v1895_v50, %v1894_v49  ;;  %v1864_v10 = vsub.f32 %v5533_v6, %v1832_v22  ;;  %vm1977_vm15 = vweird.f32 %v4551_v42 }
 0x334   :  { %v1920_v37 = vsel %vm508_vm7, %v5553_v16, 0.0  ;;  %v5562_v12 = vpop.eup %4554  ;;  %4556 = vrcp.f32 %v5555_v0  ;;  %v1889_v14 = vadd.f32 %v1888_v63, %v1887_v56  ;;  %vm1978_vm11 = vmor %vm1976_vm9, %vm1977_vm15  ;;  %v2040_v3 = vand.u32 2147483647, %v5555_v0  ;;  %v5581_v56 = vpop.permute.xlu1 %2305 }
 0x335   :  { %v1973_v30 = vsub.f32 1.0, %v1972_v58  ;;  %v1897_v44 = vrot.slane %v1896_v59, 1  ;;  %v1921_v62 = vrot.slane %v1920_v37, 4  ;;  %v1913_v26 = vsel %vm508_vm7, %v5562_v12, 0.0 }
 0x336   :  { %v1875_v6 = vmul.f32 1.442695, %v1864_v10  ;;  %v1890_v36 = vrot.slane %v1889_v14, 1  ;;  %v1914_v54 = vrot.slane %v1913_v26, 4  ;;  %v1857_v39 = vrot.slane %v1856_v25, 2 }
 0x337   :  { %v1974_v28 = vmul.f32 %v4551_v42, %v1973_v30  ;;  %v5567_v11 = vadd.f32 %v1897_v44, %v1896_v59  ;;  %v1922_v1 = vadd.f32 %v1921_v62, %v1920_v37  ;;  %v2042_v32 = vand.u32 2147483648, %v5555_v0 }
 0x338   :  { %v5572_v35 = vadd.f32 %v1890_v36, %v1889_v14  ;;  %v1915_v50 = vadd.f32 %v1914_v54, %v1913_v26  ;;  %vm2036_vm12 = vweird.f32 %v5555_v0  ;;  %vm5584_vm14 = vcmp.eq.f32.partialorder %v2040_v3, 8.507059e+37  ;;  %v5602_v36 = vpop.permute.xlu0 %2255 }
 0x339   :  { %v1975_v51 = vadd.f32 %v4551_v42, %v1974_v28  ;;  %4558 = vrcp.f32 %v5567_v11  ;;  %v1923_v2 = vrot.slane %v1922_v1, 2  ;;  %v1858_v22 = vmax.f32 %v1856_v25, %v1857_v39 }
 0x33a   :  { %v4557_v18 = vpop.eup %4556  ;;  %4560 = vpow2.f32 %v1875_v6  ;;  %v2043_v58 = vor.u32 1.1754944e-38, %v2042_v32  ;;  %v1965_v23 = vand.u32 2147483647, %v5567_v11  ;;  %v1916_v37 = vrot.slane %v1915_v50, 2  ;;  %v5616_v32 = vpop.permute.xlu2 %2401 }
 0x33b   :  { %v1979_v33 = vsel %vm1978_vm11, %v4551_v42, %v1975_v51  ;;  %v2032_v49 = vmul.f32 %v4557_v18, %v5555_v0  ;;  %4562 = vrcp.f32 %v5572_v35  ;;  %v1924_v17 = vadd.f32 %v1923_v2, %v1922_v1 }
 0x33c   :  { %v1984_v41 = vsel %vm1981_vm10, %v1983_v34, %v1979_v33  ;;  %vm2037_vm13 = vweird.f32 %v4557_v18  ;;  %v1859_v10 = vrot.slane %v1858_v22, 1  ;;  %v1967_v19 = vand.u32 2147483648, %v5567_v11 }
 0x33d   :  { %v1985_v52 = vmul.f32 %v5528_v61, %v1984_v41  ;;  %v2033_v43 = vsub.f32 1.0, %v2032_v49  ;;  %v1925_v63 = vrot.slane %v1924_v17, 1  ;;  %vm2038_vm8 = vmor %vm2036_vm12, %vm2037_vm13  ;;  %v1917_v28 = vadd.f32 %v1916_v37, %v1915_v50 }
 0x33e   :  { %v1860_v6 = vmax.f32 %v1858_v22, %v1859_v10  ;;  %vm1961_vm9 = vweird.f32 %v5567_v11  ;;  %vm5606_vm10 = vcmp.eq.f32.partialorder %v1965_v23, 8.507059e+37  ;;  %v1968_v33 = vor.u32 1.1754944e-38, %v1967_v19 }
 0x33f   :  { %v4559_v55 = vpop.eup %4558  ;;  %4388 = vmatmul.msk.f32.vlgmr.msra.gmra.mxu1 %vm312_vm6, %v1985_v52  ;;  %v2034_v7 = vmul.f32 %v4557_v18, %v2033_v43  ;;  %v5600_v25 = vadd.f32 %v1925_v63, %v1924_v17  ;;  %v1918_v41 = vrot.slane %v1917_v28, 1  ;;  %v1950_v17 = vand.u32 2147483647, %v5572_v35 }
 0x340   :  { %v1957_v61 = vmul.f32 %v4559_v55, %v5567_v11  ;;  %4398 = vmatpush.xpose.msk.msra.mxu1 %vm312_vm6, %v5581_v56  ;;  %v5592_v59 = vpop.eup %4560  ;;  %vm1962_vm15 = vweird.f32 %v4559_v55  ;;  %v1868_v11 = vsub.f32 %v5545_v21, %v1860_v6 }
 0x341   :  { %v2035_v44 = vadd.f32 %v4557_v18, %v2034_v7  ;;  %v1906_v14 = vsel %vm508_vm7, %v5592_v59, 0.0  ;;  %v4563_v62 = vpop.eup %4562  ;;  %4564 = vrcp.f32 %v5600_v25  ;;  %vm1963_vm11 = vmor %vm1961_vm9, %vm1962_vm15  ;;  %v5622_v50 = vadd.f32 %v1918_v41, %v1917_v28 }
 0x342   :  { %v1958_v30 = vsub.f32 1.0, %v1957_v61  ;;  %v1907_v26 = vrot.slane %v1906_v14, 4  ;;  %v1942_v34 = vmul.f32 %v4563_v62, %v5572_v35  ;;  %vm1947_vm12 = vweird.f32 %v4563_v62 }
 0x343   :  { %v2039_v51 = vsel %vm2038_vm8, %v4557_v18, %v2035_v44  ;;  %v1952_v18 = vand.u32 2147483648, %v5572_v35  ;;  %v1883_v22 = vmul.f32 1.442695, %v1868_v11  ;;  %4566 = vrcp.f32 %v5622_v50 }
 0x344   :  { %v1959_v1 = vmul.f32 %v4559_v55, %v1958_v30  ;;  %v2044_v0 = vsel %vm5584_vm14, %v2043_v58, %v2039_v51  ;;  %v1943_v39 = vsub.f32 1.0, %v1942_v34  ;;  %v1908_v49 = vadd.f32 %v1907_v26, %v1906_v14 }
 0x345   :  { %v2045_v3 = vmul.f32 %v5537_v48, %v2044_v0  ;;  %vm1946_vm14 = vweird.f32 %v5572_v35  ;;  %v1953_v7 = vor.u32 1.1754944e-38, %v1952_v18  ;;  %vm1951_vm8 = vcmp.eq.f32.partialorder %v1950_v17, 8.507059e+37 }
 0x346   :  { %v1960_v54 = vadd.f32 %v4559_v55, %v1959_v1  ;;  %v1944_v43 = vmul.f32 %v4563_v62, %v1943_v39  ;;  %v1909_v42 = vrot.slane %v1908_v49, 2  ;;  %vm1948_vm13 = vmor %vm1946_vm14, %vm1947_vm12  ;;  %4568 = vpow2.f32 %v1883_v22 }
 0x347   :  { %4392 = vmatmul.msk.f32.vlgmr.msrb.gmra.mxu1 %vm312_vm6, %v2045_v3  ;;  %v2027_v19 = vand.u32 2147483648, %v5600_v25  ;;  %v2025_v14 = vand.u32 2147483647, %v5600_v25  ;;  %vm2021_vm9 = vweird.f32 %v5600_v25  ;;  %v2010_v3 = vand.u32 2147483647, %v5622_v50 }
 0x348   :  { %v1964_v52 = vsel %vm1963_vm11, %v4559_v55, %v1960_v54  ;;  %4406 = vmatpush.xpose.msk.msrb.mxu1 %vm312_vm6, %v5616_v32  ;;  %v1945_v61 = vadd.f32 %v4563_v62, %v1944_v43  ;;  %v4565_v55 = vpop.eup %4564  ;;  %v1910_v63 = vadd.f32 %v1909_v42, %v1908_v49  ;;  %v2012_v54 = vand.u32 2147483648, %v5622_v50 }
 0x349   :  { %v1969_v48 = vsel %vm5606_vm10, %v1968_v33, %v1964_v52  ;;  %v2017_v23 = vmul.f32 %v4565_v55, %v5600_v25  ;;  %vm2022_vm15 = vweird.f32 %v4565_v55  ;;  %v4567_v28 = vpop.eup %4566  ;;  %v2028_v1 = vor.u32 1.1754944e-38, %v2027_v19 }
 0x34a   :  { %v1970_v21 = vmul.f32 %v5541_v29, %v1969_v48  ;;  %v1949_v58 = vsel %vm1948_vm13, %v4563_v62, %v1945_v61  ;;  %v5633_v29 = vpop.permute.xlu0 %2329  ;;  %v1911_v30 = vrot.slane %v1910_v63, 1  ;;  %v2002_v26 = vmul.f32 %v4567_v28, %v5622_v50  ;;  %vm2023_vm10 = vmor %vm2021_vm9, %vm2022_vm15 }
 0x34b   :  { %v1954_v37 = vsel %vm1951_vm8, %v1953_v7, %v1949_v58  ;;  %v2018_v10 = vsub.f32 1.0, %v2017_v23  ;;  %vm2026_vm11 = vcmp.eq.f32.partialorder %v2025_v14, 8.507059e+37  ;;  %vm2007_vm12 = vweird.f32 %v4567_v28 }
 0x34c   :  { %4387 = vmatmul.msk.f32.vlgmr.msra.gmra.mxu0 %vm312_vm6, %v1970_v21  ;;  %v1955_v35 = vmul.f32 %v5547_v40, %v1954_v37  ;;  %v1912_v62 = vadd.f32 %v1911_v30, %v1910_v63  ;;  %v5646_v6 = vpop.eup %4568  ;;  %v2003_v34 = vsub.f32 1.0, %v2002_v26  ;;  %vm2006_vm14 = vweird.f32 %v5622_v50 }
 0x34d   :  { %4396 = vmatpush.xpose.msk.msra.mxu0 %vm312_vm6, %v5557_v57  ;;  %v2019_v44 = vmul.f32 %v4565_v55, %v2018_v10  ;;  %v1934_v2 = vsel %vm508_vm7, %v5646_v6, 0.0  ;;  %vm2008_vm13 = vmor %vm2006_vm14, %vm2007_vm12  ;;  %v2013_v11 = vor.u32 1.1754944e-38, %v2012_v54  ;;  %vm2011_vm8 = vcmp.eq.f32.partialorder %v2010_v3, 8.507059e+37 }
 0x34e   :  { %4386 = vmatmul.msk.f32.vlgmr.msra.gmra.mxu3 %vm312_vm6, %v1955_v35  ;;  %4570 = vrcp.f32 %v1912_v62  ;;  %v2004_v25 = vmul.f32 %v4567_v28, %v2003_v34  ;;  %v1997_v22 = vand.u32 2147483648, %v1912_v62  ;;  %v1995_v61 = vand.u32 2147483647, %v1912_v62 }
 0x34f   :  { %4399 = vmatmul.msk.f32.vlgmr.msra.gmra.mxu1 %vm312_vm6, %v5564_v60  ;;  %4394 = vmatpush.xpose.msk.msra.mxu3 %vm312_vm6, %v5602_v36  ;;  %v2020_v40 = vadd.f32 %v4565_v55, %v2019_v44  ;;  %vm1991_vm9 = vweird.f32 %v1912_v62 }
 0x350   :  { %2780 = vmatpush.msra.mxu1 %v5581_v56  ;;  %v1935_v56 = vrot.slane %v1934_v2, 4  ;;  %v2005_v49 = vadd.f32 %v4567_v28, %v2004_v25 }
 0x351   :  { %v2024_v51 = vsel %vm2023_vm10, %v4565_v55, %v2020_v40 }
 0x352   :  { %v2029_v0 = vsel %vm2026_vm11, %v2028_v1, %v2024_v51  ;;  %v1936_v39 = vadd.f32 %v1935_v56, %v1934_v2  ;;  %v2378_v41 = vpop.permute.xlu0 %2377  ;;  %vm1996_vm11 = vcmp.eq.f32.partialorder %v1995_v61, 8.507059e+37 }
 0x353   :  { %v2030_v33 = vmul.f32 %v5553_v16, %v2029_v0  ;;  %v2009_v16 = vsel %vm2008_vm13, %v4567_v28, %v2005_v49  ;;  %v2426_v28 = vpop.permute.xlu1 %2425 }
 0x354   :  { %v4571_v18 = vpop.eup %4570  ;;  %v1937_v43 = vrot.slane %v1936_v39, 2  ;;  %v2014_v17 = vsel %vm2011_vm8, %v2013_v11, %v2009_v16 }
 0x355   :  { %4391 = vmatmul.msk.f32.vlgmr.msrb.gmra.mxu0 %vm312_vm6, %v2030_v33  ;;  %v1987_v52 = vmul.f32 %v4571_v18, %v1912_v62  ;;  %v2015_v50 = vmul.f32 %v5562_v12, %v2014_v17  ;;  %vm1992_vm15 = vweird.f32 %v4571_v18 }
 0x356   :  { %4404 = vmatpush.xpose.msk.msrb.mxu0 %vm312_vm6, %v2378_v41  ;;  %v1938_v42 = vadd.f32 %v1937_v43, %v1936_v39  ;;  %vm1993_vm10 = vmor %vm1991_vm9, %vm1992_vm15 }
 0x357   :  { %4407 = vmatmul.msk.f32.vlgmr.msrb.gmra.mxu1 %vm312_vm6, %v5564_v60  ;;  %v1988_v48 = vsub.f32 1.0, %v1987_v52  ;;  %4390 = vmatmul.msk.f32.vlgmr.msrb.gmra.mxu3 %vm312_vm6, %v2015_v50 }
 0x358   :  { %2876 = vmatpush.msrb.mxu1 %v5616_v32  ;;  %v1939_v55 = vrot.slane %v1938_v42, 1  ;;  %4402 = vmatpush.xpose.msk.msrb.mxu3 %vm312_vm6, %v5579_v8  ;;  %v1998_v32 = vor.u32 1.1754944e-38, %v1997_v22 }
 0x359   :  { %v1989_v21 = vmul.f32 %v4571_v18, %v1988_v48 }
 0x35a   :  { %v1940_v58 = vadd.f32 %v1939_v55, %v1938_v42 }
 0x35b   :  { %v1990_v7 = vadd.f32 %v4571_v18, %v1989_v21 }
 0x35c   :  { %4572 = vrcp.f32 %v1940_v58  ;;  %v2057_v10 = vand.u32 2147483648, %v1940_v58  ;;  %vm2051_vm14 = vweird.f32 %v1940_v58 }
 0x35d   :  { %4397 = vmatmul.msk.f32.vlgmr.msra.gmra.mxu0 %vm312_vm6, %v5564_v60  ;;  %v1994_v23 = vsel %vm1993_vm10, %v4571_v18, %v1990_v7 }
 0x35e   :  { %2756 = vmatpush.msra.mxu0 %v5557_v57  ;;  %v1999_v12 = vsel %vm1996_vm11, %v1998_v32, %v1994_v23  ;;  %v2058_v44 = vor.u32 1.1754944e-38, %v2057_v10 }
 0x35f   :  { %v2000_v63 = vmul.f32 %v5592_v59, %v1999_v12  ;;  %4395 = vmatmul.msk.f32.vlgmr.msra.gmra.mxu3 %vm312_vm6, %v5564_v60  ;;  %v2055_v59 = vand.u32 2147483647, %v1940_v58 }
 0x360   :  { %2732 = vmatpush.msra.mxu3 %v5602_v36 }
 0x361   :  { %4389 = vmatmul.msk.f32.vlgmr.msra.gmra.mxu2 %vm312_vm6, %v2000_v63  ;;  %vm2056_vm8 = vcmp.eq.f32.partialorder %v2055_v59, 8.507059e+37 }
 0x362   :  { %4400 = vmatpush.xpose.msk.msra.mxu2 %vm312_vm6, %v5633_v29  ;;  %v4573_v37 = vpop.eup %4572 }
 0x363   :  { %v2047_v35 = vmul.f32 %v4573_v37, %v1940_v58  ;;  %vm2052_vm12 = vweird.f32 %v4573_v37 }
 0x364   :  { %vm2053_vm13 = vmor %vm2051_vm14, %vm2052_vm12 }
 0x365   :  { %4405 = vmatmul.msk.f32.vlgmr.msrb.gmra.mxu0 %vm312_vm6, %v5564_v60  ;;  %v2048_v57 = vsub.f32 1.0, %v2047_v35 }
 0x366   :  { %2852 = vmatpush.msrb.mxu0 %v2378_v41 }
 0x367   :  { %v2049_v30 = vmul.f32 %v4573_v37, %v2048_v57  ;;  %4403 = vmatmul.msk.f32.vlgmr.msrb.gmra.mxu3 %vm312_vm6, %v5564_v60 }
 0x368   :  { %2828 = vmatpush.msrb.mxu3 %v5579_v8 }
 0x369   :  { %v2050_v19 = vadd.f32 %v4573_v37, %v2049_v30 }
 0x36b   :  { %v2054_v36 = vsel %vm2053_vm13, %v4573_v37, %v2050_v19 }
 0x36c   :  { %v2059_v14 = vsel %vm2056_vm8, %v2058_v44, %v2054_v36 }
 0x36d   :  { %v2060_v62 = vmul.f32 %v5646_v6, %v2059_v14 }
 0x36f   :  { %4393 = vmatmul.msk.f32.vlgmr.msrb.gmra.mxu2 %vm312_vm6, %v2060_v62 }
 0x370   :  { %4408 = vmatpush.xpose.msk.msrb.mxu2 %vm312_vm6, %v2426_v28 }
 0x377   :  { %4401 = vmatmul.msk.f32.vlgmr.msra.gmra.mxu2 %vm312_vm6, %v5564_v60 }
 0x378   :  { %2804 = vmatpush.msra.mxu2 %v5633_v29 }
 0x37f   :  { %4409 = vmatmul.msk.f32.vlgmr.msrb.gmra.mxu2 %vm312_vm6, %v5564_v60 }
 0x380   :  { %2900 = vmatpush.msrb.mxu2 %v2426_v28 }
 0x3bc   :  { %v2130_v8 = vpop.f32.mrf.mxu1 }
 0x3bd   :  { %2949 = vrot.lane.b32.xlu1 %v2130_v8, %s4867_s10 }
 0x3c4   :  { %v5687_v40 = vpop.f32.mrf.mxu1 }
 0x3c9   :  { %v2106_v26 = vpop.f32.mrf.mxu0 }
 0x3ca   :  { %2947 = vrot.lane.b32.xlu1 %v2106_v26, %s4867_s10 }
 0x3cc   :  { %v2326_v6 = vpop.f32.mrf.mxu1 }
 0x3cd   :  { %v2451_v1 = vmul.f32 0.35355338, %v2326_v6 }
 0x3cf   :  { %v2471_v51 = vsel %vm508_vm7, %v2451_v1, -inf }
 0x3d0   :  { %v2472_v34 = vrot.slane %v2471_v51, 4 }
 0x3d1   :  { %v2082_v29 = vpop.f32.mrf.mxu3 }
 0x3d2   :  { %v2473_v2 = vmax.f32 %v2471_v51, %v2472_v34  ;;  %2945 = vrot.lane.b32.xlu1 %v2082_v29, %s4867_s10  ;;  %v5692_v60 = vpop.f32.mrf.mxu0 }
 0x3d4   :  { %v2474_v0 = vrot.slane %v2473_v2, 2  ;;  %v2422_v54 = vpop.f32.mrf.mxu1 }
 0x3d5   :  { %v2455_v56 = vmul.f32 0.35355338, %v2422_v54 }
 0x3d6   :  { %v2475_v33 = vmax.f32 %v2473_v2, %v2474_v0 }
 0x3d7   :  { %v2499_v25 = vsel %vm508_vm7, %v2455_v56, -inf }
 0x3d8   :  { %v2476_v3 = vrot.slane %v2475_v33, 1  ;;  %v2500_v39 = vrot.slane %v2499_v25, 4 }
 0x3da   :  { %v2477_v18 = vmax.f32 %v2475_v33, %v2476_v3  ;;  %v2501_v41 = vmax.f32 %v2499_v25, %v2500_v39  ;;  %v2302_v11 = vpop.f32.mrf.mxu0  ;;  %v2178_v22 = vpop.f32.mrf.mxu3 }
 0x3db   :  { %v2450_v43 = vmul.f32 0.35355338, %v2302_v11 }
 0x3dc   :  { %v2515_v49 = vsub.f32 %v2451_v1, %v2477_v18  ;;  %v2502_v52 = vrot.slane %v2501_v41, 2 }
 0x3dd   :  { %v2464_v48 = vsel %vm508_vm7, %v2450_v43, -inf }
 0x3de   :  { %v2525_v16 = vmul.f32 1.442695, %v2515_v49  ;;  %v2503_v17 = vmax.f32 %v2501_v41, %v2502_v52  ;;  %v2465_v42 = vrot.slane %v2464_v48, 4 }
 0x3e0   :  { %4574 = vpow2.f32 %v2525_v16  ;;  %v2504_v50 = vrot.slane %v2503_v17, 1  ;;  %v2466_v21 = vmax.f32 %v2464_v48, %v2465_v42 }
 0x3e2   :  { %v2505_v61 = vmax.f32 %v2503_v17, %v2504_v50  ;;  %v2467_v55 = vrot.slane %v2466_v21, 2  ;;  %v2398_v58 = vpop.f32.mrf.mxu0  ;;  %v2278_v19 = vpop.f32.mrf.mxu3 }
 0x3e3   :  { %v2454_v32 = vmul.f32 0.35355338, %v2398_v58  ;;  %v2449_v44 = vmul.f32 0.35355338, %v2278_v19 }
 0x3e4   :  { %v2519_v7 = vsub.f32 %v2455_v56, %v2505_v61  ;;  %v2468_v12 = vmax.f32 %v2466_v21, %v2467_v55  ;;  %v2154_v35 = vpop.f32.mrf.mxu2 }
 0x3e5   :  { %v2492_v57 = vsel %vm508_vm7, %v2454_v32, -inf  ;;  %2951 = vrot.lane.b32.xlu1 %v2154_v35, %s4867_s10  ;;  %v2457_v28 = vsel %vm508_vm7, %v2449_v44, -inf }
 0x3e6   :  { %v5696_v23 = vpop.eup %4574  ;;  %v2533_v63 = vmul.f32 1.442695, %v2519_v7  ;;  %v2469_v30 = vrot.slane %v2468_v12, 1  ;;  %v2493_v59 = vrot.slane %v2492_v57, 4  ;;  %v2458_v1 = vrot.slane %v2457_v28, 4 }
 0x3e7   :  { %v2551_v37 = vsel %vm508_vm7, %v5696_v23, 0.0 }
 0x3e8   :  { %v2552_v10 = vrot.slane %v2551_v37, 4  ;;  %4576 = vpow2.f32 %v2533_v63  ;;  %v2470_v14 = vmax.f32 %v2468_v12, %v2469_v30  ;;  %v2494_v62 = vmax.f32 %v2492_v57, %v2493_v59 }
 0x3e9   :  { %v2459_v0 = vmax.f32 %v2457_v28, %v2458_v1 }
 0x3ea   :  { %v2553_v36 = vadd.f32 %v2552_v10, %v2551_v37  ;;  %v2514_v26 = vsub.f32 %v2450_v43, %v2470_v14  ;;  %v2495_v6 = vrot.slane %v2494_v62, 2  ;;  %v2374_v3 = vpop.f32.mrf.mxu3 }
 0x3eb   :  { %v2460_v39 = vrot.slane %v2459_v0, 2  ;;  %v5708_v18 = vmul.f32 0.35355338, %v2374_v3 }
 0x3ec   :  { %v2554_v8 = vrot.slane %v2553_v36, 2  ;;  %v2523_v2 = vmul.f32 1.442695, %v2514_v26  ;;  %v2496_v29 = vmax.f32 %v2494_v62, %v2495_v6 }
 0x3ed   :  { %2953 = vrot.lane.b32.xlu1 %v2178_v22, %s4867_s10  ;;  %v2461_v52 = vmax.f32 %v2459_v0, %v2460_v39  ;;  %v2485_v43 = vsel %vm508_vm7, %v5708_v18, -inf }
 0x3ee   :  { %v5703_v51 = vpop.eup %4576  ;;  %v2555_v34 = vadd.f32 %v2554_v8, %v2553_v36  ;;  %4578 = vpow2.f32 %v2523_v2  ;;  %v2497_v25 = vrot.slane %v2496_v29, 1  ;;  %v2486_v42 = vrot.slane %v2485_v43, 4 }
 0x3ef   :  { %v2579_v54 = vsel %vm508_vm7, %v5703_v51, 0.0  ;;  %v2462_v48 = vrot.slane %v2461_v52, 1 }
 0x3f0   :  { %v2556_v56 = vrot.slane %v2555_v34, 1  ;;  %v2580_v33 = vrot.slane %v2579_v54, 4  ;;  %v2498_v11 = vmax.f32 %v2496_v29, %v2497_v25  ;;  %v2487_v12 = vmax.f32 %v2485_v43, %v2486_v42 }
 0x3f1   :  { %v2463_v7 = vmax.f32 %v2461_v52, %v2462_v48 }
 0x3f2   :  { %v2557_v41 = vadd.f32 %v2556_v56, %v2555_v34  ;;  %v2581_v49 = vadd.f32 %v2580_v33, %v2579_v54  ;;  %v2518_v17 = vsub.f32 %v2454_v32, %v2498_v11  ;;  %v5714_v21 = vpop.f32.mrf.mxu2  ;;  %v2488_v57 = vrot.slane %v2487_v12, 2 }
 0x3f3   :  { %v2513_v32 = vsub.f32 %v2449_v44, %v2463_v7 }
 0x3f4   :  { %4580 = vrcp.f32 %v2557_v41  ;;  %v2582_v16 = vrot.slane %v2581_v49, 2  ;;  %v5712_v50 = vpop.eup %4578  ;;  %v2531_v55 = vmul.f32 1.442695, %v2518_v17  ;;  %v2489_v36 = vmax.f32 %v2487_v12, %v2488_v57 }
 0x3f5   :  { %v2544_v22 = vsel %vm508_vm7, %v5712_v50, 0.0  ;;  %2955 = vrot.lane.b32.xlu1 %v5692_v60, %s4867_s10  ;;  %v2521_v59 = vmul.f32 1.442695, %v2513_v32  ;;  %v2634_v62 = vand.u32 2147483648, %v2557_v41  ;;  %v2632_v6 = vand.u32 2147483647, %v2557_v41 }
 0x3f6   :  { %v2583_v61 = vadd.f32 %v2582_v16, %v2581_v49  ;;  %v2545_v58 = vrot.slane %v2544_v22, 4  ;;  %4582 = vpow2.f32 %v2531_v55  ;;  %v2490_v8 = vrot.slane %v2489_v36, 1 }
 0x3f7   :  { %vm2628_vm9 = vweird.f32 %v2557_v41  ;;  %v2635_v33 = vor.u32 1.1754944e-38, %v2634_v62  ;;  %vm2633_vm11 = vcmp.eq.f32.partialorder %v2632_v6, 8.507059e+37 }
 0x3f8   :  { %v2584_v63 = vrot.slane %v2583_v61, 1  ;;  %v2546_v35 = vadd.f32 %v2545_v58, %v2544_v22  ;;  %v2491_v29 = vmax.f32 %v2489_v36, %v2490_v8 }
 0x3fa   :  { %v4581_v37 = vpop.eup %4580  ;;  %v5720_v30 = vadd.f32 %v2584_v63, %v2583_v61  ;;  %v2547_v19 = vrot.slane %v2546_v35, 2  ;;  %v2350_v60 = vpop.f32.mrf.mxu2  ;;  %v2517_v3 = vsub.f32 %v5708_v18, %v2491_v29 }
 0x3fb   :  { %v2624_v10 = vmul.f32 %v4581_v37, %v2557_v41  ;;  %vm2629_vm15 = vweird.f32 %v4581_v37  ;;  %v5725_v1 = vmul.f32 0.35355338, %v2350_v60 }
 0x3fc   :  { %4584 = vrcp.f32 %v5720_v30  ;;  %v2548_v28 = vadd.f32 %v2547_v19, %v2546_v35  ;;  %v5723_v26 = vpop.eup %4582  ;;  %vm2630_vm10 = vmor %vm2628_vm9, %vm2629_vm15  ;;  %v2529_v42 = vmul.f32 1.442695, %v2517_v3  ;;  %v2692_v61 = vand.u32 2147483647, %v5720_v30 }
 0x3fd   :  { %v2625_v14 = vsub.f32 1.0, %v2624_v10  ;;  %4586 = vpow2.f32 %v2521_v59  ;;  %v2572_v2 = vsel %vm508_vm7, %v5723_v26, 0.0  ;;  %2957 = vrot.lane.b32.xlu1 %v5687_v40, %s4867_s10  ;;  %v2478_v56 = vsel %vm508_vm7, %v5725_v1, -inf }
 0x3fe   :  { %v2549_v34 = vrot.slane %v2548_v28, 1  ;;  %v2573_v54 = vrot.slane %v2572_v2, 4  ;;  %v2479_v52 = vrot.slane %v2478_v56, 4  ;;  %v2694_v58 = vand.u32 2147483648, %v5720_v30 }
 0x3ff   :  { %v2626_v44 = vmul.f32 %v4581_v37, %v2625_v14  ;;  %vm2688_vm14 = vweird.f32 %v5720_v30  ;;  %vm2693_vm8 = vcmp.eq.f32.partialorder %v2692_v61, 8.507059e+37 }
 0x400   :  { %v5733_v25 = vadd.f32 %v2549_v34, %v2548_v28  ;;  %v2574_v11 = vadd.f32 %v2573_v54, %v2572_v2  ;;  %v2480_v7 = vmax.f32 %v2478_v56, %v2479_v52  ;;  %v2695_v14 = vor.u32 1.1754944e-38, %v2694_v58 }
 0x401   :  { %v2627_v0 = vadd.f32 %v4581_v37, %v2626_v44 }
 0x402   :  { %v4585_v39 = vpop.eup %4584  ;;  %4588 = vrcp.f32 %v5733_v25  ;;  %v2575_v17 = vrot.slane %v2574_v11, 2  ;;  %v2446_v18 = vpop.f32.mrf.mxu2  ;;  %v2617_v34 = vand.u32 2147483647, %v5733_v25  ;;  %v2619_v2 = vand.u32 2147483648, %v5733_v25 }
 0x403   :  { %v2631_v49 = vsel %vm2630_vm10, %v4581_v37, %v2627_v0  ;;  %v5736_v43 = vpop.eup %4586  ;;  %v2684_v16 = vmul.f32 %v4585_v39, %v5720_v30  ;;  %4590 = vpow2.f32 %v2529_v42  ;;  %vm2689_vm12 = vweird.f32 %v4585_v39 }
 0x404   :  { %v2636_v40 = vsel %vm2633_vm11, %v2635_v33, %v2631_v49  ;;  %v2537_v48 = vsel %vm508_vm7, %v5736_v43, 0.0  ;;  %v2576_v12 = vadd.f32 %v2575_v17, %v2574_v11  ;;  %v2481_v37 = vrot.slane %v2480_v7, 2  ;;  %vm2690_vm13 = vmor %vm2688_vm14, %vm2689_vm12 }
 0x405   :  { %v2637_v41 = vmul.f32 %v5696_v23, %v2636_v40  ;;  %v2685_v22 = vsub.f32 1.0, %v2684_v16  ;;  %v2538_v55 = vrot.slane %v2537_v48, 4  ;;  %v5746_v23 = vmul.f32 0.35355338, %v2446_v18  ;;  %2959 = vrot.lane.b32.xlu1 %v5714_v21, %s4867_s10 }
 0x406   :  { %v2577_v57 = vrot.slane %v2576_v12, 1  ;;  %v2482_v28 = vmax.f32 %v2480_v7, %v2481_v37  ;;  %vm2613_vm9 = vweird.f32 %v5733_v25  ;;  %v2620_v52 = vor.u32 1.1754944e-38, %v2619_v2 }
 0x407   :  { %4412 = vmatmul.msk.f32.vlgmr.msra.gmra.mxu1 %vm312_vm6, %v2637_v41  ;;  %v2686_v63 = vmul.f32 %v4585_v39, %v2685_v22  ;;  %v2539_v32 = vadd.f32 %v2538_v55, %v2537_v48  ;;  %v2506_v10 = vsel %vm508_vm7, %v5746_v23, -inf  ;;  %vm2618_vm11 = vcmp.eq.f32.partialorder %v2617_v34, 8.507059e+37 }
 0x408   :  { %v4589_v35 = vpop.eup %4588  ;;  %v2578_v62 = vadd.f32 %v2577_v57, %v2576_v12  ;;  %v2507_v21 = vrot.slane %v2506_v10, 4  ;;  %v2483_v33 = vrot.slane %v2482_v28, 1 }
 0x409   :  { %v2609_v59 = vmul.f32 %v4589_v35, %v5733_v25  ;;  %v2687_v19 = vadd.f32 %v4585_v39, %v2686_v63  ;;  %v2540_v36 = vrot.slane %v2539_v32, 2  ;;  %v5754_v6 = vpop.eup %4590  ;;  %vm2614_vm15 = vweird.f32 %v4589_v35 }
 0x40a   :  { %4592 = vrcp.f32 %v2578_v62  ;;  %v2565_v56 = vsel %vm508_vm7, %v5754_v6, 0.0  ;;  %v2508_v3 = vmax.f32 %v2506_v10, %v2507_v21  ;;  %vm2615_vm10 = vmor %vm2613_vm9, %vm2614_vm15  ;;  %v2484_v40 = vmax.f32 %v2482_v28, %v2483_v33 }
 0x40b   :  { %v2610_v8 = vsub.f32 1.0, %v2609_v59  ;;  %v2691_v60 = vsel %vm2690_vm13, %v4585_v39, %v2687_v19  ;;  %v2541_v44 = vadd.f32 %v2540_v36, %v2539_v32  ;;  %v2566_v11 = vrot.slane %v2565_v56, 4 }
 0x40c   :  { %v2696_v29 = vsel %vm2693_vm8, %v2695_v14, %v2691_v60  ;;  %v2509_v41 = vrot.slane %v2508_v3, 2  ;;  %v2516_v42 = vsub.f32 %v5725_v1, %v2484_v40  ;;  %v2679_v58 = vand.u32 2147483648, %v2578_v62 }
 0x40d   :  { %v2611_v0 = vmul.f32 %v4589_v35, %v2610_v8  ;;  %v2697_v30 = vmul.f32 %v5703_v51, %v2696_v29  ;;  %v2542_v54 = vrot.slane %v2541_v44, 1  ;;  %v2567_v48 = vadd.f32 %v2566_v11, %v2565_v56 }
 0x40e   :  { %v2527_v61 = vmul.f32 1.442695, %v2516_v42  ;;  %v2510_v55 = vmax.f32 %v2508_v3, %v2509_v41  ;;  %vm2673_vm14 = vweird.f32 %v2578_v62 }
 0x40f   :  { %v2612_v39 = vadd.f32 %v4589_v35, %v2611_v0  ;;  %v2543_v49 = vadd.f32 %v2542_v54, %v2541_v44  ;;  %4416 = vmatmul.msk.f32.vlgmr.msrb.gmra.mxu1 %vm312_vm6, %v2697_v30  ;;  %v2568_v25 = vrot.slane %v2567_v48, 2 }
 0x410   :  { %v4593_v51 = vpop.eup %4592  ;;  %v2511_v63 = vrot.slane %v2510_v55, 1 }
 0x411   :  { %v2616_v16 = vsel %vm2615_vm10, %v4589_v35, %v2612_v39  ;;  %4594 = vrcp.f32 %v2543_v49  ;;  %v2669_v22 = vmul.f32 %v4593_v51, %v2578_v62  ;;  %v2569_v12 = vadd.f32 %v2568_v25, %v2567_v48 }
 0x412   :  { %v2621_v17 = vsel %vm2618_vm11, %v2620_v52, %v2616_v16  ;;  %4596 = vpow2.f32 %v2527_v61  ;;  %vm2674_vm12 = vweird.f32 %v4593_v51  ;;  %v2677_v35 = vand.u32 2147483647, %v2578_v62 }
 0x413   :  { %v2622_v18 = vmul.f32 %v5712_v50, %v2621_v17  ;;  %v2670_v7 = vsub.f32 1.0, %v2669_v22  ;;  %v2570_v10 = vrot.slane %v2569_v12, 1  ;;  %v2512_v1 = vmax.f32 %v2510_v55, %v2511_v63  ;;  %vm2675_vm13 = vmor %vm2673_vm14, %vm2674_vm12 }
 0x414   :  { %v2680_v50 = vor.u32 1.1754944e-38, %v2679_v58  ;;  %vm2678_vm8 = vcmp.eq.f32.partialorder %v2677_v35, 8.507059e+37  ;;  %v2602_v21 = vand.u32 2147483647, %v2543_v49  ;;  %v2604_v8 = vand.u32 2147483648, %v2543_v49 }
 0x415   :  { %4411 = vmatmul.msk.f32.vlgmr.msra.gmra.mxu0 %vm312_vm6, %v2622_v18  ;;  %v2671_v37 = vmul.f32 %v4593_v51, %v2670_v7  ;;  %v2571_v36 = vadd.f32 %v2570_v10, %v2569_v12  ;;  %v2520_v14 = vsub.f32 %v5746_v23, %v2512_v1  ;;  %vm2598_vm9 = vweird.f32 %v2543_v49 }
 0x416   :  { %v2605_v23 = vor.u32 1.1754944e-38, %v2604_v8  ;;  %vm2603_vm11 = vcmp.eq.f32.partialorder %v2602_v21, 8.507059e+37 }
 0x417   :  { %v4595_v32 = vpop.eup %4594  ;;  %v2672_v59 = vadd.f32 %v4593_v51, %v2671_v37  ;;  %4598 = vrcp.f32 %v2571_v36  ;;  %v2535_v30 = vmul.f32 1.442695, %v2520_v14  ;;  %v2664_v41 = vand.u32 2147483648, %v2571_v36 }
 0x418   :  { %v2594_v57 = vmul.f32 %v4595_v32, %v2543_v49  ;;  %v5767_v60 = vpop.eup %4596  ;;  %vm2599_vm15 = vweird.f32 %v4595_v32  ;;  %v2662_v17 = vand.u32 2147483647, %v2571_v36  ;;  %vm2658_vm14 = vweird.f32 %v2571_v36 }
 0x419   :  { %v2676_v28 = vsel %vm2675_vm13, %v4593_v51, %v2672_v59  ;;  %v2558_v62 = vsel %vm508_vm7, %v5767_v60, 0.0  ;;  %vm2600_vm10 = vmor %vm2598_vm9, %vm2599_vm15  ;;  %4600 = vpow2.f32 %v2535_v30 }
 0x41a   :  { %v2595_v19 = vsub.f32 1.0, %v2594_v57  ;;  %v2681_v44 = vsel %vm2678_vm8, %v2680_v50, %v2676_v28  ;;  %v2559_v0 = vrot.slane %v2558_v62, 4  ;;  %vm2663_vm8 = vcmp.eq.f32.partialorder %v2662_v17, 8.507059e+37 }
 0x41b   :  { %v2682_v2 = vmul.f32 %v5723_v26, %v2681_v44 }
 0x41c   :  { %v2596_v34 = vmul.f32 %v4595_v32, %v2595_v19  ;;  %v2560_v56 = vadd.f32 %v2559_v0, %v2558_v62 }
 0x41d   :  { %4415 = vmatmul.msk.f32.vlgmr.msrb.gmra.mxu0 %vm312_vm6, %v2682_v2  ;;  %v4599_v3 = vpop.eup %4598 }
 0x41e   :  { %v2597_v29 = vadd.f32 %v4595_v32, %v2596_v34  ;;  %v2561_v26 = vrot.slane %v2560_v56, 2  ;;  %v2654_v11 = vmul.f32 %v4599_v3, %v2571_v36  ;;  %vm2659_vm12 = vweird.f32 %v4599_v3 }
 0x41f   :  { %v4601_v40 = vpop.eup %4600  ;;  %vm2660_vm13 = vmor %vm2658_vm14, %vm2659_vm12 }
 0x420   :  { %v2601_v54 = vsel %vm2600_vm10, %v4595_v32, %v2597_v29  ;;  %v2562_v52 = vadd.f32 %v2561_v26, %v2560_v56  ;;  %v2655_v49 = vsub.f32 1.0, %v2654_v11  ;;  %v2586_v48 = vsel %vm508_vm7, %v4601_v40, 0.0  ;;  %v2916_v11 = vpop.permute.xlu2 %2915 }
 0x421   :  { %v2606_v33 = vsel %vm2603_vm11, %v2605_v23, %v2601_v54  ;;  %v2587_v18 = vrot.slane %v2586_v48, 4 }
 0x422   :  { %v2607_v39 = vmul.f32 %v5736_v43, %v2606_v33  ;;  %v2563_v16 = vrot.slane %v2562_v52, 1  ;;  %v2656_v51 = vmul.f32 %v4599_v3, %v2655_v49  ;;  %v2665_v43 = vor.u32 1.1754944e-38, %v2664_v41 }
 0x423   :  { %v2588_v61 = vadd.f32 %v2587_v18, %v2586_v48 }
 0x424   :  { %4410 = vmatmul.msk.f32.vlgmr.msra.gmra.mxu3 %vm312_vm6, %v2607_v39  ;;  %v2564_v42 = vadd.f32 %v2563_v16, %v2562_v52  ;;  %v2657_v22 = vadd.f32 %v4599_v3, %v2656_v51  ;;  %v3002_v51 = vsel %vm312_vm6, %v5330_v20, %v2916_v11 }
 0x425   :  { %v2589_v58 = vrot.slane %v2588_v61, 2 }
 0x426   :  { %4602 = vrcp.f32 %v2564_v42  ;;  %v2661_v25 = vsel %vm2660_vm13, %v4599_v3, %v2657_v22  ;;  %v2649_v10 = vand.u32 2147483648, %v2564_v42  ;;  %v2647_v59 = vand.u32 2147483647, %v2564_v42 }
 0x427   :  { %v2666_v55 = vsel %vm2663_vm8, %v2665_v43, %v2661_v25  ;;  %v2590_v12 = vadd.f32 %v2589_v58, %v2588_v61  ;;  %vm2643_vm15 = vweird.f32 %v2564_v42  ;;  %vm3009_vm8 = vcmask 130048   ;;  %v3056_v43 = vld [vmem:[%s6407_s2 + $0x18] sm:$0xff]  ;;  %v3055_v25 = vld [vmem:[%s6407_s2 + $0x10] sm:$0xff] }
 0x428   :  { %v2667_v7 = vmul.f32 %v5754_v6, %v2666_v55  ;;  %v2650_v19 = vor.u32 1.1754944e-38, %v2649_v10  ;;  %vm2648_vm10 = vcmp.eq.f32.partialorder %v2647_v59, 8.507059e+37  ;;  %3122 = vmatpush.msra.mxu3 %v3056_v43  ;;  %v3054_v55 = vld [vmem:[%s6407_s2 + $0x8] sm:$0xff] }
 0x429   :  { %v2591_v37 = vrot.slane %v2590_v12, 1 }
 0x42a   :  { %3123 = vmatpush.msra.mxu3 %v3055_v25  ;;  %v4464_v25 = vld [vmem:[%s6408_s9] ss:$0 sm:$0xff] }
 0x42b   :  { %v2592_v57 = vadd.f32 %v2591_v37, %v2590_v12 }
 0x42c   :  { %4414 = vmatmul.msk.f32.vlgmr.msrb.gmra.mxu3 %vm312_vm6, %v2667_v7  ;;  %v4603_v63 = vpop.eup %4602  ;;  %v3053_v7 = vld [vmem:[%s6407_s2] sm:$0xff] }
 0x42d   :  { %v2639_v32 = vmul.f32 %v4603_v63, %v2564_v42  ;;  %vm2644_vm7 = vweird.f32 %v4603_v63  ;;  %4604 = vrcp.f32 %v2592_v57  ;;  %v2709_v44 = vand.u32 2147483648, %v2592_v57  ;;  %3124 = vmatpush.msra.mxu3 %v3054_v55 }
 0x42e   :  { %vm2645_vm9 = vmor %vm2643_vm15, %vm2644_vm7  ;;  %v2707_v2 = vand.u32 2147483647, %v2592_v57  ;;  %vm2703_vm12 = vweird.f32 %v2592_v57  ;;  %vm3018_vm7 = vcmask 195584  }
 0x42f   :  { %v2640_v35 = vsub.f32 1.0, %v2639_v32  ;;  %v2710_v29 = vor.u32 1.1754944e-38, %v2709_v44  ;;  %3125 = vmatpush.msra.mxu3 %v3053_v7 }
 0x430   :  { %vm2708_vm13 = vcmp.eq.f32.partialorder %v2707_v2, 8.507059e+37 }
 0x431   :  { %v2641_v1 = vmul.f32 %v4603_v63, %v2640_v35 }
 0x433   :  { %v2642_v50 = vadd.f32 %v4603_v63, %v2641_v1  ;;  %v4605_v14 = vpop.eup %4604 }
 0x434   :  { %v2699_v21 = vmul.f32 %v4605_v14, %v2592_v57  ;;  %vm2704_vm11 = vweird.f32 %v4605_v14 }
 0x435   :  { %v2646_v36 = vsel %vm2645_vm9, %v4603_v63, %v2642_v50  ;;  %vm2705_vm14 = vmor %vm2703_vm12, %vm2704_vm11 }
 0x436   :  { %v2651_v6 = vsel %vm2648_vm10, %v2650_v19, %v2646_v36  ;;  %v2700_v8 = vsub.f32 1.0, %v2699_v21 }
 0x437   :  { %v2652_v28 = vmul.f32 %v5767_v60, %v2651_v6 }
 0x438   :  { %v2701_v34 = vmul.f32 %v4605_v14, %v2700_v8 }
 0x439   :  { %4413 = vmatmul.msk.f32.vlgmr.msra.gmra.mxu2 %vm312_vm6, %v2652_v28 }
 0x43a   :  { %v2702_v62 = vadd.f32 %v4605_v14, %v2701_v34 }
 0x43c   :  { %v2706_v0 = vsel %vm2705_vm14, %v4605_v14, %v2702_v62 }
 0x43d   :  { %v2711_v30 = vsel %vm2708_vm13, %v2710_v29, %v2706_v0 }
 0x43e   :  { %v2712_v23 = vmul.f32 %v4601_v40, %v2711_v30 }
 0x441   :  { %4417 = vmatmul.msk.f32.vlgmr.msrb.gmra.mxu2 %vm312_vm6, %v2712_v23 }
 0x484   :  { %v2782_v54 = vpop.f32.mrf.mxu1 }
 0x485   :  { %2981 = vrot.lane.b32.xlu2 %v2782_v54, %s4868_s6 }
 0x48c   :  { %v2878_v26 = vpop.f32.mrf.mxu1 }
 0x492   :  { %v2758_v60 = vpop.f32.mrf.mxu0 }
 0x493   :  { %2979 = vrot.lane.b32.xlu2 %v2758_v60, %s4868_s6 }
 0x49a   :  { %v2854_v39 = vpop.f32.mrf.mxu0 }
 0x49b   :  { %2923 = vrot.lane.b32.xlu2 %v5516_v15, %s4866_s26  ;;  %v2914_v15 = vpop.permute.xlu0 %2913 }
 0x49c   :  { %v3001_v12 = vsel %vm312_vm6, %v5328_v4, %v2914_v15 }
 0x4a3   :  { %v2918_v52 = vpop.permute.xlu0 %2917 }
 0x4a4   :  { %v3003_v49 = vsel %vm312_vm6, %v5324_v53, %v2918_v52 }
 0x4a7   :  { %v2734_v56 = vpop.f32.mrf.mxu3 }
 0x4a8   :  { %2977 = vrot.lane.b32.xlu0 %v2734_v56, %s4868_s6 }
 0x4af   :  { %v2830_v33 = vpop.f32.mrf.mxu3 }
 0x4b0   :  { %2919 = vrot.lane.b32.xlu0 %v5521_v5, %s4866_s26 }
 0x4b8   :  { %2921 = vrot.lane.b32.xlu0 %v5518_v27, %s4866_s26  ;;  %v2950_v27 = vpop.permute.xlu1 %2949 }
 0x4b9   :  { %v3012_v40 = vsel %vm3009_vm8, %v3003_v49, %v2950_v27 }
 0x4bc   :  { %v2806_v3 = vpop.f32.mrf.mxu2 }
 0x4bd   :  { %2983 = vrot.lane.b32.xlu2 %v2806_v3, %s4868_s6 }
 0x4c0   :  { %2985 = vrot.lane.b32.xlu0 %v2830_v33, %s4868_s6 }
 0x4c4   :  { %v2902_v5 = vpop.f32.mrf.mxu2 }
 0x4c5   :  { %2987 = vrot.lane.b32.xlu2 %v2854_v39, %s4868_s6 }
 0x4c8   :  { %2925 = vrot.lane.b32.xlu0 %v5512_v46, %s4866_s26 }
 0x4cd   :  { %2989 = vrot.lane.b32.xlu2 %v2878_v26, %s4868_s6 }
 0x4d0   :  { %2927 = vrot.lane.b32.xlu0 %v5525_v13, %s4866_s26  ;;  %v2948_v13 = vpop.permute.xlu1 %2947 }
 0x4d1   :  { %v3011_v17 = vsel %vm3009_vm8, %v3002_v51, %v2948_v13 }
 0x4d5   :  { %2991 = vrot.lane.b32.xlu2 %v2902_v5, %s4868_s6 }
 0x4d8   :  { %v2946_v53 = vpop.permute.xlu1 %2945 }
 0x4d9   :  { %v3010_v63 = vsel %vm3009_vm8, %v3001_v12, %v2946_v53 }
 0x4df   :  { %v2982_v46 = vpop.permute.xlu2 %2981 }
 0x4e0   :  { %v3021_v41 = vsel %vm3018_vm7, %v3012_v40, %v2982_v46  ;;  %v2952_v20 = vpop.permute.xlu1 %2951 }
 0x4e1   :  { %v3041_v16 = vrot.slane %v3021_v41, 2  ;;  %3073 = vst [vmem:[#allocation1 + $0x22] ss:$4 sm:$0xff] %v3021_v41  ;;  %v3042_v21 = vrot.slane %v3021_v41, 4  ;;  %v4650_v41 = vld [vmem:[%s6391_s0] sm:$0x3f] }
 0x4e2   :  { %v3028_v51 = vrot.slane %v4650_v41, 4 }
 0x4e3   :  { %3075 = vst [vmem:[#allocation1 + $0x23] ss:$4 sm:$0xff] %v3041_v16  ;;  %v3027_v16 = vrot.slane %v4650_v41, 2 }
 0x4e8   :  { %v2954_v58 = vpop.permute.xlu1 %2953 }
 0x4ed   :  { %v2980_v48 = vpop.permute.xlu2 %2979 }
 0x4ee   :  { %v3020_v42 = vsel %vm3018_vm7, %v3011_v17, %v2980_v48 }
 0x4ef   :  { %v3039_v18 = vrot.slane %v3020_v42, 2  ;;  %v3040_v22 = vrot.slane %v3020_v42, 4  ;;  %3067 = vst [vmem:[#allocation1 + $0x3] ss:$4 sm:$0xff] %v3020_v42 }
 0x4f0   :  { %v2956_v59 = vpop.permute.xlu1 %2955 }
 0x4f1   :  { %3069 = vst [vmem:[#allocation1 + $0x20] ss:$4 sm:$0xff] %v3039_v18 }
 0x4f2   :  { %3071 = vst [vmem:[#allocation1 + $0x21] ss:$4 sm:$0xff] %v3040_v22 }
 0x4f5   :  { %v2924_v61 = vpop.permute.xlu2 %2923 }
 0x4f6   :  { %v3006_v1 = vsel %vm312_vm6, %v5326_v9, %v2924_v61 }
 0x4f7   :  { %v3015_v19 = vsel %vm3009_vm8, %v3006_v1, %v2956_v59 }
 0x4f9   :  { %v3077_v6 = vld.sshfl [vmem:[#allocation1 + $0x20] sm:$0xff pattern:$0x73625140] }
 0x517   :  { %v2984_v37 = vpop.permute.xlu2 %2983 }
 0x51a   :  { %v2978_v32 = vpop.permute.xlu0 %2977 }
 0x51b   :  { %v3019_v35 = vsel %vm3018_vm7, %v3010_v63, %v2978_v32 }
 0x51c   :  { %v3037_v57 = vrot.slane %v3019_v35, 2  ;;  %v3038_v10 = vrot.slane %v3019_v35, 4  ;;  %3061 = vst [vmem:[#allocation1] ss:$4 sm:$0xff] %v3019_v35 }
 0x51e   :  { %3063 = vst [vmem:[#allocation1 + $0x1] ss:$4 sm:$0xff] %v3037_v57 }
 0x51f   :  { %3065 = vst [vmem:[#allocation1 + $0x2] ss:$4 sm:$0xff] %v3038_v10  ;;  %v2988_v36 = vpop.permute.xlu2 %2987 }
 0x520   :  { %v3024_v14 = vsel %vm3018_vm7, %v3015_v19, %v2988_v36 }
 0x521   :  { %3085 = vst [vmem:[#allocation1 + $0x23] ss:$4 sm:$0xff] %v3024_v14  ;;  %v3048_v62 = vrot.slane %v3024_v14, 4  ;;  %v3047_v29 = vrot.slane %v3024_v14, 2 }
 0x522   :  { %v2920_v50 = vpop.permute.xlu0 %2919 }
 0x523   :  { %v3004_v4 = vsel %vm312_vm6, %v5332_v31, %v2920_v50 }
 0x524   :  { %v3013_v28 = vsel %vm3009_vm8, %v3004_v4, %v2952_v20 }
 0x525   :  { %v3022_v8 = vsel %vm3018_vm7, %v3013_v28, %v2984_v37 }
 0x526   :  { %v3076_v44 = vld.sshfl [vmem:[#allocation1] sm:$0xff pattern:$0x73625140]  ;;  %v3043_v34 = vrot.slane %v3022_v8, 2  ;;  %v3044_v9 = vrot.slane %v3022_v8, 4 }
 0x527   :  { %3078 = vst [vmem:[#allocation1] ss:$4 sm:$0xff] %v3042_v21  ;;  %4418 = vmatmul.msk.f32.vlgmr.msra.gmra.mxu3 %vm215_vm0, %v3076_v44  ;;  %v2990_v33 = vpop.permute.xlu2 %2989 }
 0x528   :  { %3079 = vst [vmem:[#allocation1 + $0x1] ss:$4 sm:$0xff] %v3022_v8 }
 0x529   :  { %3080 = vst [vmem:[#allocation1 + $0x2] ss:$4 sm:$0xff] %v3043_v34 }
 0x52a   :  { %3081 = vst [vmem:[#allocation1 + $0x3] ss:$4 sm:$0xff] %v3044_v9  ;;  %v2922_v2 = vpop.permute.xlu0 %2921 }
 0x52b   :  { %v3005_v31 = vsel %vm312_vm6, %v5335_v47, %v2922_v2  ;;  %v2958_v47 = vpop.permute.xlu1 %2957  ;;  %v4869_v2 = vmov 32.0  }
 0x52c   :  { %v3014_v23 = vsel %vm3009_vm8, %v3005_v31, %v2954_v58  ;;  %4606 = vrcp.f32 %v4869_v2 }
 0x52f   :  { %4419 = vmatmul.msk.f32.gmra.mxu3 %vm215_vm0, %v3077_v6  ;;  %v2992_v46 = vpop.permute.xlu2 %2991 }
 0x531   :  { %v3086_v0 = vld.sshfl [vmem:[#allocation1] sm:$0xff pattern:$0x73625140] }
 0x532   :  { %3089 = vst [vmem:[#allocation1 + $0x1] ss:$4 sm:$0xff] %v3048_v62  ;;  %v2986_v30 = vpop.permute.xlu0 %2985  ;;  %v4607_v31 = vpop.eup %4606 }
 0x533   :  { %3088 = vst [vmem:[#allocation1] ss:$4 sm:$0xff] %v3047_v29  ;;  %v3023_v54 = vsel %vm3018_vm7, %v3014_v23, %v2986_v30  ;;  %v2960_v49 = vpop.permute.xlu1 %2959  ;;  %v3213_v62 = vmul.f32 32.0, %v4607_v31 }
 0x534   :  { %v3045_v60 = vrot.slane %v3023_v54, 2  ;;  %v3046_v56 = vrot.slane %v3023_v54, 4  ;;  %3082 = vst [vmem:[#allocation1 + $0x20] ss:$4 sm:$0xff] %v3023_v54 }
 0x535   :  { %v3214_v29 = vsub.f32 1.0, %v3213_v62 }
 0x536   :  { %3083 = vst [vmem:[#allocation1 + $0x21] ss:$4 sm:$0xff] %v3045_v60 }
 0x537   :  { %3084 = vst [vmem:[#allocation1 + $0x22] ss:$4 sm:$0xff] %v3046_v56  ;;  %4420 = vmatmul.msk.f32.gmra.mxu3 %vm215_vm0, %v3086_v0  ;;  %v3215_v0 = vmul.f32 %v4607_v31, %v3214_v29 }
 0x539   :  { %v3216_v30 = vadd.f32 %v4607_v31, %v3215_v0 }
 0x53a   :  { %v2926_v3 = vpop.permute.xlu0 %2925 }
 0x53b   :  { %v3007_v39 = vsel %vm312_vm6, %v5337_v38, %v2926_v3 }
 0x53c   :  { %v3016_v26 = vsel %vm3009_vm8, %v3007_v39, %v2958_v47 }
 0x53d   :  { %v3025_v15 = vsel %vm3018_vm7, %v3016_v26, %v2990_v33 }
 0x53e   :  { %v3087_v11 = vld.sshfl [vmem:[#allocation1 + $0x20] sm:$0xff pattern:$0x73625140]  ;;  %v3049_v5 = vrot.slane %v3025_v15, 2  ;;  %v3050_v52 = vrot.slane %v3025_v15, 4 }
 0x53f   :  { %3090 = vst [vmem:[#allocation1 + $0x2] ss:$4 sm:$0xff] %v3025_v15  ;;  %4421 = vmatmul.msk.f32.gmra.mxu3 %vm215_vm0, %v3087_v11 }
 0x540   :  { %3091 = vst [vmem:[#allocation1 + $0x3] ss:$4 sm:$0xff] %v3049_v5 }
 0x541   :  { %3092 = vst [vmem:[#allocation1 + $0x20] ss:$4 sm:$0xff] %v3050_v52 }
 0x542   :  { %v2928_v27 = vpop.permute.xlu0 %2927 }
 0x543   :  { %v3008_v40 = vsel %vm312_vm6, %v5340_v45, %v2928_v27  ;;  %vm3217_vm6 = vweird.f32 %v4607_v31 }
 0x544   :  { %v3017_v38 = vsel %vm3009_vm8, %v3008_v40, %v2960_v49  ;;  %v5853_v23 = vsel %vm3217_vm6, %v4607_v31, %v3216_v30 }
 0x545   :  { %v3026_v13 = vsel %vm3018_vm7, %v3017_v38, %v2992_v46 }
 0x546   :  { %3093 = vst [vmem:[#allocation1 + $0x21] ss:$4 sm:$0xff] %v3026_v13  ;;  %v3051_v48 = vrot.slane %v3026_v13, 2  ;;  %v3052_v42 = vrot.slane %v3026_v13, 4 }
 0x547   :  { %v3096_v17 = vld.sshfl [vmem:[#allocation1] sm:$0xff pattern:$0x73625140] }
 0x548   :  { %3145 = vst [vmem:[#allocation1] ss:$4 sm:$0xff] %v4650_v41  ;;  %4422 = vmatmul.msk.f32.gmra.mxu3 %vm215_vm0, %v3096_v17 }
 0x549   :  { %3147 = vst [vmem:[#allocation1 + $0x1] ss:$4 sm:$0xff] %v3027_v16 }
 0x54a   :  { %3149 = vst [vmem:[#allocation1 + $0x2] ss:$4 sm:$0xff] %v3028_v51 }
 0x54b   :  { %3151 = vst [vmem:[#allocation1 + $0x3] ss:$4 sm:$0xff] %v4650_v41 }
 0x54c   :  { %3094 = vst [vmem:[#allocation1 + $0x22] ss:$4 sm:$0xff] %v3051_v48 }
 0x54d   :  { %3095 = vst [vmem:[#allocation1 + $0x23] ss:$4 sm:$0xff] %v3052_v42 }
 0x552   :  { %v3160_v45 = vld.sshfl [vmem:[#allocation1] sm:$0xff pattern:$0x73625140] }
 0x553   :  { %3162 = vst [vmem:[#allocation1] ss:$4 sm:$0xff] %v3028_v51 }
 0x554   :  { %3163 = vst [vmem:[#allocation1 + $0x1] ss:$4 sm:$0xff] %v4650_v41  ;;  %v3097_v18 = vld.sshfl [vmem:[#allocation1 + $0x20] sm:$0xff pattern:$0x73625140] }
 0x555   :  { %3164 = vst [vmem:[#allocation1 + $0x2] ss:$4 sm:$0xff] %v3027_v16  ;;  %4423 = vmatmul.msk.f32.gmra.mxu3 %vm215_vm0, %v3097_v18 }
 0x556   :  { %3165 = vst [vmem:[#allocation1 + $0x3] ss:$4 sm:$0xff] %v3028_v51 }
 0x557   :  { %3153 = vst [vmem:[#allocation1 + $0x20] ss:$4 sm:$0xff] %v3027_v16 }
 0x558   :  { %3155 = vst [vmem:[#allocation1 + $0x21] ss:$4 sm:$0xff] %v3028_v51 }
 0x559   :  { %3157 = vst [vmem:[#allocation1 + $0x22] ss:$4 sm:$0xff] %v4650_v41 }
 0x55a   :  { %3159 = vst [vmem:[#allocation1 + $0x23] ss:$4 sm:$0xff] %v3027_v16 }
 0x55d   :  { %v3170_v22 = vld.sshfl [vmem:[#allocation1] sm:$0xff pattern:$0x73625140] }
 0x55e   :  { %3174 = vst [vmem:[#allocation1 + $0x2] ss:$4 sm:$0xff] %v4650_v41 }
 0x55f   :  { %3175 = vst [vmem:[#allocation1 + $0x3] ss:$4 sm:$0xff] %v3027_v16 }
 0x560   :  { %3172 = vst [vmem:[#allocation1] ss:$4 sm:$0xff] %v3027_v16 }
 0x561   :  { %3173 = vst [vmem:[#allocation1 + $0x1] ss:$4 sm:$0xff] %v3028_v51  ;;  %v3161_v53 = vld.sshfl [vmem:[#allocation1 + $0x20] sm:$0xff pattern:$0x73625140] }
 0x562   :  { %3166 = vst [vmem:[#allocation1 + $0x20] ss:$4 sm:$0xff] %v4650_v41 }
 0x563   :  { %3167 = vst [vmem:[#allocation1 + $0x21] ss:$4 sm:$0xff] %v3027_v16 }
 0x564   :  { %3168 = vst [vmem:[#allocation1 + $0x22] ss:$4 sm:$0xff] %v3028_v51 }
 0x565   :  { %3169 = vst [vmem:[#allocation1 + $0x23] ss:$4 sm:$0xff] %v4650_v41 }
 0x568   :  { %v3180_v4 = vld.sshfl [vmem:[#allocation1] sm:$0xff pattern:$0x73625140] }
 0x56c   :  { %v3171_v43 = vld.sshfl [vmem:[#allocation1 + $0x20] sm:$0xff pattern:$0x73625140] }
 0x56d   :  { %3177 = vst [vmem:[#allocation1 + $0x21] ss:$4 sm:$0xff] %v4650_v41 }
 0x56e   :  { %3178 = vst [vmem:[#allocation1 + $0x22] ss:$4 sm:$0xff] %v3027_v16 }
 0x56f   :  { %3179 = vst [vmem:[#allocation1 + $0x23] ss:$4 sm:$0xff] %v3028_v51 }
 0x570   :  { %3176 = vst [vmem:[#allocation1 + $0x20] ss:$4 sm:$0xff] %v3028_v51 }
 0x577   :  { %v3181_v8 = vld.sshfl [vmem:[#allocation1 + $0x20] sm:$0xff pattern:$0x73625140] }
 0x5aa   :  { %v3127_v20 = vpop.f32.mrf.mxu3 }
 0x5ab   :  { %v3128_v61 = vadd.f32 %v4464_v25, %v3127_v20 }
 0x5ad   :  { %v3188_v55 = vadd.f32 %v3160_v45, %v3128_v61 }
 0x5af   :  { %v3194_v7 = vsel %vm215_vm0, %v3188_v55, 0.0 }
 0x5b0   :  { %3195 = vadd.xlane.f32.xlu0 %v3194_v7  ;;  %v3356_v7 = vld [vmem:[%s6409_s30 + $0x18] sm:$0xff] }
 0x5b1   :  { %3391 = vmatpush.msra.mxu0 %v3356_v7 }
 0x5b2   :  { %v3130_v58 = vpop.f32.mrf.mxu3 }
 0x5b3   :  { %v3131_v12 = vadd.f32 %v4464_v25, %v3130_v58  ;;  %v3355_v58 = vld [vmem:[%s6409_s30 + $0x10] sm:$0xff] }
 0x5b4   :  { %3392 = vmatpush.msra.mxu0 %v3355_v58 }
 0x5b5   :  { %v3189_v63 = vadd.f32 %v3161_v53, %v3131_v12 }
 0x5b7   :  { %v3197_v32 = vsel %vm215_vm0, %v3189_v63, 0.0 }
 0x5b8   :  { %3198 = vadd.xlane.f32.xlu1 %v3197_v32 }
 0x5ba   :  { %v3133_v37 = vpop.f32.mrf.mxu3 }
 0x5bb   :  { %v3134_v35 = vadd.f32 %v4464_v25, %v3133_v37 }
 0x5bd   :  { %v3190_v57 = vadd.f32 %v3170_v22, %v3134_v35  ;;  %v3354_v35 = vld [vmem:[%s6409_s30 + $0x8] sm:$0xff] }
 0x5be   :  { %3393 = vmatpush.msra.mxu0 %v3354_v35 }
 0x5bf   :  { %v3200_v10 = vsel %vm215_vm0, %v3190_v57, 0.0 }
 0x5c0   :  { %3201 = vadd.xlane.f32.xlu2 %v3200_v10  ;;  %v3353_v10 = vld [vmem:[%s6409_s30] sm:$0xff] }
 0x5c1   :  { %3394 = vmatpush.msra.mxu0 %v3353_v10 }
 0x5c2   :  { %v3136_v1 = vpop.f32.mrf.mxu3 }
 0x5c3   :  { %v3137_v59 = vadd.f32 %v4464_v25, %v3136_v1 }
 0x5c5   :  { %v3191_v50 = vadd.f32 %v3171_v43, %v3137_v59 }
 0x5c7   :  { %v3203_v19 = vsel %vm215_vm0, %v3191_v50, 0.0 }
 0x5c8   :  { %3204 = vadd.xlane.f32.xlu2 %v3203_v19 }
 0x5cb   :  { %v3139_v36 = vpop.f32.mrf.mxu3 }
 0x5cc   :  { %v3140_v6 = vadd.f32 %v4464_v25, %v3139_v36 }
 0x5ce   :  { %v3192_v14 = vadd.f32 %v3180_v4, %v3140_v6 }
 0x5d0   :  { %v3206_v28 = vsel %vm215_vm0, %v3192_v14, 0.0 }
 0x5d1   :  { %3207 = vadd.xlane.f32.xlu0 %v3206_v28 }
 0x5d8   :  { %v3142_v21 = vpop.f32.mrf.mxu3 }
 0x5d9   :  { %v3143_v44 = vadd.f32 %v4464_v25, %v3142_v21  ;;  %v5906_v21 = vld [vmem:[#allocation4] ss:$0 sm:$0xff] }
 0x5db   :  { %v3193_v34 = vadd.f32 %v3181_v8, %v3143_v44 }
 0x5dd   :  { %v3209_v9 = vsel %vm215_vm0, %v3193_v34, 0.0 }
 0x5de   :  { %3210 = vadd.xlane.f32.xlu1 %v3209_v9  ;;  %v5912_v9 = vld [vmem:[%s6410_s7] ss:$0 sm:$0xff] }
 0x623   :  { %v3196_v54 = vpop.xlane.xlu0 %3195 }
 0x624   :  { %v3219_v60 = vmul.f32 %v5853_v23, %v3196_v54 }
 0x626   :  { %v5856_v56 = vsub.f32 %v3188_v55, %v3219_v60 }
 0x628   :  { %v3231_v47 = vmul.f32 %v5856_v56, %v5856_v56 }
 0x62a   :  { %v3237_v33 = vsel %vm215_vm0, %v3231_v47, 0.0 }
 0x62b   :  { %v3199_v3 = vpop.xlane.xlu1 %3198  ;;  %3238 = vadd.xlane.f32.xlu2 %v3237_v33 }
 0x62c   :  { %v3220_v39 = vmul.f32 %v5853_v23, %v3199_v3 }
 0x62e   :  { %v5862_v26 = vsub.f32 %v3189_v63, %v3220_v39 }
 0x630   :  { %v3232_v15 = vmul.f32 %v5862_v26, %v5862_v26 }
 0x632   :  { %v3240_v11 = vsel %vm215_vm0, %v3232_v15, 0.0 }
 0x633   :  { %3241 = vadd.xlane.f32.xlu0 %v3240_v11  ;;  %v3202_v5 = vpop.xlane.xlu2 %3201 }
 0x634   :  { %v3221_v52 = vmul.f32 %v5853_v23, %v3202_v5 }
 0x636   :  { %v5868_v27 = vsub.f32 %v3190_v57, %v3221_v52 }
 0x638   :  { %v3233_v49 = vmul.f32 %v5868_v27, %v5868_v27 }
 0x63a   :  { %v3243_v40 = vsel %vm215_vm0, %v3233_v49, 0.0 }
 0x63b   :  { %3244 = vadd.xlane.f32.xlu1 %v3243_v40  ;;  %v3205_v46 = vpop.xlane.xlu2 %3204 }
 0x63c   :  { %v3222_v38 = vmul.f32 %v5853_v23, %v3205_v46 }
 0x63e   :  { %v5874_v41 = vsub.f32 %v3191_v50, %v3222_v38 }
 0x640   :  { %v3234_v16 = vmul.f32 %v5874_v41, %v5874_v41 }
 0x642   :  { %v3246_v13 = vsel %vm215_vm0, %v3234_v16, 0.0 }
 0x643   :  { %3247 = vadd.xlane.f32.xlu2 %v3246_v13 }
 0x644   :  { %v3208_v51 = vpop.xlane.xlu0 %3207 }
 0x645   :  { %v3223_v17 = vmul.f32 %v5853_v23, %v3208_v51 }
 0x647   :  { %v5880_v48 = vsub.f32 %v3192_v14, %v3223_v17 }
 0x649   :  { %v3235_v42 = vmul.f32 %v5880_v48, %v5880_v48 }
 0x64b   :  { %v3249_v45 = vsel %vm215_vm0, %v3235_v42, 0.0 }
 0x64c   :  { %3250 = vadd.xlane.f32.xlu0 %v3249_v45 }
 0x651   :  { %v3211_v18 = vpop.xlane.xlu1 %3210 }
 0x652   :  { %v3224_v22 = vmul.f32 %v5853_v23, %v3211_v18 }
 0x654   :  { %v5886_v53 = vsub.f32 %v3193_v34, %v3224_v22 }
 0x656   :  { %v3236_v43 = vmul.f32 %v5886_v53, %v5886_v53 }
 0x658   :  { %v3252_v25 = vsel %vm215_vm0, %v3236_v43, 0.0 }
 0x659   :  { %3253 = vadd.xlane.f32.xlu1 %v3252_v25 }
 0x69e   :  { %v3239_v20 = vpop.xlane.xlu2 %3238 }
 0x69f   :  { %v3255_v61 = vmul.f32 %v3239_v20, %v5853_v23 }
 0x6a1   :  { %v3261_v55 = vadd.f32 1e-12, %v3255_v61 }
 0x6a3   :  { %4608 = vrsqrt.f32 %v3261_v55  ;;  %vm3273_vm9 = vweird.f32 %v3261_v55 }
 0x6a6   :  { %v3242_v12 = vpop.xlane.xlu0 %3241 }
 0x6a7   :  { %v3256_v63 = vmul.f32 %v3242_v12, %v5853_v23 }
 0x6a9   :  { %v4609_v32 = vpop.eup %4608  ;;  %v3262_v37 = vadd.f32 1e-12, %v3256_v63 }
 0x6aa   :  { %v3268_v57 = vmul.f32 %v4609_v32, %v3261_v55  ;;  %vm3274_vm15 = vweird.f32 %v4609_v32 }
 0x6ab   :  { %4610 = vrsqrt.f32 %v3262_v37  ;;  %vm3275_vm10 = vmor %vm3273_vm9, %vm3274_vm15  ;;  %vm3283_vm12 = vweird.f32 %v3262_v37 }
 0x6ac   :  { %v3269_v1 = vmul.f32 %v4609_v32, %v3268_v57 }
 0x6ae   :  { %v3270_v59 = vmul.f32 0.5, %v3269_v1  ;;  %v3245_v50 = vpop.xlane.xlu1 %3244 }
 0x6af   :  { %v3257_v19 = vmul.f32 %v3245_v50, %v5853_v23 }
 0x6b0   :  { %v3271_v36 = vsub.f32 1.5, %v3270_v59 }
 0x6b1   :  { %v4611_v4 = vpop.eup %4610  ;;  %v3263_v6 = vadd.f32 1e-12, %v3257_v19 }
 0x6b2   :  { %v3272_v14 = vmul.f32 %v4609_v32, %v3271_v36  ;;  %v3278_v28 = vmul.f32 %v4611_v4, %v3262_v37  ;;  %vm3284_vm11 = vweird.f32 %v4611_v4 }
 0x6b3   :  { %4612 = vrsqrt.f32 %v3263_v6  ;;  %vm3285_vm14 = vmor %vm3283_vm12, %vm3284_vm11  ;;  %vm3293_vm8 = vweird.f32 %v3263_v6 }
 0x6b4   :  { %v3276_v8 = vsel %vm3275_vm10, %v4609_v32, %v3272_v14  ;;  %v3279_v44 = vmul.f32 %v4611_v4, %v3278_v28 }
 0x6b5   :  { %v3327_v34 = vmul.f32 %v3276_v8, %v5856_v56 }
 0x6b6   :  { %v3280_v2 = vmul.f32 0.5, %v3279_v44  ;;  %v3248_v31 = vpop.xlane.xlu2 %3247 }
 0x6b7   :  { %v3337_v62 = vmul.f32 %v5906_v21, %v3327_v34  ;;  %v3258_v29 = vmul.f32 %v3248_v31, %v5853_v23  ;;  %v5961_v34 = vld [vmem:[%s6411_s1] ss:$0 sm:$0xff] }
 0x6b8   :  { %v3281_v0 = vsub.f32 1.5, %v3280_v2 }
 0x6b9   :  { %v4613_v30 = vpop.eup %4612  ;;  %v3264_v54 = vadd.f32 1e-12, %v3258_v29  ;;  %v5917_v60 = vadd.f32 %v5912_v9, %v3337_v62 }
 0x6ba   :  { %v3282_v47 = vmul.f32 %v4611_v4, %v3281_v0  ;;  %v3288_v56 = vmul.f32 %v4613_v30, %v3263_v6  ;;  %vm3294_vm13 = vweird.f32 %v4613_v30 }
 0x6bb   :  { %4614 = vrsqrt.f32 %v3264_v54  ;;  %4424 = vmatmul.msk.f32.vlgmr.msra.gmra.mxu0 %vm215_vm0, %v5917_v60  ;;  %vm3295_vm7 = vmor %vm3293_vm8, %vm3294_vm13  ;;  %vm3303_vm15 = vweird.f32 %v3264_v54 }
 0x6bc   :  { %v3286_v33 = vsel %vm3285_vm14, %v4611_v4, %v3282_v47  ;;  %v3289_v3 = vmul.f32 %v4613_v30, %v3288_v56 }
 0x6bd   :  { %v3328_v39 = vmul.f32 %v3286_v33, %v5862_v26 }
 0x6be   :  { %v3290_v15 = vmul.f32 0.5, %v3289_v3 }
 0x6bf   :  { %v3251_v11 = vpop.xlane.xlu0 %3250  ;;  %v3338_v5 = vmul.f32 %v5906_v21, %v3328_v39 }
 0x6c0   :  { %v3291_v52 = vsub.f32 1.5, %v3290_v15  ;;  %v3259_v49 = vmul.f32 %v3251_v11, %v5853_v23 }
 0x6c1   :  { %v4615_v40 = vpop.eup %4614  ;;  %v5925_v46 = vadd.f32 %v5912_v9, %v3338_v5 }
 0x6c2   :  { %v3292_v38 = vmul.f32 %v4613_v30, %v3291_v52  ;;  %v3298_v16 = vmul.f32 %v4615_v40, %v3264_v54  ;;  %v3265_v13 = vadd.f32 1e-12, %v3259_v49  ;;  %vm3304_vm6 = vweird.f32 %v4615_v40 }
 0x6c3   :  { %4425 = vmatmul.msk.f32.gmra.mxu0 %vm215_vm0, %v5925_v46  ;;  %vm3305_vm9 = vmor %vm3303_vm15, %vm3304_vm6 }
 0x6c4   :  { %v3296_v26 = vsel %vm3295_vm7, %v4613_v30, %v3292_v38  ;;  %v3299_v51 = vmul.f32 %v4615_v40, %v3298_v16  ;;  %4616 = vrsqrt.f32 %v3265_v13  ;;  %vm3313_vm11 = vweird.f32 %v3265_v13 }
 0x6c5   :  { %v3329_v17 = vmul.f32 %v3296_v26, %v5868_v27 }
 0x6c6   :  { %v3300_v42 = vmul.f32 0.5, %v3299_v51 }
 0x6c7   :  { %v3339_v45 = vmul.f32 %v5906_v21, %v3329_v17 }
 0x6c8   :  { %v3301_v18 = vsub.f32 1.5, %v3300_v42 }
 0x6c9   :  { %v5932_v22 = vadd.f32 %v5912_v9, %v3339_v45 }
 0x6ca   :  { %v4617_v43 = vpop.eup %4616  ;;  %v3302_v25 = vmul.f32 %v4615_v40, %v3301_v18 }
 0x6cb   :  { %v3308_v20 = vmul.f32 %v4617_v43, %v3265_v13  ;;  %4426 = vmatmul.msk.f32.gmra.mxu0 %vm215_vm0, %v5932_v22  ;;  %vm3314_vm10 = vweird.f32 %v4617_v43 }
 0x6cc   :  { %v3306_v61 = vsel %vm3305_vm9, %v4615_v40, %v3302_v25  ;;  %v3254_v55 = vpop.xlane.xlu1 %3253  ;;  %vm3315_vm12 = vmor %vm3313_vm11, %vm3314_vm10 }
 0x6cd   :  { %v3309_v7 = vmul.f32 %v4617_v43, %v3308_v20  ;;  %v3260_v27 = vmul.f32 %v3254_v55, %v5853_v23  ;;  %v3330_v58 = vmul.f32 %v3306_v61, %v5874_v41 }
 0x6cf   :  { %v3310_v12 = vmul.f32 0.5, %v3309_v7  ;;  %v3266_v63 = vadd.f32 1e-12, %v3260_v27  ;;  %v3340_v32 = vmul.f32 %v5906_v21, %v3330_v58 }
 0x6d1   :  { %v3311_v37 = vsub.f32 1.5, %v3310_v12  ;;  %4618 = vrsqrt.f32 %v3266_v63  ;;  %v5940_v35 = vadd.f32 %v5912_v9, %v3340_v32  ;;  %vm3323_vm13 = vweird.f32 %v3266_v63 }
 0x6d3   :  { %v3312_v57 = vmul.f32 %v4617_v43, %v3311_v37  ;;  %4427 = vmatmul.msk.f32.gmra.mxu0 %vm215_vm0, %v5940_v35 }
 0x6d5   :  { %v3316_v10 = vsel %vm3315_vm12, %v4617_v43, %v3312_v57  ;;  %vm3690_vm12 = vcmask 523264  }
 0x6d6   :  { %v3331_v1 = vmul.f32 %v3316_v10, %v5880_v48 }
 0x6d7   :  { %v4619_v41 = vpop.eup %4618 }
 0x6d8   :  { %v3318_v59 = vmul.f32 %v4619_v41, %v3266_v63  ;;  %v3341_v50 = vmul.f32 %v5906_v21, %v3331_v1  ;;  %vm3324_vm14 = vweird.f32 %v4619_v41  ;;  %v3685_v63 = vld [vmem:[%s6412_s13 + $0x38] sm:$0xff] }
 0x6d9   :  { %vm3325_vm8 = vmor %vm3323_vm13, %vm3324_vm14  ;;  %3717 = vmatpush.msra.mxu1 %v3685_v63  ;;  %v3678_v63 = vld [vmem:[%s6412_s13] sm:$0xff] }
 0x6da   :  { %v3319_v19 = vmul.f32 %v4619_v41, %v3318_v59  ;;  %v5947_v36 = vadd.f32 %v5912_v9, %v3341_v50  ;;  %v3684_v59 = vld [vmem:[%s6412_s13 + $0x30] sm:$0xff] }
 0x6db   :  { %3718 = vmatpush.msra.mxu1 %v3684_v59 }
 0x6dc   :  { %v3320_v4 = vmul.f32 0.5, %v3319_v19  ;;  %4428 = vmatmul.msk.f32.gmra.mxu0 %vm215_vm0, %v5947_v36 }
 0x6de   :  { %v3321_v6 = vsub.f32 1.5, %v3320_v4 }
 0x6e0   :  { %v3322_v14 = vmul.f32 %v4619_v41, %v3321_v6 }
 0x6e2   :  { %v3326_v28 = vsel %vm3325_vm8, %v4619_v41, %v3322_v14 }
 0x6e3   :  { %v3332_v48 = vmul.f32 %v3326_v28, %v5886_v53 }
 0x6e5   :  { %v3342_v8 = vmul.f32 %v5906_v21, %v3332_v48  ;;  %v3683_v48 = vld [vmem:[%s6412_s13 + $0x28] sm:$0xff] }
 0x6e6   :  { %3719 = vmatpush.msra.mxu1 %v3683_v48 }
 0x6e7   :  { %v5954_v44 = vadd.f32 %v5912_v9, %v3342_v8 }
 0x6e9   :  { %4429 = vmatmul.msk.f32.gmra.mxu0 %vm215_vm0, %v5954_v44 }
 0x738   :  { %v3396_v2 = vpop.f32.mrf.mxu0 }
 0x739   :  { %v5964_v31 = vadd.f32 %v5961_v34, %v3396_v2 }
 0x73b   :  { %v5967_v62 = vmul.f32 0.70710677, %v5964_v31  ;;  %v3414_v59 = vmul.f32 0.5, %v5964_v31 }
 0x73d   :  { %v3426_v53 = vmul.f32 %v5967_v62, %v5967_v62 }
 0x73f   :  { %v3427_v21 = vmin.f32 %v3426_v53, 16.0 }
 0x740   :  { %v3399_v9 = vpop.f32.mrf.mxu0 }
 0x741   :  { %v3428_v29 = vmul.f32 2.1237322e-06, %v3427_v21  ;;  %v3439_v0 = vmul.f32 3.8918573e-05, %v3427_v21  ;;  %v5972_v30 = vadd.f32 %v5961_v34, %v3399_v9  ;;  %v3682_v9 = vld [vmem:[%s6412_s13 + $0x20] sm:$0xff] }
 0x742   :  { %3720 = vmatpush.msra.mxu1 %v3682_v9 }
 0x743   :  { %v3429_v54 = vadd.f32 0.00028619796, %v3428_v29  ;;  %v3440_v47 = vadd.f32 0.001143296, %v3439_v0  ;;  %v5975_v56 = vmul.f32 0.70710677, %v5972_v30 }
 0x745   :  { %v3430_v33 = vmul.f32 %v3429_v54, %v3427_v21  ;;  %v3441_v3 = vmul.f32 %v3440_v47, %v3427_v21  ;;  %v3466_v39 = vmul.f32 %v5975_v56, %v5975_v56 }
 0x747   :  { %v3431_v15 = vadd.f32 0.0036580483, %v3430_v33  ;;  %v3442_v11 = vadd.f32 0.014752088, %v3441_v3  ;;  %v5979_v5 = vmin.f32 %v3466_v39, 16.0  ;;  %v3681_v33 = vld [vmem:[%s6412_s13 + $0x18] sm:$0xff] }
 0x748   :  { %v3402_v52 = vpop.f32.mrf.mxu0  ;;  %3721 = vmatpush.msra.mxu1 %v3681_v33 }
 0x749   :  { %v3432_v49 = vmul.f32 %v3431_v15, %v3427_v21  ;;  %v3443_v40 = vmul.f32 %v3442_v11, %v3427_v21  ;;  %v5982_v38 = vadd.f32 %v5961_v34, %v3402_v52  ;;  %v3468_v16 = vmul.f32 2.1237322e-06, %v5979_v5 }
 0x74a   :  { %v3479_v13 = vmul.f32 3.8918573e-05, %v5979_v5 }
 0x74b   :  { %v3433_v26 = vadd.f32 0.05243302, %v3432_v49  ;;  %v3444_v51 = vadd.f32 0.112945676, %v3443_v40  ;;  %v3469_v17 = vadd.f32 0.00028619796, %v3468_v16 }
 0x74c   :  { %v3480_v42 = vadd.f32 0.001143296, %v3479_v13  ;;  %v5987_v45 = vmul.f32 0.70710677, %v5982_v38  ;;  %v3680_v49 = vld [vmem:[%s6412_s13 + $0x10] sm:$0xff] }
 0x74d   :  { %v3445_v18 = vmul.f32 %v3444_v51, %v3427_v21  ;;  %v3434_v43 = vmul.f32 %v3433_v26, %v3427_v21  ;;  %v3470_v25 = vmul.f32 %v3469_v17, %v5979_v5  ;;  %3722 = vmatpush.msra.mxu1 %v3680_v49 }
 0x74e   :  { %v3481_v20 = vmul.f32 %v3480_v42, %v5979_v5  ;;  %v3506_v61 = vmul.f32 %v5987_v45, %v5987_v45 }
 0x74f   :  { %v3446_v55 = vadd.f32 0.4994258, %v3445_v18  ;;  %v3471_v7 = vadd.f32 0.0036580483, %v3470_v25  ;;  %v3435_v57 = vadd.f32 0.18741608, %v3434_v43 }
 0x750   :  { %v3482_v27 = vadd.f32 0.014752088, %v3481_v20  ;;  %v5993_v58 = vmin.f32 %v3506_v61, 16.0  ;;  %v3405_v12 = vpop.f32.mrf.mxu0  ;;  %v3679_v43 = vld [vmem:[%s6412_s13 + $0x8] sm:$0xff] }
 0x751   :  { %v3447_v32 = vmul.f32 %v3446_v55, %v3427_v21  ;;  %v5999_v37 = vadd.f32 %v5961_v34, %v3405_v12  ;;  %v3472_v10 = vmul.f32 %v3471_v7, %v5979_v5  ;;  %v3436_v54 = vmul.f32 %v3435_v57, %v3427_v21  ;;  %3723 = vmatpush.msra.mxu1 %v3679_v43 }
 0x752   :  { %v3483_v1 = vmul.f32 %v3482_v27, %v5979_v5  ;;  %v3508_v41 = vmul.f32 2.1237322e-06, %v5993_v58  ;;  %v3519_v19 = vmul.f32 3.8918573e-05, %v5993_v58 }
 0x753   :  { %v6007_v50 = vadd.f32 1.0, %v3447_v32  ;;  %v6011_v4 = vmul.f32 0.70710677, %v5999_v37  ;;  %v3473_v6 = vadd.f32 0.05243302, %v3472_v10  ;;  %3724 = vmatpush.msra.mxu1 %v3678_v63 }
 0x754   :  { %v3484_v14 = vadd.f32 0.112945676, %v3483_v1  ;;  %v3509_v28 = vadd.f32 0.00028619796, %v3508_v41  ;;  %v3520_v29 = vadd.f32 0.001143296, %v3519_v19 }
 0x755   :  { %4620 = vrcp.f32 %v6007_v50  ;;  %v3474_v8 = vmul.f32 %v3473_v6, %v5979_v5  ;;  %v3546_v0 = vmul.f32 %v6011_v4, %v6011_v4  ;;  %v3437_v17 = vadd.f32 1.1283791, %v3436_v54 }
 0x756   :  { %v3485_v2 = vmul.f32 %v3484_v14, %v5979_v5  ;;  %v3510_v53 = vmul.f32 %v3509_v28, %v5993_v58  ;;  %v3521_v15 = vmul.f32 %v3520_v29, %v5993_v58  ;;  %v3458_v27 = vand.u32 2147483647, %v6007_v50 }
 0x757   :  { %v3475_v3 = vadd.f32 0.18741608, %v3474_v8  ;;  %v6029_v11 = vmin.f32 %v3546_v0, 16.0  ;;  %v3460_v32 = vand.u32 2147483648, %v6007_v50  ;;  %vm3454_vm6 = vweird.f32 %v6007_v50 }
 0x758   :  { %v3486_v47 = vadd.f32 0.4994258, %v3485_v2  ;;  %v3511_v39 = vadd.f32 0.0036580483, %v3510_v53  ;;  %v3522_v16 = vadd.f32 0.014752088, %v3521_v15  ;;  %v3438_v2 = vmul.f32 %v3437_v17, %v5967_v62 }
 0x759   :  { %v3548_v13 = vmul.f32 2.1237322e-06, %v6029_v11  ;;  %v3559_v26 = vmul.f32 3.8918573e-05, %v6029_v11  ;;  %v3408_v51 = vpop.f32.mrf.mxu0  ;;  %v3476_v25 = vmul.f32 %v3475_v3, %v5979_v5  ;;  %v3461_v53 = vor.u32 1.1754944e-38, %v3460_v32 }
 0x75a   :  { %v3487_v52 = vmul.f32 %v3486_v47, %v5979_v5  ;;  %v3512_v40 = vmul.f32 %v3511_v39, %v5993_v58  ;;  %v3523_v20 = vmul.f32 %v3522_v16, %v5993_v58  ;;  %v6049_v12 = vadd.f32 %v5961_v34, %v3408_v51 }
 0x75b   :  { %v4621_v21 = vpop.eup %4620  ;;  %v3549_v61 = vadd.f32 0.00028619796, %v3548_v13  ;;  %v3560_v55 = vadd.f32 0.001143296, %v3559_v26  ;;  %v3477_v19 = vadd.f32 1.1283791, %v3476_v25 }
 0x75c   :  { %v3450_v42 = vmul.f32 %v4621_v21, %v6007_v50  ;;  %v6039_v18 = vadd.f32 1.0, %v3487_v52  ;;  %v3513_v5 = vadd.f32 0.05243302, %v3512_v40  ;;  %v3524_v57 = vadd.f32 0.112945676, %v3523_v20 }
 0x75d   :  { %vm3455_vm7 = vweird.f32 %v4621_v21  ;;  %v3550_v1 = vmul.f32 %v3549_v61, %v6029_v11  ;;  %v3561_v41 = vmul.f32 %v3560_v55, %v6029_v11  ;;  %v6061_v8 = vmul.f32 0.70710677, %v6049_v12 }
 0x75e   :  { %v3451_v7 = vsub.f32 1.0, %v3450_v42  ;;  %4622 = vrcp.f32 %v6039_v18  ;;  %v3525_v6 = vmul.f32 %v3524_v57, %v5993_v58  ;;  %vm3456_vm15 = vmor %vm3454_vm6, %vm3455_vm7  ;;  %v3514_v9 = vmul.f32 %v3513_v5, %v5993_v58 }
 0x75f   :  { %v3551_v28 = vadd.f32 0.0036580483, %v3550_v1  ;;  %v3562_v48 = vadd.f32 0.014752088, %v3561_v41  ;;  %vm3459_vm9 = vcmp.eq.f32.partialorder %v3458_v27, 8.507059e+37  ;;  %v3586_v54 = vmul.f32 %v6061_v8, %v6061_v8 }
 0x760   :  { %v3452_v10 = vmul.f32 %v4621_v21, %v3451_v7  ;;  %v3526_v29 = vadd.f32 0.4994258, %v3525_v6  ;;  %v3478_v33 = vmul.f32 %v3477_v19, %v5975_v56  ;;  %v3498_v15 = vand.u32 2147483647, %v6039_v18 }
 0x761   :  { %v3563_v50 = vmul.f32 %v3562_v48, %v6029_v11  ;;  %v3552_v62 = vmul.f32 %v3551_v28, %v6029_v11  ;;  %v3500_v40 = vand.u32 2147483648, %v6039_v18  ;;  %v3515_v16 = vadd.f32 0.18741608, %v3514_v9 }
 0x762   :  { %v3453_v14 = vadd.f32 %v4621_v21, %v3452_v10  ;;  %v3527_v52 = vmul.f32 %v3526_v29, %v5993_v58  ;;  %v6074_v13 = vmin.f32 %v3586_v54, 16.0  ;;  %vm3494_vm11 = vweird.f32 %v6039_v18 }
 0x763   :  { %v3564_v49 = vadd.f32 0.112945676, %v3563_v50  ;;  %v3553_v43 = vadd.f32 0.05243302, %v3552_v62  ;;  %v3501_v27 = vor.u32 1.1754944e-38, %v3500_v40  ;;  %v3516_v5 = vmul.f32 %v3515_v16, %v5993_v58 }
 0x764   :  { %v4623_v0 = vpop.eup %4622  ;;  %v3457_v31 = vsel %vm3456_vm15, %v4621_v21, %v3453_v14  ;;  %v3528_v56 = vadd.f32 1.0, %v3527_v52  ;;  %v3588_v25 = vmul.f32 2.1237322e-06, %v6074_v13  ;;  %v3599_v20 = vmul.f32 3.8918573e-05, %v6074_v13 }
 0x765   :  { %v3462_v47 = vsel %vm3459_vm9, %v3461_v53, %v3457_v31  ;;  %v3490_v3 = vmul.f32 %v4623_v0, %v6039_v18  ;;  %vm3495_vm10 = vweird.f32 %v4623_v0  ;;  %v3565_v17 = vmul.f32 %v3564_v49, %v6029_v11 }
 0x766   :  { %v3463_v39 = vmul.f32 %v3462_v47, %v3438_v2  ;;  %v3411_v26 = vpop.f32.mrf.mxu0  ;;  %4624 = vrcp.f32 %v3528_v56  ;;  %vm3496_vm14 = vmor %vm3494_vm11, %vm3495_vm10  ;;  %v3589_v57 = vadd.f32 0.00028619796, %v3588_v25  ;;  %v3600_v10 = vadd.f32 0.001143296, %v3599_v20 }
 0x767   :  { %v3491_v21 = vsub.f32 1.0, %v3490_v3  ;;  %v6081_v55 = vadd.f32 %v5961_v34, %v3411_v26  ;;  %v3566_v63 = vadd.f32 0.4994258, %v3565_v17  ;;  %vm3499_vm13 = vcmp.eq.f32.partialorder %v3498_v15, 8.507059e+37 }
 0x768   :  { %v4430_v51 = vclamps-f32 %v3463_v39, 1.0  ;;  %v3554_v41 = vmul.f32 %v3553_v43, %v6029_v11  ;;  %v3590_v34 = vmul.f32 %v3589_v57, %v6074_v13  ;;  %v3601_v6 = vmul.f32 %v3600_v10, %v6074_v13 }
 0x769   :  { %v3492_v42 = vmul.f32 %v4623_v0, %v3491_v21  ;;  %v3567_v18 = vmul.f32 %v3566_v63, %v6029_v11  ;;  %v6090_v14 = vmul.f32 0.70710677, %v6081_v55  ;;  %v3517_v48 = vadd.f32 1.1283791, %v3516_v5 }
 0x76a   :  { %v3666_v61 = vadd.f32 1.0, %v4430_v51  ;;  %v3591_v2 = vadd.f32 0.0036580483, %v3590_v34  ;;  %v3602_v53 = vadd.f32 0.014752088, %v3601_v6  ;;  %v3540_v39 = vand.u32 2147483648, %v3528_v56 }
 0x76b   :  { %v3493_v7 = vadd.f32 %v4623_v0, %v3492_v42  ;;  %v6093_v58 = vadd.f32 1.0, %v3567_v18  ;;  %v3626_v9 = vmul.f32 %v6090_v14, %v6090_v14  ;;  %v3538_v31 = vand.u32 2147483647, %v3528_v56 }
 0x76c   :  { %v3672_v32 = vmul.f32 %v3666_v61, %v3414_v59  ;;  %v4625_v28 = vpop.eup %4624  ;;  %v3555_v50 = vadd.f32 0.18741608, %v3554_v41  ;;  %v3603_v47 = vmul.f32 %v3602_v53, %v6074_v13  ;;  %v3518_v62 = vmul.f32 %v3517_v48, %v5987_v45 }
 0x76d   :  { %v3497_v1 = vsel %vm3496_vm14, %v4623_v0, %v3493_v7  ;;  %v3530_v29 = vmul.f32 %v4625_v28, %v3528_v56  ;;  %4626 = vrcp.f32 %v6093_v58  ;;  %v3415_v0 = vmul.f32 0.5, %v5972_v30 }
 0x76e   :  { %v3502_v19 = vsel %vm3499_vm13, %v3501_v27, %v3497_v1  ;;  %4436 = vmatmul.msk.f32.vlgmr.msra.gmra.mxu1 %vm3690_vm12, %v3672_v32  ;;  %vm3535_vm8 = vweird.f32 %v4625_v28  ;;  %v3592_v15 = vmul.f32 %v3591_v2, %v6074_v13  ;;  %v3604_v49 = vadd.f32 0.112945676, %v3603_v47 }
 0x76f   :  { %v3503_v59 = vmul.f32 %v3502_v19, %v3478_v33  ;;  %v3531_v54 = vsub.f32 1.0, %v3530_v29  ;;  %v6100_v33 = vmin.f32 %v3626_v9, 16.0  ;;  %vm3534_vm7 = vweird.f32 %v3528_v56 }
 0x770   :  { %vm6106_vm6 = vcmp.eq.f32.partialorder %v3538_v31, 8.507059e+37  ;;  %v3556_v16 = vmul.f32 %v3555_v50, %v6029_v11  ;;  %v3605_v17 = vmul.f32 %v3604_v49, %v6074_v13  ;;  %vm3536_vm15 = vmor %vm3534_vm7, %vm3535_vm8  ;;  %v3541_v25 = vor.u32 1.1754944e-38, %v3540_v39 }
 0x771   :  { %v4431_v3 = vclamps-f32 %v3503_v59, 1.0  ;;  %v3532_v52 = vmul.f32 %v4625_v28, %v3531_v54  ;;  %v3628_v21 = vmul.f32 2.1237322e-06, %v6100_v33  ;;  %v3639_v30 = vmul.f32 3.8918573e-05, %v6100_v33 }
 0x772   :  { %v3593_v61 = vadd.f32 0.05243302, %v3592_v15  ;;  %v3606_v27 = vadd.f32 0.4994258, %v3605_v17  ;;  %v3557_v5 = vadd.f32 1.1283791, %v3556_v16  ;;  %vm3574_vm10 = vweird.f32 %v6093_v58 }
 0x773   :  { %v3667_v26 = vadd.f32 1.0, %v4431_v3  ;;  %v4627_v51 = vpop.eup %4626  ;;  %v3533_v45 = vadd.f32 %v4625_v28, %v3532_v52  ;;  %v3629_v42 = vadd.f32 0.00028619796, %v3628_v21  ;;  %v3640_v43 = vadd.f32 0.001143296, %v3639_v30 }
 0x774   :  { %v3570_v20 = vmul.f32 %v4627_v51, %v6093_v58  ;;  %v3580_v1 = vand.u32 2147483648, %v6093_v58  ;;  %v3607_v41 = vmul.f32 %v3606_v27, %v6074_v13  ;;  %vm3575_vm9 = vweird.f32 %v4627_v51 }
 0x775   :  { %v3673_v56 = vmul.f32 %v3667_v26, %v3415_v0  ;;  %v3537_v7 = vsel %vm3536_vm15, %v4625_v28, %v3533_v45  ;;  %v3630_v63 = vmul.f32 %v3629_v42, %v6100_v33  ;;  %v3641_v11 = vmul.f32 %v3640_v43, %v6100_v33  ;;  %vm3576_vm11 = vmor %vm3574_vm10, %vm3575_vm9 }
 0x776   :  { %v3542_v32 = vsel %vm6106_vm6, %v3541_v25, %v3537_v7  ;;  %v3571_v57 = vsub.f32 1.0, %v3570_v20  ;;  %v3578_v34 = vand.u32 2147483647, %v6093_v58  ;;  %v3594_v6 = vmul.f32 %v3593_v61, %v6074_v13 }
 0x777   :  { %4437 = vmatmul.msk.f32.gmra.mxu1 %vm3690_vm12, %v3673_v56  ;;  %v3543_v10 = vmul.f32 %v3542_v32, %v3518_v62  ;;  %v3642_v18 = vadd.f32 0.014752088, %v3641_v11  ;;  %v3608_v59 = vadd.f32 1.0, %v3607_v41  ;;  %v3631_v28 = vadd.f32 0.0036580483, %v3630_v63 }
 0x778   :  { %v3572_v19 = vmul.f32 %v4627_v51, %v3571_v57  ;;  %v3416_v9 = vmul.f32 0.5, %v5982_v38  ;;  %v3558_v29 = vmul.f32 %v3557_v5, %v6011_v4  ;;  %v3581_v0 = vor.u32 1.1754944e-38, %v3580_v1 }
 0x779   :  { %v3643_v48 = vmul.f32 %v3642_v18, %v6100_v33  ;;  %v4432_v2 = vclamps-f32 %v3543_v10, 1.0  ;;  %4628 = vrcp.f32 %v3608_v59  ;;  %vm3579_vm14 = vcmp.eq.f32.partialorder %v3578_v34, 8.507059e+37 }
 0x77a   :  { %v3573_v53 = vadd.f32 %v4627_v51, %v3572_v19  ;;  %v3595_v3 = vadd.f32 0.18741608, %v3594_v6  ;;  %v3632_v62 = vmul.f32 %v3631_v28, %v6100_v33  ;;  %v3417_v16 = vmul.f32 0.5, %v5999_v37 }
 0x77b   :  { %v3644_v50 = vadd.f32 0.112945676, %v3643_v48  ;;  %v3668_v54 = vadd.f32 1.0, %v4432_v2  ;;  %v3620_v42 = vand.u32 2147483648, %v3608_v59  ;;  %v3618_v61 = vand.u32 2147483647, %v3608_v59 }
 0x77c   :  { %v3577_v31 = vsel %vm3576_vm11, %v4627_v51, %v3573_v53  ;;  %v3596_v49 = vmul.f32 %v3595_v3, %v6074_v13  ;;  %v3633_v21 = vadd.f32 0.05243302, %v3632_v62  ;;  %vm3614_vm8 = vweird.f32 %v3608_v59 }
 0x77d   :  { %v3582_v47 = vsel %vm3579_vm14, %v3581_v0, %v3577_v31  ;;  %v3645_v15 = vmul.f32 %v3644_v50, %v6100_v33  ;;  %v3674_v52 = vmul.f32 %v3668_v54, %v3416_v9  ;;  %v3621_v13 = vor.u32 1.1754944e-38, %v3620_v42  ;;  %v4468_v50 = vld [vmem:[#allocation6] ss:$0 sm:$0xff] }
 0x77e   :  { %v3583_v39 = vmul.f32 %v3582_v47, %v3558_v29  ;;  %v3597_v17 = vadd.f32 1.1283791, %v3596_v49  ;;  %v3634_v43 = vmul.f32 %v3633_v21, %v6100_v33  ;;  %vm3619_vm6 = vcmp.eq.f32.partialorder %v3618_v61, 8.507059e+37 }
 0x77f   :  { %v3646_v58 = vadd.f32 0.4994258, %v3645_v15  ;;  %4438 = vmatmul.msk.f32.gmra.mxu1 %vm3690_vm12, %v3674_v52  ;;  %v4629_v4 = vpop.eup %4628  ;;  %v3418_v41 = vmul.f32 0.5, %v6049_v12  ;;  %v3419_v29 = vmul.f32 0.5, %v6081_v55 }
 0x780   :  { %v4433_v38 = vclamps-f32 %v3583_v39, 1.0  ;;  %v3610_v30 = vmul.f32 %v4629_v4, %v3608_v59  ;;  %vm3615_vm13 = vweird.f32 %v4629_v4  ;;  %v3635_v7 = vadd.f32 0.18741608, %v3634_v43 }
 0x781   :  { %v3647_v40 = vmul.f32 %v3646_v58, %v6100_v33  ;;  %vm3616_vm7 = vmor %vm3614_vm8, %vm3615_vm13  ;;  %v3598_v37 = vmul.f32 %v3597_v17, %v6061_v8 }
 0x782   :  { %v3669_v26 = vadd.f32 1.0, %v4433_v38  ;;  %v3611_v51 = vsub.f32 1.0, %v3610_v30  ;;  %v3636_v5 = vmul.f32 %v3635_v7, %v6100_v33 }
 0x783   :  { %v3648_v45 = vadd.f32 1.0, %v3647_v40 }
 0x784   :  { %v3675_v25 = vmul.f32 %v3669_v26, %v3417_v16  ;;  %v3612_v20 = vmul.f32 %v4629_v4, %v3611_v51  ;;  %v3637_v34 = vadd.f32 1.1283791, %v3636_v5 }
 0x785   :  { %4630 = vrcp.f32 %v3648_v45  ;;  %v3660_v18 = vand.u32 2147483648, %v3648_v45  ;;  %v3658_v59 = vand.u32 2147483647, %v3648_v45  ;;  %vm3654_vm9 = vweird.f32 %v3648_v45 }
 0x786   :  { %v3613_v56 = vadd.f32 %v4629_v4, %v3612_v20  ;;  %v3638_v33 = vmul.f32 %v3637_v34, %v6090_v14 }
 0x787   :  { %4439 = vmatmul.msk.f32.gmra.mxu1 %vm3690_vm12, %v3675_v25  ;;  %v3661_v48 = vor.u32 1.1754944e-38, %v3660_v18  ;;  %vm3659_vm11 = vcmp.eq.f32.partialorder %v3658_v59, 8.507059e+37 }
 0x788   :  { %v3617_v27 = vsel %vm3616_vm7, %v4629_v4, %v3613_v56 }
 0x789   :  { %v3622_v63 = vsel %vm3619_vm6, %v3621_v13, %v3617_v27 }
 0x78a   :  { %v3623_v32 = vmul.f32 %v3622_v63, %v3598_v37 }
 0x78b   :  { %v4631_v11 = vpop.eup %4630 }
 0x78c   :  { %v3650_v57 = vmul.f32 %v4631_v11, %v3648_v45  ;;  %v4434_v10 = vclamps-f32 %v3623_v32, 1.0  ;;  %vm3655_vm15 = vweird.f32 %v4631_v11 }
 0x78d   :  { %vm3656_vm10 = vmor %vm3654_vm9, %vm3655_vm15 }
 0x78e   :  { %v3651_v1 = vsub.f32 1.0, %v3650_v57  ;;  %v3670_v19 = vadd.f32 1.0, %v4434_v10 }
 0x790   :  { %v3652_v6 = vmul.f32 %v4631_v11, %v3651_v1  ;;  %v3676_v28 = vmul.f32 %v3670_v19, %v3418_v41 }
 0x792   :  { %v3653_v8 = vadd.f32 %v4631_v11, %v3652_v6  ;;  %4440 = vmatmul.msk.f32.gmra.mxu1 %vm3690_vm12, %v3676_v28 }
 0x794   :  { %v3657_v2 = vsel %vm3656_vm10, %v4631_v11, %v3653_v8 }
 0x795   :  { %v3662_v53 = vsel %vm3659_vm11, %v3661_v48, %v3657_v2 }
 0x796   :  { %v3663_v9 = vmul.f32 %v3662_v53, %v3638_v33 }
 0x798   :  { %v4435_v12 = vclamps-f32 %v3663_v9, 1.0 }
 0x79a   :  { %v3671_v0 = vadd.f32 1.0, %v4435_v12 }
 0x79c   :  { %v3677_v31 = vmul.f32 %v3671_v0, %v3419_v29 }
 0x79e   :  { %4441 = vmatmul.msk.f32.gmra.mxu1 %vm3690_vm12, %v3677_v31 }
 0x7eb   :  { %v3726_v54 = vpop.f32.mrf.mxu1 }
 0x7ec   :  { %v3727_v47 = vadd.f32 %v4468_v50, %v3726_v54 }
 0x7ee   :  { %v3744_v3 = vadd.f32 %v3727_v47, %v5917_v60 }
 0x7f0   :  { %v3750_v62 = vsel %vm215_vm0, %v3744_v3, 0.0 }
 0x7f1   :  { %3751 = vadd.xlane.f32.xlu2 %v3750_v62 }
 0x7f4   :  { %v3729_v14 = vpop.f32.mrf.mxu1 }
 0x7f5   :  { %v3730_v39 = vadd.f32 %v4468_v50, %v3729_v14  ;;  %v6188_v14 = vld [vmem:[#allocation7] ss:$0 sm:$0xff] }
 0x7f7   :  { %v3745_v15 = vadd.f32 %v3730_v39, %v5925_v46 }
 0x7f9   :  { %v3753_v52 = vsel %vm215_vm0, %v3745_v15, 0.0 }
 0x7fa   :  { %3754 = vadd.xlane.f32.xlu0 %v3753_v52 }
 0x7fc   :  { %v3732_v55 = vpop.f32.mrf.mxu1 }
 0x7fd   :  { %v3733_v58 = vadd.f32 %v4468_v50, %v3732_v55  ;;  %v6193_v55 = vld [vmem:[%s6351_s15] ss:$0 sm:$0xff] }
 0x7ff   :  { %v3746_v38 = vadd.f32 %v3733_v58, %v5932_v22 }
 0x801   :  { %v3756_v4 = vsel %vm215_vm0, %v3746_v38, 0.0 }
 0x802   :  { %3757 = vadd.xlane.f32.xlu1 %v3756_v4 }
 0x804   :  { %v3735_v49 = vpop.f32.mrf.mxu1 }
 0x805   :  { %v3736_v21 = vadd.f32 %v4468_v50, %v3735_v49 }
 0x807   :  { %v3747_v60 = vadd.f32 %v3736_v21, %v5940_v35 }
 0x809   :  { %v3759_v30 = vsel %vm215_vm0, %v3747_v60, 0.0 }
 0x80a   :  { %3760 = vadd.xlane.f32.xlu2 %v3759_v30 }
 0x80f   :  { %v3738_v40 = vpop.f32.mrf.mxu1 }
 0x810   :  { %v3739_v16 = vadd.f32 %v4468_v50, %v3738_v40 }
 0x812   :  { %v3748_v46 = vadd.f32 %v3739_v16, %v5947_v36 }
 0x814   :  { %v3762_v26 = vsel %vm215_vm0, %v3748_v46, 0.0 }
 0x815   :  { %3763 = vadd.xlane.f32.xlu0 %v3762_v26 }
 0x81b   :  { %v3741_v51 = vpop.f32.mrf.mxu1 }
 0x81c   :  { %v3742_v45 = vadd.f32 %v4468_v50, %v3741_v51 }
 0x81e   :  { %v3749_v22 = vadd.f32 %v3742_v45, %v5954_v44 }
 0x820   :  { %v3765_v17 = vsel %vm215_vm0, %v3749_v22, 0.0 }
 0x821   :  { %3766 = vadd.xlane.f32.xlu1 %v3765_v17 }
 0x864   :  { %v3752_v42 = vpop.xlane.xlu2 %3751 }
 0x865   :  { %v3768_v35 = vmul.f32 %v3752_v42, %v5853_v23 }
 0x867   :  { %v3774_v43 = vsub.f32 %v3744_v3, %v3768_v35 }
 0x869   :  { %v3780_v25 = vmul.f32 %v3774_v43, %v3774_v43 }
 0x86b   :  { %v3786_v20 = vsel %vm215_vm0, %v3780_v25, 0.0 }
 0x86c   :  { %3787 = vadd.xlane.f32.xlu2 %v3786_v20 }
 0x86d   :  { %v3755_v61 = vpop.xlane.xlu0 %3754 }
 0x86e   :  { %v3769_v36 = vmul.f32 %v3755_v61, %v5853_v23 }
 0x870   :  { %v6157_v56 = vsub.f32 %v3745_v15, %v3769_v36 }
 0x872   :  { %v3781_v13 = vmul.f32 %v6157_v56, %v6157_v56 }
 0x874   :  { %v3789_v44 = vsel %vm215_vm0, %v3781_v13, 0.0 }
 0x875   :  { %3790 = vadd.xlane.f32.xlu0 %v3789_v44  ;;  %v3758_v7 = vpop.xlane.xlu1 %3757 }
 0x876   :  { %v3770_v37 = vmul.f32 %v3758_v7, %v5853_v23 }
 0x878   :  { %v6163_v27 = vsub.f32 %v3746_v38, %v3770_v37 }
 0x87a   :  { %v3782_v63 = vmul.f32 %v6163_v27, %v6163_v27 }
 0x87c   :  { %v3792_v11 = vsel %vm215_vm0, %v3782_v63, 0.0 }
 0x87d   :  { %3793 = vadd.xlane.f32.xlu1 %v3792_v11  ;;  %v3761_v32 = vpop.xlane.xlu2 %3760 }
 0x87e   :  { %v3771_v5 = vmul.f32 %v3761_v32, %v5853_v23 }
 0x880   :  { %v6169_v57 = vsub.f32 %v3747_v60, %v3771_v5 }
 0x882   :  { %v3783_v10 = vmul.f32 %v6169_v57, %v6169_v57 }
 0x884   :  { %v3795_v1 = vsel %vm215_vm0, %v3783_v10, 0.0 }
 0x885   :  { %3796 = vadd.xlane.f32.xlu2 %v3795_v1 }
 0x888   :  { %v3764_v41 = vpop.xlane.xlu0 %3763 }
 0x889   :  { %v3772_v18 = vmul.f32 %v3764_v41, %v5853_v23 }
 0x88b   :  { %v6175_v19 = vsub.f32 %v3748_v46, %v3772_v18 }
 0x88d   :  { %v3784_v34 = vmul.f32 %v6175_v19, %v6175_v19 }
 0x88f   :  { %v3798_v6 = vsel %vm215_vm0, %v3784_v34, 0.0 }
 0x890   :  { %3799 = vadd.xlane.f32.xlu0 %v3798_v6 }
 0x894   :  { %v3767_v59 = vpop.xlane.xlu1 %3766 }
 0x895   :  { %v3773_v28 = vmul.f32 %v3767_v59, %v5853_v23 }
 0x897   :  { %v6181_v8 = vsub.f32 %v3749_v22, %v3773_v28 }
 0x899   :  { %v3785_v48 = vmul.f32 %v6181_v8, %v6181_v8 }
 0x89b   :  { %v3801_v33 = vsel %vm215_vm0, %v3785_v48, 0.0 }
 0x89c   :  { %3802 = vadd.xlane.f32.xlu1 %v3801_v33 }
 0x8df   :  { %v3788_v2 = vpop.xlane.xlu2 %3787 }
 0x8e0   :  { %v3804_v53 = vmul.f32 %v3788_v2, %v5853_v23 }
 0x8e2   :  { %v3810_v9 = vadd.f32 1e-12, %v3804_v53 }
 0x8e4   :  { %4632 = vrsqrt.f32 %v3810_v9  ;;  %vm3822_vm13 = vweird.f32 %v3810_v9 }
 0x8e8   :  { %v3791_v0 = vpop.xlane.xlu0 %3790 }
 0x8e9   :  { %v3805_v31 = vmul.f32 %v3791_v0, %v5853_v23 }
 0x8ea   :  { %v4633_v12 = vpop.eup %4632 }
 0x8eb   :  { %v3817_v29 = vmul.f32 %v4633_v12, %v3810_v9  ;;  %v3811_v54 = vadd.f32 1e-12, %v3805_v31  ;;  %vm3823_vm14 = vweird.f32 %v4633_v12  ;;  %v4031_v9 = vld [vmem:[%s6352_s16 + $0x18] sm:$0xff] }
 0x8ec   :  { %vm3824_vm8 = vmor %vm3822_vm13, %vm3823_vm14  ;;  %4073 = vmatpush.msra.mxu2 %v4031_v9 }
 0x8ed   :  { %v3818_v50 = vmul.f32 %v4633_v12, %v3817_v29  ;;  %4634 = vrsqrt.f32 %v3811_v54  ;;  %vm3832_vm6 = vweird.f32 %v3811_v54 }
 0x8ef   :  { %v3819_v47 = vmul.f32 0.5, %v3818_v50  ;;  %v4029_v50 = vld [vmem:[%s6352_s16 + $0x8] sm:$0xff] }
 0x8f0   :  { %v3794_v15 = vpop.xlane.xlu1 %3793 }
 0x8f1   :  { %v3820_v3 = vsub.f32 1.5, %v3819_v47  ;;  %v3806_v38 = vmul.f32 %v3794_v15, %v5853_v23 }
 0x8f3   :  { %v3821_v62 = vmul.f32 %v4633_v12, %v3820_v3  ;;  %v4635_v52 = vpop.eup %4634  ;;  %v3812_v21 = vadd.f32 1e-12, %v3806_v38 }
 0x8f4   :  { %v3827_v4 = vmul.f32 %v4635_v52, %v3811_v54  ;;  %vm3833_vm7 = vweird.f32 %v4635_v52 }
 0x8f5   :  { %v3825_v39 = vsel %vm3824_vm8, %v4633_v12, %v3821_v62  ;;  %4636 = vrsqrt.f32 %v3812_v21  ;;  %vm3834_vm15 = vmor %vm3832_vm6, %vm3833_vm7  ;;  %vm3842_vm10 = vweird.f32 %v3812_v21 }
 0x8f6   :  { %v3876_v58 = vmul.f32 %v3825_v39, %v3774_v43  ;;  %v3828_v60 = vmul.f32 %v4635_v52, %v3827_v4 }
 0x8f8   :  { %v3886_v49 = vmul.f32 %v6188_v14, %v3876_v58  ;;  %v3829_v40 = vmul.f32 0.5, %v3828_v60  ;;  %v3797_v45 = vpop.xlane.xlu2 %3796 }
 0x8f9   :  { %v3807_v22 = vmul.f32 %v3797_v45, %v5853_v23 }
 0x8fa   :  { %v3896_v30 = vadd.f32 %v6193_v55, %v3886_v49  ;;  %v3830_v51 = vsub.f32 1.5, %v3829_v40 }
 0x8fb   :  { %v4637_v42 = vpop.eup %4636  ;;  %v3813_v35 = vadd.f32 1e-12, %v3807_v22 }
 0x8fc   :  { %v3908_v16 = vrot.slane %v3896_v30, 2  ;;  %v3909_v46 = vrot.slane %v3896_v30, 4  ;;  %v3910_v26 = vrot.slane %v3896_v30, 6  ;;  %3926 = vst [vmem:[#allocation1] ss:$4 sm:$0xff] %v3896_v30  ;;  %v3831_v17 = vmul.f32 %v4635_v52, %v3830_v51 }
 0x8fd   :  { %v3837_v25 = vmul.f32 %v4637_v42, %v3812_v21  ;;  %4638 = vrsqrt.f32 %v3813_v35  ;;  %vm3843_vm9 = vweird.f32 %v4637_v42  ;;  %vm3852_vm13 = vweird.f32 %v3813_v35 }
 0x8fe   :  { %3928 = vst [vmem:[#allocation1 + $0x1] ss:$4 sm:$0xff] %v3908_v16  ;;  %v3835_v43 = vsel %vm3834_vm15, %v4635_v52, %v3831_v17  ;;  %vm3844_vm11 = vmor %vm3842_vm10, %vm3843_vm9  ;;  %v4028_v52 = vld [vmem:[%s6352_s16] sm:$0xff]  ;;  %vm3971_vm9 = vcmask 259072  }
 0x8ff   :  { %3930 = vst [vmem:[#allocation1 + $0x2] ss:$4 sm:$0xff] %v3909_v46  ;;  %v3877_v20 = vmul.f32 %v3835_v43, %v6157_v56  ;;  %v3838_v61 = vmul.f32 %v4637_v42, %v3837_v25 }
 0x900   :  { %3933 = vst [vmem:[#allocation1 + $0x20] ss:$4 sm:$0xff] %v3910_v26 }
 0x901   :  { %v3887_v36 = vmul.f32 %v6188_v14, %v3877_v20  ;;  %v3839_v13 = vmul.f32 0.5, %v3838_v61 }
 0x903   :  { %v3897_v44 = vadd.f32 %v6193_v55, %v3887_v36  ;;  %v3840_v7 = vsub.f32 1.5, %v3839_v13  ;;  %v4639_v63 = vpop.eup %4638  ;;  %v3800_v56 = vpop.xlane.xlu0 %3799 }
 0x904   :  { %v3847_v1 = vmul.f32 %v4639_v63, %v3813_v35  ;;  %v3808_v41 = vmul.f32 %v3800_v56, %v5853_v23  ;;  %vm3853_vm14 = vweird.f32 %v4639_v63 }
 0x905   :  { %v3911_v11 = vrot.slane %v3897_v44, 2  ;;  %v3912_v32 = vrot.slane %v3897_v44, 4  ;;  %v3913_v5 = vrot.slane %v3897_v44, 6  ;;  %3935 = vst [vmem:[#allocation1 + $0x21] ss:$4 sm:$0xff] %v3897_v44  ;;  %v3841_v10 = vmul.f32 %v4637_v42, %v3840_v7  ;;  %vm3854_vm8 = vmor %vm3852_vm13, %vm3853_vm14 }
 0x906   :  { %v6202_v37 = vld.sshfl [vmem:[#allocation1] sm:$0xff pattern:$0x73625140]  ;;  %v3848_v34 = vmul.f32 %v4639_v63, %v3847_v1  ;;  %v3814_v59 = vadd.f32 1e-12, %v3808_v41  ;;  %vm4055_vm13 = vcmask 1046534  }
 0x907   :  { %3937 = vst [vmem:[#allocation1 + $0x22] ss:$4 sm:$0xff] %v3911_v11  ;;  %v3845_v18 = vsel %vm3844_vm11, %v4637_v42, %v3841_v10 }
 0x908   :  { %3939 = vst [vmem:[#allocation1] ss:$4 sm:$0xff] %v3912_v32  ;;  %v3878_v6 = vmul.f32 %v3845_v18, %v6163_v27  ;;  %v3849_v28 = vmul.f32 0.5, %v3848_v34  ;;  %4640 = vrsqrt.f32 %v3814_v59  ;;  %v4030_v27 = vld [vmem:[%s6352_s16 + $0x10] sm:$0xff]  ;;  %vm3862_vm6 = vweird.f32 %v3814_v59 }
 0x909   :  { %3940 = vst [vmem:[#allocation1 + $0x1] ss:$4 sm:$0xff] %v3913_v5  ;;  %4074 = vmatpush.msra.mxu2 %v4030_v27  ;;  %v4083_v34 = vld [vmem:[%s6354_s18 + $0x10] sm:$0xff] }
 0x90a   :  { %v3888_v48 = vmul.f32 %v6188_v14, %v3878_v6  ;;  %v3850_v33 = vsub.f32 1.5, %v3849_v28 }
 0x90b   :  { %4075 = vmatpush.msra.mxu2 %v4029_v50 }
 0x90c   :  { %v3898_v2 = vadd.f32 %v6193_v55, %v3888_v48  ;;  %v3851_v53 = vmul.f32 %v4639_v63, %v3850_v33 }
 0x90d   :  { %4076 = vmatpush.msra.mxu2 %v4028_v52 }
 0x90e   :  { %v3914_v12 = vrot.slane %v3898_v2, 2  ;;  %v3915_v29 = vrot.slane %v3898_v2, 4  ;;  %v3916_v0 = vrot.slane %v3898_v2, 6  ;;  %3941 = vst [vmem:[#allocation1 + $0x2] ss:$4 sm:$0xff] %v3898_v2  ;;  %v3855_v31 = vsel %vm3854_vm8, %v4639_v63, %v3851_v53  ;;  %v4641_v47 = vpop.eup %4640 }
 0x90f   :  { %v3938_v54 = vld.sshfl [vmem:[#allocation1 + $0x20] sm:$0xff pattern:$0x73625140]  ;;  %v3879_v3 = vmul.f32 %v3855_v31, %v6169_v57  ;;  %v3803_v62 = vpop.xlane.xlu1 %3802  ;;  %v3857_v39 = vmul.f32 %v4641_v47, %v3814_v59  ;;  %vm3863_vm7 = vweird.f32 %v4641_v47  ;;  %vm4057_vm8 = vcmask 1047559  }
 0x910   :  { %3943 = vst [vmem:[#allocation1 + $0x20] ss:$4 sm:$0xff] %v3914_v12  ;;  %v3809_v15 = vmul.f32 %v3803_v62, %v5853_v23  ;;  %vm3864_vm15 = vmor %vm3862_vm6, %vm3863_vm7  ;;  %v3979_v20 = vsel %vm3971_vm9, %v3938_v54, 0.0 }
 0x911   :  { %3944 = vst [vmem:[#allocation1 + $0x21] ss:$4 sm:$0xff] %v3915_v29  ;;  %v3889_v58 = vmul.f32 %v6188_v14, %v3879_v3  ;;  %v3858_v38 = vmul.f32 %v4641_v47, %v3857_v39  ;;  %v3980_v32 = vrot.slane %v3979_v20, 4 }
 0x912   :  { %3945 = vst [vmem:[#allocation1 + $0x22] ss:$4 sm:$0xff] %v3916_v0  ;;  %v3815_v4 = vadd.f32 1e-12, %v3809_v15 }
 0x913   :  { %v3899_v49 = vadd.f32 %v6193_v55, %v3889_v58  ;;  %v3859_v57 = vmul.f32 0.5, %v3858_v38  ;;  %v3981_v6 = vadd.f32 %v3980_v32, %v3979_v20 }
 0x914   :  { %4642 = vrsqrt.f32 %v3815_v4  ;;  %vm3872_vm11 = vweird.f32 %v3815_v4 }
 0x915   :  { %v3942_v21 = vld.sshfl [vmem:[#allocation1] sm:$0xff pattern:$0x73625140]  ;;  %v3917_v60 = vrot.slane %v3899_v49, 2  ;;  %v3918_v30 = vrot.slane %v3899_v49, 4  ;;  %v3919_v40 = vrot.slane %v3899_v49, 6 }
 0x916   :  { %3947 = vst [vmem:[#allocation1] ss:$4 sm:$0xff] %v3899_v49  ;;  %v3860_v16 = vsub.f32 1.5, %v3859_v57  ;;  %v3986_v61 = vsel %vm3971_vm9, %v3942_v21, 0.0  ;;  %v3982_v9 = vrot.slane %v3981_v6, 2 }
 0x917   :  { %3948 = vst [vmem:[#allocation1 + $0x1] ss:$4 sm:$0xff] %v3917_v60  ;;  %v3987_v5 = vrot.slane %v3986_v61, 4 }
 0x918   :  { %v3861_v46 = vmul.f32 %v4641_v47, %v3860_v16  ;;  %3949 = vst [vmem:[#allocation1 + $0x2] ss:$4 sm:$0xff] %v3918_v30 }
 0x919   :  { %v3946_v26 = vld.sshfl [vmem:[#allocation1 + $0x20] sm:$0xff pattern:$0x73625140]  ;;  %v3988_v59 = vadd.f32 %v3987_v5, %v3986_v61 }
 0x91a   :  { %3951 = vst [vmem:[#allocation1 + $0x20] ss:$4 sm:$0xff] %v3919_v40  ;;  %v4643_v51 = vpop.eup %4642  ;;  %v3865_v45 = vsel %vm3864_vm15, %v4641_v47, %v3861_v46  ;;  %v3993_v10 = vsel %vm3971_vm9, %v3946_v26, 0.0 }
 0x91b   :  { %v3880_v22 = vmul.f32 %v3865_v45, %v6175_v19  ;;  %v3867_v17 = vmul.f32 %v4643_v51, %v3815_v4  ;;  %vm3873_vm10 = vweird.f32 %v4643_v51  ;;  %v3972_v19 = vsel %vm3971_vm9, %v6202_v37, 0.0  ;;  %v4084_v37 = vld [vmem:[%s6354_s18 + $0x18] sm:$0xff] }
 0x91c   :  { %vm3874_vm14 = vmor %vm3872_vm11, %vm3873_vm10  ;;  %v3973_v56 = vrot.slane %v3972_v19, 4  ;;  %v3994_v28 = vrot.slane %v3993_v10, 4  ;;  %4104 = vmatpush.msrb.mxu2 %v4084_v37  ;;  %v3989_v27 = vrot.slane %v3988_v59, 2 }
 0x91d   :  { %v3890_v42 = vmul.f32 %v6188_v14, %v3880_v22  ;;  %v3868_v35 = vmul.f32 %v4643_v51, %v3867_v17 }
 0x91e   :  { %v3974_v2 = vadd.f32 %v3973_v56, %v3972_v19  ;;  %4105 = vmatpush.msrb.mxu2 %v4083_v34  ;;  %v3995_v12 = vadd.f32 %v3994_v28, %v3993_v10  ;;  %v4081_v28 = vld [vmem:[%s6354_s18] sm:$0xff] }
 0x91f   :  { %v3900_v43 = vadd.f32 %v6193_v55, %v3890_v42  ;;  %v3869_v25 = vmul.f32 0.5, %v3868_v35  ;;  %v3950_v63 = vld.sshfl [vmem:[#allocation1] sm:$0xff pattern:$0x73625140] }
 0x920   :  { %v4000_v41 = vsel %vm3971_vm9, %v3950_v63, 0.0  ;;  %v3975_v47 = vrot.slane %v3974_v2, 2  ;;  %v3996_v62 = vrot.slane %v3995_v12, 2 }
 0x921   :  { %v3920_v36 = vrot.slane %v3900_v43, 2  ;;  %v3921_v13 = vrot.slane %v3900_v43, 4  ;;  %v3922_v44 = vrot.slane %v3900_v43, 6  ;;  %v3870_v7 = vsub.f32 1.5, %v3869_v25  ;;  %3952 = vst [vmem:[#allocation1 + $0x21] ss:$4 sm:$0xff] %v3900_v43 }
 0x922   :  { %v4001_v33 = vrot.slane %v4000_v41, 4  ;;  %v3976_v52 = vadd.f32 %v3975_v47, %v3974_v2  ;;  %v3997_v49 = vadd.f32 %v3996_v62, %v3995_v12  ;;  %v4652_v12 = vld [vmem:[%s6390_s3 + $0x38] sm:$0xff] }
 0x923   :  { %v3871_v11 = vmul.f32 %v4643_v51, %v3870_v7  ;;  %3953 = vst [vmem:[#allocation1 + $0x22] ss:$4 sm:$0xff] %v3920_v36 }
 0x924   :  { %3955 = vst [vmem:[#allocation1] ss:$4 sm:$0xff] %v3921_v13  ;;  %v4002_v54 = vadd.f32 %v4001_v33, %v4000_v41  ;;  %v3977_v30 = vrot.slane %v3976_v52, 1 }
 0x925   :  { %v3875_v1 = vsel %vm3874_vm14, %v4643_v51, %v3871_v11  ;;  %3956 = vst [vmem:[#allocation1 + $0x1] ss:$4 sm:$0xff] %v3922_v44  ;;  %v3998_v51 = vrot.slane %v3997_v49, 1 }
 0x926   :  { %v3881_v18 = vmul.f32 %v3875_v1, %v6181_v8  ;;  %v4003_v15 = vrot.slane %v4002_v54, 2  ;;  %v3978_v35 = vadd.f32 %v3977_v30, %v3976_v52 }
 0x927   :  { %v3999_v61 = vadd.f32 %v3998_v51, %v3997_v49  ;;  %v4472_v51 = vld [vmem:[#allocation10] ss:$0 sm:$0xff] }
 0x928   :  { %v3891_v48 = vmul.f32 %v6188_v14, %v3881_v18  ;;  %v3983_v14 = vadd.f32 %v3982_v9, %v3981_v6  ;;  %v4004_v21 = vadd.f32 %v4003_v15, %v4002_v54  ;;  %v4651_v9 = vld [vmem:[%s6390_s3 + $0x30] sm:$0xff]  ;;  %s6415_s3 = sld [smem:[#allocation33_spill]] }
 0x92a   :  { %v3901_v53 = vadd.f32 %v6193_v55, %v3891_v48  ;;  %v3954_v8 = vld.sshfl [vmem:[#allocation1 + $0x20] sm:$0xff pattern:$0x73625140]  ;;  %v3990_v55 = vadd.f32 %v3989_v27, %v3988_v59  ;;  %v3984_v4 = vrot.slane %v3983_v14, 1  ;;  %v4005_v17 = vrot.slane %v4004_v21, 1  ;;  %v4082_v59 = vld [vmem:[%s6354_s18 + $0x8] sm:$0xff] }
 0x92b   :  { %v4007_v29 = vsel %vm3971_vm9, %v3954_v8, 0.0  ;;  %4106 = vmatpush.msrb.mxu2 %v4082_v59  ;;  %v4032_v48 = vld [vmem:[%s6353_s17] sm:$0x1]  ;;  %v4122_v27 = vrot.slane %v4651_v9, 2 }
 0x92c   :  { %v3923_v0 = vrot.slane %v3901_v53, 2  ;;  %v3924_v31 = vrot.slane %v3901_v53, 4  ;;  %v3925_v50 = vrot.slane %v3901_v53, 6  ;;  %3957 = vst [vmem:[#allocation1 + $0x2] ss:$4 sm:$0xff] %v3901_v53  ;;  %v4008_v3 = vrot.slane %v4007_v29, 4 }
 0x92d   :  { %v3991_v57 = vrot.slane %v3990_v55, 1  ;;  %v3985_v26 = vadd.f32 %v3984_v4, %v3983_v14  ;;  %v4006_v7 = vadd.f32 %v4005_v17, %v4004_v21  ;;  %4107 = vmatpush.msrb.mxu2 %v4081_v28  ;;  %v4033_v33 = vmul.f32 6.0, %v4032_v48  ;;  %v4160_v4 = vld [vmem:[%s6358_s22] sm:$0xff]  ;;  %v4237_v28 = vld [vmem:[%s6360_s24 + $0x10] sm:$0xff] }
 0x92e   :  { %3959 = vst [vmem:[#allocation1 + $0x20] ss:$4 sm:$0xff] %v3923_v0  ;;  %v4009_v39 = vadd.f32 %v4008_v3, %v4007_v29  ;;  %v4124_v29 = vrot.slane %v4652_v12, 1  ;;  %v4123_v0 = vsel %vm4055_vm13, %v4122_v27, %v5092_v24  ;;  %v4163_v24 = vld [vmem:[%s6358_s22 + $0x18] sm:$0xff]  ;;  %v4473_v17 = vld [vmem:[%s6357_s21] ss:$0 sm:$0xff] }
 0x92f   :  { %3960 = vst [vmem:[#allocation1 + $0x21] ss:$4 sm:$0xff] %v3924_v31  ;;  %v3992_v22 = vadd.f32 %v3991_v57, %v3990_v55  ;;  %v4046_v44 = vsel %vm4045_vm1, %v3985_v26, %v3978_v35  ;;  %v4035_v2 = vperm.slane %v4033_v33, 0  ;;  %v4236_v33 = vld [vmem:[%s6360_s24 + $0x8] sm:$0xff] }
 0x930   :  { %3961 = vst [vmem:[#allocation1 + $0x22] ss:$4 sm:$0xff] %v3925_v50  ;;  %v4010_v58 = vrot.slane %v4009_v39, 2  ;;  %v4125_v31 = vsel %vm4057_vm8, %v4124_v29, %v4123_v0  ;;  %v4471_v50 = vld [vmem:[#allocation9] ss:$0 sm:$0xff] }
 0x931   :  { %v4048_v63 = vsel %vm4047_vm2, %v3992_v22, %v4046_v44 }
 0x932   :  { %v4011_v40 = vadd.f32 %v4010_v58, %v4009_v39  ;;  %v4050_v1 = vsel %vm4049_vm3, %v3999_v61, %v4048_v63  ;;  %v4162_v58 = vld [vmem:[%s6358_s22 + $0x10] sm:$0xff] }
 0x933   :  { %v3958_v38 = vld.sshfl [vmem:[#allocation1] sm:$0xff pattern:$0x73625140]  ;;  %v4052_v56 = vsel %vm4051_vm4, %v4006_v7, %v4050_v1 }
 0x934   :  { %v4014_v60 = vsel %vm3971_vm9, %v3958_v38, 0.0  ;;  %v4012_v43 = vrot.slane %v4011_v40, 1  ;;  %v4161_v38 = vld [vmem:[%s6358_s22 + $0x8] sm:$0xff] }
 0x935   :  { %v4015_v16 = vrot.slane %v4014_v60, 4 }
 0x936   :  { %v4013_v19 = vadd.f32 %v4012_v43, %v4011_v40  ;;  %v4474_v43 = vld [vmem:[%s6359_s23] ss:$0 sm:$0xff] }
 0x937   :  { %v3962_v46 = vld.sshfl [vmem:[#allocation1 + $0x20] sm:$0xff pattern:$0x73625140]  ;;  %v4016_v45 = vadd.f32 %v4015_v16, %v4014_v60 }
 0x938   :  { %v4021_v42 = vsel %vm3971_vm9, %v3962_v46, 0.0  ;;  %v4054_v18 = vsel %vm4053_vm5, %v4013_v19, %v4052_v56  ;;  %v4240_v56 = vld [vmem:[%s6360_s24 + $0x28] sm:$0xff] }
 0x939   :  { %v4017_v25 = vrot.slane %v4016_v45, 2  ;;  %v4022_v20 = vrot.slane %v4021_v42, 4 }
 0x93b   :  { %v4018_v36 = vadd.f32 %v4017_v25, %v4016_v45  ;;  %v4023_v13 = vadd.f32 %v4022_v20, %v4021_v42 }
 0x93d   :  { %v4019_v11 = vrot.slane %v4018_v36, 1  ;;  %v4024_v32 = vrot.slane %v4023_v13, 2 }
 0x93f   :  { %v4020_v5 = vadd.f32 %v4019_v11, %v4018_v36  ;;  %v4025_v10 = vadd.f32 %v4024_v32, %v4023_v13  ;;  %v4242_v11 = vld [vmem:[%s6360_s24 + $0x38] sm:$0xff] }
 0x941   :  { %v4026_v41 = vrot.slane %v4025_v10, 1  ;;  %v4056_v37 = vsel %vm4055_vm13, %v4020_v5, %v4054_v18 }
 0x943   :  { %v4027_v34 = vadd.f32 %v4026_v41, %v4025_v10  ;;  %v4241_v10 = vld [vmem:[%s6360_s24 + $0x30] sm:$0xff] }
 0x945   :  { %v4058_v6 = vsel %vm4057_vm8, %v4027_v34, %v4056_v37  ;;  %v4239_v37 = vld [vmem:[%s6360_s24 + $0x20] sm:$0xff] }
 0x946   :  { %4442 = vmatmul.msk.f32.vlgmr.msra.gmra.mxu2 %vm215_vm0, %v4058_v6  ;;  %v4238_v6 = vld [vmem:[%s6360_s24 + $0x18] sm:$0xff] }
 0x947   :  { %4183 = vmatpush.msra.mxu2 %v4163_v24 }
 0x949   :  { %4184 = vmatpush.msra.mxu2 %v4162_v58 }
 0x94b   :  { %4185 = vmatpush.msra.mxu2 %v4161_v38 }
 0x94d   :  { %4186 = vmatpush.msra.mxu2 %v4160_v4 }
 0x9c9   :  { %v4078_v53 = vpop.f32.mrf.mxu2 }
 0x9ca   :  { %v4079_v8 = vadd.f32 %v4078_v53, %v4035_v2  ;;  %v4235_v53 = vld [vmem:[%s6360_s24] sm:$0xff] }
 0x9cc   :  { %4443 = vmatmul.msk.f32.vlgmr.msrb.gmra.mxu2 %vm215_vm0, %v4079_v8 }
 0x9cd   :  { %4258 = vmatpush.msrb.mxu2 %v4242_v11 }
 0x9cf   :  { %4259 = vmatpush.msrb.mxu2 %v4241_v10 }
 0x9d1   :  { %4260 = vmatpush.msrb.mxu2 %v4240_v56 }
 0x9d3   :  { %4261 = vmatpush.msrb.mxu2 %v4239_v37 }
 0x9d5   :  { %4262 = vmatpush.msrb.mxu2 %v4238_v6 }
 0x9d7   :  { %4263 = vmatpush.msrb.mxu2 %v4237_v28 }
 0x9d9   :  { %4264 = vmatpush.msrb.mxu2 %v4236_v33 }
 0x9db   :  { %4265 = vmatpush.msrb.mxu2 %v4235_v53 }
 0xa4f   :  { %v4109_v54 = vpop.f32.mrf.mxu2 }
 0xa50   :  { %v4110_v47 = vadd.f32 %v4471_v50, %v4109_v54 }
 0xa52   :  { %v4127_v3 = vadd.f32 %v4125_v31, %v4110_v47 }
 0xa54   :  { %v4128_v14 = vsel %vm215_vm0, %v4127_v3, 0.0 }
 0xa55   :  { %4129 = vadd.xlane.f32.xlu2 %v4128_v14 }
 0xac8   :  { %v4130_v62 = vpop.xlane.xlu2 %4129 }
 0xac9   :  { %v4131_v39 = vmul.f32 %v4130_v62, %v5853_v23 }
 0xacb   :  { %v4132_v55 = vsub.f32 %v4127_v3, %v4131_v39 }
 0xacd   :  { %v4133_v15 = vmul.f32 %v4132_v55, %v4132_v55 }
 0xacf   :  { %v4134_v52 = vsel %vm215_vm0, %v4133_v15, 0.0 }
 0xad0   :  { %4135 = vadd.xlane.f32.xlu0 %v4134_v52 }
 0xb43   :  { %v4136_v49 = vpop.xlane.xlu0 %4135 }
 0xb44   :  { %v4137_v57 = vmul.f32 %v4136_v49, %v5853_v23 }
 0xb46   :  { %v4138_v21 = vadd.f32 1e-12, %v4137_v57 }
 0xb48   :  { %4644 = vrsqrt.f32 %v4138_v21  ;;  %vm4145_vm2 = vweird.f32 %v4138_v21 }
 0xb4e   :  { %v4645_v60 = vpop.eup %4644 }
 0xb4f   :  { %v4140_v30 = vmul.f32 %v4645_v60, %v4138_v21  ;;  %vm4146_vm1 = vweird.f32 %v4645_v60  ;;  %v4475_v21 = vld [vmem:[#allocation12] ss:$0 sm:$0xff] }
 0xb50   :  { %vm4147_vm3 = vmor %vm4145_vm2, %vm4146_vm1 }
 0xb51   :  { %v4141_v40 = vmul.f32 %v4645_v60, %v4140_v30 }
 0xb53   :  { %v4142_v16 = vmul.f32 0.5, %v4141_v40 }
 0xb55   :  { %v4143_v46 = vsub.f32 1.5, %v4142_v16 }
 0xb57   :  { %v4144_v26 = vmul.f32 %v4645_v60, %v4143_v46 }
 0xb59   :  { %v4148_v45 = vsel %vm4147_vm3, %v4645_v60, %v4144_v26 }
 0xb5a   :  { %v4149_v22 = vmul.f32 %v4148_v45, %v4132_v55 }
 0xb5c   :  { %v4154_v42 = vmul.f32 %v4472_v51, %v4149_v22 }
 0xb5e   :  { %v6292_v35 = vadd.f32 %v4473_v17, %v4154_v42 }
 0xb60   :  { %4444 = vmatmul.msk.f32.vlgmr.msra.gmra.mxu2 %vm215_vm0, %v6292_v35 }
 0xbe3   :  { %v4188_v25 = vpop.f32.mrf.mxu2 }
 0xbe4   :  { %v4189_v20 = vadd.f32 %v4474_v43, %v4188_v25 }
 0xbe6   :  { %v4192_v61 = vmul.f32 0.70710677, %v4189_v20  ;;  %v4191_v4 = vmul.f32 0.5, %v4189_v20 }
 0xbe8   :  { %v4193_v36 = vmul.f32 %v4192_v61, %v4192_v61 }
 0xbea   :  { %v4194_v13 = vmin.f32 %v4193_v36, 16.0 }
 0xbec   :  { %v4195_v44 = vmul.f32 2.1237322e-06, %v4194_v13  ;;  %v4206_v7 = vmul.f32 3.8918573e-05, %v4194_v13 }
 0xbee   :  { %v4196_v63 = vadd.f32 0.00028619796, %v4195_v44  ;;  %v4207_v19 = vadd.f32 0.001143296, %v4206_v7  ;;  %v4476_v44 = vld [vmem:[#allocation13] ss:$0 sm:$0xff] }
 0xbf0   :  { %v4197_v32 = vmul.f32 %v4196_v63, %v4194_v13  ;;  %v4208_v5 = vmul.f32 %v4207_v19, %v4194_v13  ;;  %v4477_v63 = vld [vmem:[%s6363_s27] ss:$0 sm:$0xff] }
 0xbf2   :  { %v4209_v1 = vadd.f32 0.014752088, %v4208_v5  ;;  %v4198_v41 = vadd.f32 0.0036580483, %v4197_v32 }
 0xbf4   :  { %v4210_v18 = vmul.f32 %v4209_v1, %v4194_v13  ;;  %v4199_v59 = vmul.f32 %v4198_v41, %v4194_v13 }
 0xbf6   :  { %v4211_v34 = vadd.f32 0.112945676, %v4210_v18  ;;  %v4200_v8 = vadd.f32 0.05243302, %v4199_v59 }
 0xbf8   :  { %v4212_v48 = vmul.f32 %v4211_v34, %v4194_v13  ;;  %v4201_v12 = vmul.f32 %v4200_v8, %v4194_v13 }
 0xbfa   :  { %v4213_v2 = vadd.f32 0.4994258, %v4212_v48  ;;  %v4202_v29 = vadd.f32 0.18741608, %v4201_v12 }
 0xbfc   :  { %v4214_v9 = vmul.f32 %v4213_v2, %v4194_v13  ;;  %v4203_v31 = vmul.f32 %v4202_v29, %v4194_v13 }
 0xbfe   :  { %v4215_v27 = vadd.f32 1.0, %v4214_v9  ;;  %v4204_v3 = vadd.f32 1.1283791, %v4203_v31 }
 0xc00   :  { %4646 = vrcp.f32 %v4215_v27  ;;  %v4227_v47 = vand.u32 2147483648, %v4215_v27  ;;  %v4225_v62 = vand.u32 2147483647, %v4215_v27  ;;  %vm4221_vm5 = vweird.f32 %v4215_v27 }
 0xc01   :  { %v4205_v15 = vmul.f32 %v4204_v3, %v4192_v61 }
 0xc02   :  { %v4228_v55 = vor.u32 1.1754944e-38, %v4227_v47  ;;  %vm4226_vm6 = vcmp.eq.f32.partialorder %v4225_v62, 8.507059e+37 }
 0xc06   :  { %v4647_v0 = vpop.eup %4646 }
 0xc07   :  { %v4217_v50 = vmul.f32 %v4647_v0, %v4215_v27  ;;  %vm4222_vm4 = vweird.f32 %v4647_v0 }
 0xc08   :  { %vm4223_vm7 = vmor %vm4221_vm5, %vm4222_vm4 }
 0xc09   :  { %v4218_v54 = vsub.f32 1.0, %v4217_v50 }
 0xc0b   :  { %v4219_v14 = vmul.f32 %v4647_v0, %v4218_v54 }
 0xc0d   :  { %v4220_v39 = vadd.f32 %v4647_v0, %v4219_v14 }
 0xc0f   :  { %v4224_v52 = vsel %vm4223_vm7, %v4647_v0, %v4220_v39 }
 0xc10   :  { %v4229_v24 = vsel %vm4226_vm6, %v4228_v55, %v4224_v52 }
 0xc11   :  { %v4230_v58 = vmul.f32 %v4229_v24, %v4205_v15 }
 0xc13   :  { %v4445_v38 = vclamps-f32 %v4230_v58, 1.0 }
 0xc15   :  { %v4233_v49 = vadd.f32 1.0, %v4445_v38 }
 0xc17   :  { %v4234_v57 = vmul.f32 %v4233_v49, %v4191_v4 }
 0xc19   :  { %4446 = vmatmul.msk.f32.vlgmr.msrb.gmra.mxu2 %vm3690_vm12, %v4234_v57 }
 0xc9c   :  { %v4267_v60 = vpop.f32.mrf.mxu2 }
 0xc9d   :  { %v4268_v30 = vadd.f32 %v4475_v21, %v4267_v60 }
 0xc9f   :  { %v4270_v40 = vadd.f32 %v4268_v30, %v6292_v35 }
 0xca1   :  { %v4271_v16 = vsel %vm215_vm0, %v4270_v40, 0.0 }
 0xca2   :  { %4272 = vadd.xlane.f32.xlu1 %v4271_v16 }
 0xd15   :  { %v4273_v46 = vpop.xlane.xlu1 %4272 }
 0xd16   :  { %v4274_v26 = vmul.f32 %v4273_v46, %v5853_v23 }
 0xd18   :  { %v4275_v51 = vsub.f32 %v4270_v40, %v4274_v26 }
 0xd1a   :  { %v4276_v45 = vmul.f32 %v4275_v51, %v4275_v51 }
 0xd1c   :  { %v4277_v22 = vsel %vm215_vm0, %v4276_v45, 0.0 }
 0xd1d   :  { %4278 = vadd.xlane.f32.xlu2 %v4277_v22 }
 0xd90   :  { %v4279_v17 = vpop.xlane.xlu2 %4278 }
 0xd91   :  { %v4280_v42 = vmul.f32 %v4279_v17, %v5853_v23 }
 0xd93   :  { %v4281_v43 = vadd.f32 1e-12, %v4280_v42 }
 0xd95   :  { %4648 = vrsqrt.f32 %v4281_v43  ;;  %vm4288_vm15 = vweird.f32 %v4281_v43 }
 0xd9b   :  { %v4649_v25 = vpop.eup %4648 }
 0xd9c   :  { %v4283_v20 = vmul.f32 %v4649_v25, %v4281_v43  ;;  %vm4289_vm12 = vweird.f32 %v4649_v25 }
 0xd9d   :  { %vm4290_vm9 = vmor %vm4288_vm15, %vm4289_vm12 }
 0xd9e   :  { %v4284_v61 = vmul.f32 %v4649_v25, %v4283_v20 }
 0xda0   :  { %v4285_v35 = vmul.f32 0.5, %v4284_v61 }
 0xda2   :  { %v4286_v36 = vsub.f32 1.5, %v4285_v35 }
 0xda4   :  { %v4287_v13 = vmul.f32 %v4649_v25, %v4286_v36 }
 0xda6   :  { %v4291_v7 = vsel %vm4290_vm9, %v4649_v25, %v4287_v13 }
 0xda7   :  { %v4292_v19 = vmul.f32 %v4291_v7, %v4275_v51 }
 0xda9   :  { %v4297_v11 = vmul.f32 %v4476_v44, %v4292_v19 }
 0xdab   :  { %v4302_v23 = vadd.f32 %v4477_v63, %v4297_v11 }
 0xdad   :  { %4303 = vst.msk [vmem:[%s6415_s3] sm:$0xff] %vm215_vm0, %v4302_v23 }
 0xdae   :  { %4308 = vsyncpa [#allocation3], 1 }
 0xdaf   :  { %4309 = vsyncpa [#allocation5], 1 }
 0xdb0   :  { %4310 = vsyncpa [#allocation8], 1 }
 0xdb1   :  { %4311 = vsyncpa [#allocation11], 1 }
 0xdb2   :  { %4312 = vsyncpa [#allocation14], 1 }

</bundles_post_ra>
